<compile_context>
chip_gen: v6e
topology: v6e:2x2x1
jax: 0.10.0
libtpu: 0.0.40
codegen_flags: <defaults>
</compile_context>

<pallas_src>
import functools

import jax
import jax.numpy as jnp
from jax.experimental import pallas as pl
from jax.experimental.pallas import tpu as pltpu

OWP = 8     # conv1 output width padded to one sublane tile
TAP = 16    # lane stride per transpose-conv tap (10 out-channels padded to 16)
K1 = 256    # conv1 im2col K (25 * 10 = 250) padded to two lane tiles
TW = 512    # 25 taps * TAP = 400 padded to four lane tiles


def _col_shift(x, db):
    """y[:, j, :] = x[:, j + db, :] (cyclic).  The wrapped-in column is either
    the zeroed pad column (db = -1) or lands in an output column that is
    cropped on the host (db = +1), so a plain rotation is exact."""
    if db == 0:
        return x
    s = db % x.shape[1]
    return jnp.concatenate([x[:, s:, :], x[:, :s, :]], axis=1)


def _place_rows(x, r0, r1, total):
    """Zero-extend x (accumulator rows [r0, r1)) to `total` rows along dim 0."""
    parts = []
    if r0 > 0:
        parts.append(jnp.zeros((r0,) + x.shape[1:], x.dtype))
    parts.append(x)
    if r1 < total:
        parts.append(jnp.zeros((total - r1,) + x.shape[1:], x.dtype))
    return parts[0] if len(parts) == 1 else jnp.concatenate(parts, axis=0)


# ---------------------------------------------------------------------------
# Fused kernel: conv1 -> relu -> convT -> (+10.22, relu, -0.9, tanh)
# ---------------------------------------------------------------------------
def _fused_kernel(p1_ref, w1f_ref, b1_ref, w2c_ref, b2c_ref, out_ref, u_ref, *,
                  bblk, oh1, ow1):
    ph = oh1 + 1                       # per-phase (padded) output height
    cout = out_ref.shape[-1]

    # ---- conv1 as one MXU matmul (bf16 in, f32 acc) + bias + ReLU ----------
    v1 = jnp.dot(p1_ref[...], w1f_ref[...], preferred_element_type=jnp.float32)
    v2 = jnp.maximum(v1 + b1_ref[...], 0.0)
    # zero the ow-pad rows (sublane index >= ow1) so the pad column of u is 0.
    col = jax.lax.broadcasted_iota(jnp.int32, v2.shape, 0) & (OWP - 1)
    v2 = jnp.where(col < ow1, v2, 0.0)

    # ---- project through all 25 transpose-conv taps at once (bf16 MXU) -----
    u = jnp.dot(v2.astype(jnp.bfloat16), w2c_ref[...],
                preferred_element_type=jnp.float32)
    # lane-dense store; reshape (bblk*oh1*8, TW) -> (bblk, oh1, 8, TW) is free.
    u_ref[...] = u.reshape(u_ref.shape)

    bias = jnp.broadcast_to(b2c_ref[...].reshape(1, 1, cout), (ph, OWP, cout))

    # ---- stride-2 col2im, register-accumulated per phase; 1 store / phase ---
    for b in range(bblk):
        for py in range(2):
            for px in range(2):
                acc = jnp.zeros((ph, OWP, cout), jnp.float32)
                for kx in range(1 - px, 5, 2):
                    db = (px + 1 - kx) // 2
                    grp = jnp.zeros((ph, OWP, cout), jnp.float32)
                    for ky in range(1 - py, 5, 2):
                        da = (py + 1 - ky) // 2
                        ay0, ay1 = max(0, -da), min(ph, oh1 - da)
                        lane0 = (ky * 5 + kx) * TAP
                        slab = u_ref[b, ay0 + da:ay1 + da, :,
                                     lane0:lane0 + cout]
                        grp += _place_rows(slab, ay0, ay1, ph)
                    acc += _col_shift(grp, db)
                # fused (x + b2 + 10.22) -> relu -> -0.9 -> tanh tail
                o = jnp.tanh(jnp.maximum(acc + bias, 0.0) - 0.9)
                out_ref[b * 4 + py * 2 + px] = o
    # TODO(synk): output lane dim stays 10 (masked vst); switch to a lane-dense
    # channel-major slab if spatial/batch ever grows enough for it to matter.


# ---------------------------------------------------------------------------
# Host-side glue: conv1 im2col, weight repacking, phase interleave
# ---------------------------------------------------------------------------
def _im2col_conv1(x_nhwc, kh, kw, stride, pad):
    x = jnp.pad(x_nhwc, ((0, 0), (pad, pad), (pad, pad), (0, 0)))
    n, hp, wp, c = x.shape
    oh = (hp - kh) // stride + 1
    ow = (wp - kw) // stride + 1
    cols = []
    for i in range(kh):
        for j in range(kw):
            cols.append(x[:, i:i + stride * (oh - 1) + 1:stride,
                          j:j + stride * (ow - 1) + 1:stride, :])
    patches = jnp.stack(cols, axis=3)                 # (N, OH, OW, KH*KW, C)
    return patches.reshape(n, oh, ow, kh * kw * c), oh, ow


def model_forward(x_nchw, params, *, batch_block=4):
    w1, b1, w2, b2 = params["w1"], params["b1"], params["w2"], params["b2"]
    n, cin, _, _ = x_nchw.shape
    cout = w2.shape[1]
    x = jnp.transpose(x_nchw, (0, 2, 3, 1)).astype(jnp.float32)      # NHWC

    # conv1 im2col; pad ow to the 8-sublane tile and K to 256 lanes.
    p1, oh1, ow1 = _im2col_conv1(x, 5, 5, stride=2, pad=1)
    assert ow1 < OWP, "kernel layout assumes conv1 output width <= 7"
    p1 = jnp.pad(p1, ((0, 0), (0, 0), (0, OWP - ow1), (0, K1 - p1.shape[-1])))

    bblk = max(1, min(batch_block, n))
    n_pad = ((n + bblk - 1) // bblk) * bblk
    if n_pad != n:
        p1 = jnp.pad(p1, ((0, n_pad - n), (0, 0), (0, 0), (0, 0)))
    mrows = oh1 * OWP
    p1 = p1.reshape(n_pad * mrows, K1).astype(jnp.bfloat16)

    # conv1 weight: (Cout, Cin, KH, KW) -> (KH*KW*Cin padded to 256, 32), bf16.
    w1f = jnp.transpose(w1, (2, 3, 1, 0)).reshape(25 * cin, 32)
    w1f = jnp.pad(w1f, ((0, K1 - 25 * cin), (0, 0))).astype(jnp.bfloat16)
    # convT weight: (Cin=32, Cout, KH, KW) -> (32, 25 taps * 16 lanes), bf16.
    w2c = jnp.transpose(w2, (0, 2, 3, 1))
    w2c = jnp.pad(w2c, ((0, 0), (0, 0), (0, 0), (0, TAP - cout)))
    w2c = jnp.pad(w2c.reshape(32, 25 * TAP), ((0, 0), (0, TW - 25 * TAP)))
    w2c = w2c.astype(jnp.bfloat16)

    b1r = b1.reshape(1, 32).astype(jnp.float32)
    b2c = (b2 + 10.22).reshape(1, cout).astype(jnp.float32)   # fold the +10.22

    ph = oh1 + 1                                       # per-phase grid height
    kernel = functools.partial(_fused_kernel, bblk=bblk, oh1=oh1, ow1=ow1)
    out_raw = pl.pallas_call(
        kernel,
        out_shape=jax.ShapeDtypeStruct((n_pad * 4, ph, OWP, cout), jnp.float32),
        grid=(n_pad // bblk,),
        in_specs=[
            pl.BlockSpec((bblk * mrows, K1), lambda i: (i, 0)),     # patches
            pl.BlockSpec((K1, 32), lambda i: (0, 0)),               # conv1 W
            pl.BlockSpec((1, 32), lambda i: (0, 0)),                # conv1 b
            pl.BlockSpec((32, TW), lambda i: (0, 0)),               # convT taps
            pl.BlockSpec((1, cout), lambda i: (0, 0)),              # b2 + 10.22
        ],
        out_specs=pl.BlockSpec((bblk * 4, ph, OWP, cout),
                               lambda i: (i, 0, 0, 0)),
        scratch_shapes=[pltpu.VMEM((bblk, oh1, OWP, TW), jnp.float32)],
        compiler_params=pltpu.CompilerParams(
            dimension_semantics=("parallel",)),
    )(p1, w1f, b1r, w2c, b2c)

    # interleave the four stride-2 phases and crop the pads (tiny host glue).
    phs = out_raw.reshape(n_pad, 2, 2, ph, OWP, cout)
    full = jnp.transpose(phs, (0, 3, 1, 4, 2, 5)).reshape(
        n_pad, 2 * ph, 2 * OWP, cout)
    y = full[:n, :2 * oh1 + 1, :2 * ow1 + 1, :]
    return jnp.transpose(y, (0, 3, 1, 2))                            # NCHW


# ---------------------------------------------------------------------------
# Deterministic parameter init (shapes from the PyTorch module __init__)
# ---------------------------------------------------------------------------
def init_params(key):
    k1, k2, k3, k4 = jax.random.split(key, 4)
    bound1 = 1.0 / (10 * 5 * 5) ** 0.5
    bound2 = 1.0 / (32 * 5 * 5) ** 0.5
    return {
        "w1": jax.random.uniform(k1, (32, 10, 5, 5), jnp.float32, -bound1, bound1),
        "b1": jax.random.uniform(k2, (32,), jnp.float32, -bound1, bound1),
        "w2": jax.random.uniform(k3, (32, 10, 5, 5), jnp.float32, -bound2, bound2),
        "b2": jax.random.uniform(k4, (10,), jnp.float32, -bound2, bound2),
    }


# Pure-JAX reference (XLA convs) for a correctness sanity check.
def reference(x, params):
    w1, b1, w2, b2 = params["w1"], params["b1"], params["w2"], params["b2"]
    v1 = jax.lax.conv_general_dilated(
        x, w1, window_strides=(2, 2), padding=[(1, 1), (1, 1)],
        dimension_numbers=("NCHW", "OIHW", "NCHW")) + b1[None, :, None, None]
    v2 = jnp.maximum(v1, 0.0)
    w2_eq = jnp.transpose(w2[:, :, ::-1, ::-1], (1, 0, 2, 3))  # (10, 32, 5, 5)
    v3 = jax.lax.conv_general_dilated(
        v2, w2_eq, window_strides=(1, 1), padding=[(3, 3), (3, 3)],
        lhs_dilation=(2, 2),
        dimension_numbers=("NCHW", "OIHW", "NCHW")) + b2[None, :, None, None]
    v4 = v3 + 10.22
    v5 = jnp.maximum(v4, 0.0)
    v6 = v5 - 0.9
    return jnp.tanh(v6)


if __name__ == "__main__":
    key = jax.random.PRNGKey(0)
    kx_, kp_ = jax.random.split(key)
    # Small shape consistent with the module (10 input channels required).
    x1 = jax.random.normal(kx_, (4, 10, 16, 16), jnp.float32)
    params = init_params(kp_)

    fwd = jax.jit(functools.partial(model_forward, params=params,
                                    batch_block=2))
    out = jax.block_until_ready(fwd(x1))

    assert out.shape == (4, 10, 15, 15), out.shape
    ref = reference(x1, params)
    err = float(jnp.max(jnp.abs(out - ref)))
    assert jnp.allclose(out, ref, atol=5e-4, rtol=1e-3), err
    print("KERNEL_OK")
</pallas_src>

<mosaic_0001>
module attributes {stable_mosaic.version = 11 : i64} {
  func.func @_fused_kernel(%arg0: i32, %arg1: memref<112x256xbf16, #tpu.memory_space<vmem>>, %arg2: memref<256x32xbf16, #tpu.memory_space<vmem>>, %arg3: memref<1x32xf32, #tpu.memory_space<vmem>>, %arg4: memref<32x512xbf16, #tpu.memory_space<vmem>>, %arg5: memref<1x10xf32, #tpu.memory_space<vmem>>, %arg6: memref<8x8x8x10xf32, #tpu.memory_space<vmem>>, %arg7: memref<2x7x8x512xf32, #tpu.memory_space<vmem>>) attributes {dimension_semantics = [#tpu.dimension_semantics<parallel>], iteration_bounds = array<i64: 2>, scalar_prefetch = 0 : i64, scratch_operands = 1 : i64, tpu.core_type = #tpu.core_type<tc>, window_params = [{transform_indices = @transform_0, window_bounds = array<i64: 112, 256>}, {pipeline_mode = #tpu.pipeline_mode<synchronous>, transform_indices = @transform_1, window_bounds = array<i64: 256, 32>}, {pipeline_mode = #tpu.pipeline_mode<synchronous>, transform_indices = @transform_2, window_bounds = array<i64: 1, 32>}, {pipeline_mode = #tpu.pipeline_mode<synchronous>, transform_indices = @transform_3, window_bounds = array<i64: 32, 512>}, {pipeline_mode = #tpu.pipeline_mode<synchronous>, transform_indices = @transform_4, window_bounds = array<i64: 1, 10>}, {transform_indices = @transform_5, window_bounds = array<i64: 8, 8, 8, 10>}]} {
    %c0 = arith.constant 0 : index
    %c0_0 = arith.constant 0 : index
    %0 = vector.load %arg1[%c0, %c0_0] : memref<112x256xbf16, #tpu.memory_space<vmem>>, vector<112x256xbf16>
    %c0_1 = arith.constant 0 : index
    %c0_2 = arith.constant 0 : index
    %1 = vector.load %arg2[%c0_1, %c0_2] : memref<256x32xbf16, #tpu.memory_space<vmem>>, vector<256x32xbf16>
    %cst = arith.constant dense<0.000000e+00> : vector<112x32xf32>
    %2 = tpu.matmul %0, %1, %cst {dimension_numbers = #tpu.dot_dimension_numbers<[1], [0], [0], [1], [0, 0, 1, 1], [], []>} : vector<112x256xbf16>, vector<256x32xbf16>, vector<112x32xf32> -> vector<112x32xf32>
    %c0_3 = arith.constant 0 : index
    %c0_4 = arith.constant 0 : index
    %3 = vector.load %arg3[%c0_3, %c0_4] : memref<1x32xf32, #tpu.memory_space<vmem>>, vector<1x32xf32>
    %4 = vector.broadcast %3 : vector<1x32xf32> to vector<112x32xf32>
    %5 = arith.addf %2, %4 : vector<112x32xf32>
    %cst_5 = arith.constant 0.000000e+00 : f32
    %6 = vector.broadcast %cst_5 : f32 to vector<112x32xf32>
    %7 = arith.maximumf %5, %6 : vector<112x32xf32>
    %8 = tpu.iota {dimensions = array<i32: 0>} : vector<112x32xi32>
    %c7_i32 = arith.constant 7 : i32
    %9 = vector.broadcast %c7_i32 : i32 to vector<112x32xi32>
    %10 = arith.andi %8, %9 : vector<112x32xi32>
    %c7_i32_6 = arith.constant 7 : i32
    %11 = vector.broadcast %c7_i32_6 : i32 to vector<112x32xi32>
    %12 = arith.cmpi slt, %10, %11 : vector<112x32xi32>
    %cst_7 = arith.constant 0.000000e+00 : f32
    %13 = vector.broadcast %cst_7 : f32 to vector<112x32xf32>
    %14 = arith.select %12, %7, %13 : vector<112x32xi1>, vector<112x32xf32>
    %15 = arith.truncf %14 : vector<112x32xf32> to vector<112x32xbf16>
    %c0_8 = arith.constant 0 : index
    %c0_9 = arith.constant 0 : index
    %16 = vector.load %arg4[%c0_8, %c0_9] : memref<32x512xbf16, #tpu.memory_space<vmem>>, vector<32x512xbf16>
    %cst_10 = arith.constant dense<0.000000e+00> : vector<112x512xf32>
    %17 = tpu.matmul %15, %16, %cst_10 {dimension_numbers = #tpu.dot_dimension_numbers<[1], [0], [0], [1], [0, 0, 1, 1], [], []>} : vector<112x32xbf16>, vector<32x512xbf16>, vector<112x512xf32> -> vector<112x512xf32>
    %18 = vector.shape_cast %17 : vector<112x512xf32> to vector<2x7x8x512xf32>
    %c0_11 = arith.constant 0 : index
    %c0_12 = arith.constant 0 : index
    %c0_13 = arith.constant 0 : index
    %c0_14 = arith.constant 0 : index
    %19 = vector.load %arg7[%c0_11, %c0_12, %c0_13, %c0_14] : memref<2x7x8x512xf32, #tpu.memory_space<vmem>>, vector<2x7x8x512xf32>
    tpu.vector_store %arg7[%c0_11, %c0_12, %c0_13, %c0_14], %18 {strides = array<i32>} : memref<2x7x8x512xf32, #tpu.memory_space<vmem>>, vector<2x7x8x512xf32>,
    %c0_15 = arith.constant 0 : index
    %c0_16 = arith.constant 0 : index
    %20 = vector.load %arg5[%c0_15, %c0_16] : memref<1x10xf32, #tpu.memory_space<vmem>>, vector<1x10xf32>
    %21 = vector.shape_cast %20 : vector<1x10xf32> to vector<1x1x10xf32>
    %22 = vector.shape_cast %21 : vector<1x1x10xf32> to vector<1x1x10xf32>
    %23 = vector.broadcast %22 : vector<1x1x10xf32> to vector<8x8x10xf32>
    %cst_17 = arith.constant 0.000000e+00 : f32
    %24 = vector.broadcast %cst_17 : f32 to vector<8x8x10xf32>
    %cst_18 = arith.constant 0.000000e+00 : f32
    %25 = vector.broadcast %cst_18 : f32 to vector<8x8x10xf32>
    %c0_19 = arith.constant 0 : index
    %c0_20 = arith.constant 0 : index
    %c0_21 = arith.constant 0 : index
    %c96 = arith.constant 96 : index
    %26 = vector.load %arg7[%c0_19, %c0_20, %c0_21, %c96] : memref<2x7x8x512xf32, #tpu.memory_space<vmem>>, vector<1x7x8x10xf32>
    %27 = vector.shape_cast %26 : vector<1x7x8x10xf32> to vector<7x8x10xf32>
    %cst_22 = arith.constant 0.000000e+00 : f32
    %28 = vector.broadcast %cst_22 : f32 to vector<1x8x10xf32>
    %29 = tpu.concatenate %27, %28 in 0 : vector<7x8x10xf32>, vector<1x8x10xf32> -> vector<8x8x10xf32>
    %30 = arith.addf %25, %29 : vector<8x8x10xf32>
    %c0_23 = arith.constant 0 : index
    %c0_24 = arith.constant 0 : index
    %c0_25 = arith.constant 0 : index
    %c256 = arith.constant 256 : index
    %31 = vector.load %arg7[%c0_23, %c0_24, %c0_25, %c256] : memref<2x7x8x512xf32, #tpu.memory_space<vmem>>, vector<1x7x8x10xf32>
    %32 = vector.shape_cast %31 : vector<1x7x8x10xf32> to vector<7x8x10xf32>
    %cst_26 = arith.constant 0.000000e+00 : f32
    %33 = vector.broadcast %cst_26 : f32 to vector<1x8x10xf32>
    %34 = tpu.concatenate %33, %32 in 0 : vector<1x8x10xf32>, vector<7x8x10xf32> -> vector<8x8x10xf32>
    %35 = arith.addf %30, %34 : vector<8x8x10xf32>
    %36 = arith.addf %24, %35 : vector<8x8x10xf32>
    %cst_27 = arith.constant 0.000000e+00 : f32
    %37 = vector.broadcast %cst_27 : f32 to vector<8x8x10xf32>
    %c0_28 = arith.constant 0 : index
    %c0_29 = arith.constant 0 : index
    %c0_30 = arith.constant 0 : index
    %c128 = arith.constant 128 : index
    %38 = vector.load %arg7[%c0_28, %c0_29, %c0_30, %c128] : memref<2x7x8x512xf32, #tpu.memory_space<vmem>>, vector<1x7x8x10xf32>
    %39 = vector.shape_cast %38 : vector<1x7x8x10xf32> to vector<7x8x10xf32>
    %cst_31 = arith.constant 0.000000e+00 : f32
    %40 = vector.broadcast %cst_31 : f32 to vector<1x8x10xf32>
    %41 = tpu.concatenate %39, %40 in 0 : vector<7x8x10xf32>, vector<1x8x10xf32> -> vector<8x8x10xf32>
    %42 = arith.addf %37, %41 : vector<8x8x10xf32>
    %c0_32 = arith.constant 0 : index
    %c0_33 = arith.constant 0 : index
    %c0_34 = arith.constant 0 : index
    %c288 = arith.constant 288 : index
    %43 = vector.load %arg7[%c0_32, %c0_33, %c0_34, %c288] : memref<2x7x8x512xf32, #tpu.memory_space<vmem>>, vector<1x7x8x10xf32>
    %44 = vector.shape_cast %43 : vector<1x7x8x10xf32> to vector<7x8x10xf32>
    %cst_35 = arith.constant 0.000000e+00 : f32
    %45 = vector.broadcast %cst_35 : f32 to vector<1x8x10xf32>
    %46 = tpu.concatenate %45, %44 in 0 : vector<1x8x10xf32>, vector<7x8x10xf32> -> vector<8x8x10xf32>
    %47 = arith.addf %42, %46 : vector<8x8x10xf32>
    %48 = vector.extract_strided_slice %47 {offsets = [0, 7, 0], sizes = [8, 1, 10], strides = [1, 1, 1]} : vector<8x8x10xf32> to vector<8x1x10xf32>
    %49 = vector.extract_strided_slice %47 {offsets = [0, 0, 0], sizes = [8, 7, 10], strides = [1, 1, 1]} : vector<8x8x10xf32> to vector<8x7x10xf32>
    %50 = tpu.concatenate %48, %49 in 1 : vector<8x1x10xf32>, vector<8x7x10xf32> -> vector<8x8x10xf32>
    %51 = arith.addf %36, %50 : vector<8x8x10xf32>
    %52 = arith.addf %51, %23 : vector<8x8x10xf32>
    %cst_36 = arith.constant 0.000000e+00 : f32
    %53 = vector.broadcast %cst_36 : f32 to vector<8x8x10xf32>
    %54 = arith.maximumf %52, %53 : vector<8x8x10xf32>
    %cst_37 = arith.constant 0.899999976 : f32
    %55 = vector.broadcast %cst_37 : f32 to vector<8x8x10xf32>
    %56 = arith.subf %54, %55 : vector<8x8x10xf32>
    %57 = math.tanh %56 : vector<8x8x10xf32>
    %c0_38 = arith.constant 0 : index
    %c0_39 = arith.constant 0 : index
    %c0_40 = arith.constant 0 : index
    %c0_41 = arith.constant 0 : index
    %58 = vector.load %arg6[%c0_38, %c0_39, %c0_40, %c0_41] : memref<8x8x8x10xf32, #tpu.memory_space<vmem>>, vector<1x8x8x10xf32>
    %59 = vector.shape_cast %58 : vector<1x8x8x10xf32> to vector<8x8x10xf32>
    %60 = vector.shape_cast %57 : vector<8x8x10xf32> to vector<1x8x8x10xf32>
    tpu.vector_store %arg6[%c0_38, %c0_39, %c0_40, %c0_41], %60 {strides = array<i32>} : memref<8x8x8x10xf32, #tpu.memory_space<vmem>>, vector<1x8x8x10xf32>,
    %cst_42 = arith.constant 0.000000e+00 : f32
    %61 = vector.broadcast %cst_42 : f32 to vector<8x8x10xf32>
    %cst_43 = arith.constant 0.000000e+00 : f32
    %62 = vector.broadcast %cst_43 : f32 to vector<8x8x10xf32>
    %c0_44 = arith.constant 0 : index
    %c0_45 = arith.constant 0 : index
    %c0_46 = arith.constant 0 : index
    %c80 = arith.constant 80 : index
    %63 = vector.load %arg7[%c0_44, %c0_45, %c0_46, %c80] : memref<2x7x8x512xf32, #tpu.memory_space<vmem>>, vector<1x7x8x10xf32>
    %64 = vector.shape_cast %63 : vector<1x7x8x10xf32> to vector<7x8x10xf32>
    %cst_47 = arith.constant 0.000000e+00 : f32
    %65 = vector.broadcast %cst_47 : f32 to vector<1x8x10xf32>
    %66 = tpu.concatenate %64, %65 in 0 : vector<7x8x10xf32>, vector<1x8x10xf32> -> vector<8x8x10xf32>
    %67 = arith.addf %62, %66 : vector<8x8x10xf32>
    %c0_48 = arith.constant 0 : index
    %c0_49 = arith.constant 0 : index
    %c0_50 = arith.constant 0 : index
    %c240 = arith.constant 240 : index
    %68 = vector.load %arg7[%c0_48, %c0_49, %c0_50, %c240] : memref<2x7x8x512xf32, #tpu.memory_space<vmem>>, vector<1x7x8x10xf32>
    %69 = vector.shape_cast %68 : vector<1x7x8x10xf32> to vector<7x8x10xf32>
    %cst_51 = arith.constant 0.000000e+00 : f32
    %70 = vector.broadcast %cst_51 : f32 to vector<1x8x10xf32>
    %71 = tpu.concatenate %70, %69 in 0 : vector<1x8x10xf32>, vector<7x8x10xf32> -> vector<8x8x10xf32>
    %72 = arith.addf %67, %71 : vector<8x8x10xf32>
    %73 = vector.extract_strided_slice %72 {offsets = [0, 1, 0], sizes = [8, 7, 10], strides = [1, 1, 1]} : vector<8x8x10xf32> to vector<8x7x10xf32>
    %74 = vector.extract_strided_slice %72 {offsets = [0, 0, 0], sizes = [8, 1, 10], strides = [1, 1, 1]} : vector<8x8x10xf32> to vector<8x1x10xf32>
    %75 = tpu.concatenate %73, %74 in 1 : vector<8x7x10xf32>, vector<8x1x10xf32> -> vector<8x8x10xf32>
    %76 = arith.addf %61, %75 : vector<8x8x10xf32>
    %cst_52 = arith.constant 0.000000e+00 : f32
    %77 = vector.broadcast %cst_52 : f32 to vector<8x8x10xf32>
    %c0_53 = arith.constant 0 : index
    %c0_54 = arith.constant 0 : index
    %c0_55 = arith.constant 0 : index
    %c112 = arith.constant 112 : index
    %78 = vector.load %arg7[%c0_53, %c0_54, %c0_55, %c112] : memref<2x7x8x512xf32, #tpu.memory_space<vmem>>, vector<1x7x8x10xf32>
    %79 = vector.shape_cast %78 : vector<1x7x8x10xf32> to vector<7x8x10xf32>
    %cst_56 = arith.constant 0.000000e+00 : f32
    %80 = vector.broadcast %cst_56 : f32 to vector<1x8x10xf32>
    %81 = tpu.concatenate %79, %80 in 0 : vector<7x8x10xf32>, vector<1x8x10xf32> -> vector<8x8x10xf32>
    %82 = arith.addf %77, %81 : vector<8x8x10xf32>
    %c0_57 = arith.constant 0 : index
    %c0_58 = arith.constant 0 : index
    %c0_59 = arith.constant 0 : index
    %c272 = arith.constant 272 : index
    %83 = vector.load %arg7[%c0_57, %c0_58, %c0_59, %c272] : memref<2x7x8x512xf32, #tpu.memory_space<vmem>>, vector<1x7x8x10xf32>
    %84 = vector.shape_cast %83 : vector<1x7x8x10xf32> to vector<7x8x10xf32>
    %cst_60 = arith.constant 0.000000e+00 : f32
    %85 = vector.broadcast %cst_60 : f32 to vector<1x8x10xf32>
    %86 = tpu.concatenate %85, %84 in 0 : vector<1x8x10xf32>, vector<7x8x10xf32> -> vector<8x8x10xf32>
    %87 = arith.addf %82, %86 : vector<8x8x10xf32>
    %88 = arith.addf %76, %87 : vector<8x8x10xf32>
    %cst_61 = arith.constant 0.000000e+00 : f32
    %89 = vector.broadcast %cst_61 : f32 to vector<8x8x10xf32>
    %c0_62 = arith.constant 0 : index
    %c0_63 = arith.constant 0 : index
    %c0_64 = arith.constant 0 : index
    %c144 = arith.constant 144 : index
    %90 = vector.load %arg7[%c0_62, %c0_63, %c0_64, %c144] : memref<2x7x8x512xf32, #tpu.memory_space<vmem>>, vector<1x7x8x10xf32>
    %91 = vector.shape_cast %90 : vector<1x7x8x10xf32> to vector<7x8x10xf32>
    %cst_65 = arith.constant 0.000000e+00 : f32
    %92 = vector.broadcast %cst_65 : f32 to vector<1x8x10xf32>
    %93 = tpu.concatenate %91, %92 in 0 : vector<7x8x10xf32>, vector<1x8x10xf32> -> vector<8x8x10xf32>
    %94 = arith.addf %89, %93 : vector<8x8x10xf32>
    %c0_66 = arith.constant 0 : index
    %c0_67 = arith.constant 0 : index
    %c0_68 = arith.constant 0 : index
    %c304 = arith.constant 304 : index
    %95 = vector.load %arg7[%c0_66, %c0_67, %c0_68, %c304] : memref<2x7x8x512xf32, #tpu.memory_space<vmem>>, vector<1x7x8x10xf32>
    %96 = vector.shape_cast %95 : vector<1x7x8x10xf32> to vector<7x8x10xf32>
    %cst_69 = arith.constant 0.000000e+00 : f32
    %97 = vector.broadcast %cst_69 : f32 to vector<1x8x10xf32>
    %98 = tpu.concatenate %97, %96 in 0 : vector<1x8x10xf32>, vector<7x8x10xf32> -> vector<8x8x10xf32>
    %99 = arith.addf %94, %98 : vector<8x8x10xf32>
    %100 = vector.extract_strided_slice %99 {offsets = [0, 7, 0], sizes = [8, 1, 10], strides = [1, 1, 1]} : vector<8x8x10xf32> to vector<8x1x10xf32>
    %101 = vector.extract_strided_slice %99 {offsets = [0, 0, 0], sizes = [8, 7, 10], strides = [1, 1, 1]} : vector<8x8x10xf32> to vector<8x7x10xf32>
    %102 = tpu.concatenate %100, %101 in 1 : vector<8x1x10xf32>, vector<8x7x10xf32> -> vector<8x8x10xf32>
    %103 = arith.addf %88, %102 : vector<8x8x10xf32>
    %104 = arith.addf %103, %23 : vector<8x8x10xf32>
    %cst_70 = arith.constant 0.000000e+00 : f32
    %105 = vector.broadcast %cst_70 : f32 to vector<8x8x10xf32>
    %106 = arith.maximumf %104, %105 : vector<8x8x10xf32>
    %cst_71 = arith.constant 0.899999976 : f32
    %107 = vector.broadcast %cst_71 : f32 to vector<8x8x10xf32>
    %108 = arith.subf %106, %107 : vector<8x8x10xf32>
    %109 = math.tanh %108 : vector<8x8x10xf32>
    %c1 = arith.constant 1 : index
    %c0_72 = arith.constant 0 : index
    %c0_73 = arith.constant 0 : index
    %c0_74 = arith.constant 0 : index
    %110 = vector.load %arg6[%c1, %c0_72, %c0_73, %c0_74] : memref<8x8x8x10xf32, #tpu.memory_space<vmem>>, vector<1x8x8x10xf32>
    %111 = vector.shape_cast %110 : vector<1x8x8x10xf32> to vector<8x8x10xf32>
    %112 = vector.shape_cast %109 : vector<8x8x10xf32> to vector<1x8x8x10xf32>
    tpu.vector_store %arg6[%c1, %c0_72, %c0_73, %c0_74], %112 {strides = array<i32>} : memref<8x8x8x10xf32, #tpu.memory_space<vmem>>, vector<1x8x8x10xf32>,
    %cst_75 = arith.constant 0.000000e+00 : f32
    %113 = vector.broadcast %cst_75 : f32 to vector<8x8x10xf32>
    %cst_76 = arith.constant 0.000000e+00 : f32
    %114 = vector.broadcast %cst_76 : f32 to vector<8x8x10xf32>
    %c0_77 = arith.constant 0 : index
    %c1_78 = arith.constant 1 : index
    %c0_79 = arith.constant 0 : index
    %c16 = arith.constant 16 : index
    %115 = vector.load %arg7[%c0_77, %c1_78, %c0_79, %c16] : memref<2x7x8x512xf32, #tpu.memory_space<vmem>>, vector<1x6x8x10xf32>
    %116 = vector.shape_cast %115 : vector<1x6x8x10xf32> to vector<6x8x10xf32>
    %cst_80 = arith.constant 0.000000e+00 : f32
    %117 = vector.broadcast %cst_80 : f32 to vector<2x8x10xf32>
    %118 = tpu.concatenate %116, %117 in 0 : vector<6x8x10xf32>, vector<2x8x10xf32> -> vector<8x8x10xf32>
    %119 = arith.addf %114, %118 : vector<8x8x10xf32>
    %c0_81 = arith.constant 0 : index
    %c0_82 = arith.constant 0 : index
    %c0_83 = arith.constant 0 : index
    %c176 = arith.constant 176 : index
    %120 = vector.load %arg7[%c0_81, %c0_82, %c0_83, %c176] : memref<2x7x8x512xf32, #tpu.memory_space<vmem>>, vector<1x7x8x10xf32>
    %121 = vector.shape_cast %120 : vector<1x7x8x10xf32> to vector<7x8x10xf32>
    %cst_84 = arith.constant 0.000000e+00 : f32
    %122 = vector.broadcast %cst_84 : f32 to vector<1x8x10xf32>
    %123 = tpu.concatenate %121, %122 in 0 : vector<7x8x10xf32>, vector<1x8x10xf32> -> vector<8x8x10xf32>
    %124 = arith.addf %119, %123 : vector<8x8x10xf32>
    %c0_85 = arith.constant 0 : index
    %c0_86 = arith.constant 0 : index
    %c0_87 = arith.constant 0 : index
    %c336 = arith.constant 336 : index
    %125 = vector.load %arg7[%c0_85, %c0_86, %c0_87, %c336] : memref<2x7x8x512xf32, #tpu.memory_space<vmem>>, vector<1x7x8x10xf32>
    %126 = vector.shape_cast %125 : vector<1x7x8x10xf32> to vector<7x8x10xf32>
    %cst_88 = arith.constant 0.000000e+00 : f32
    %127 = vector.broadcast %cst_88 : f32 to vector<1x8x10xf32>
    %128 = tpu.concatenate %127, %126 in 0 : vector<1x8x10xf32>, vector<7x8x10xf32> -> vector<8x8x10xf32>
    %129 = arith.addf %124, %128 : vector<8x8x10xf32>
    %130 = arith.addf %113, %129 : vector<8x8x10xf32>
    %cst_89 = arith.constant 0.000000e+00 : f32
    %131 = vector.broadcast %cst_89 : f32 to vector<8x8x10xf32>
    %c0_90 = arith.constant 0 : index
    %c1_91 = arith.constant 1 : index
    %c0_92 = arith.constant 0 : index
    %c48 = arith.constant 48 : index
    %132 = vector.load %arg7[%c0_90, %c1_91, %c0_92, %c48] : memref<2x7x8x512xf32, #tpu.memory_space<vmem>>, vector<1x6x8x10xf32>
    %133 = vector.shape_cast %132 : vector<1x6x8x10xf32> to vector<6x8x10xf32>
    %cst_93 = arith.constant 0.000000e+00 : f32
    %134 = vector.broadcast %cst_93 : f32 to vector<2x8x10xf32>
    %135 = tpu.concatenate %133, %134 in 0 : vector<6x8x10xf32>, vector<2x8x10xf32> -> vector<8x8x10xf32>
    %136 = arith.addf %131, %135 : vector<8x8x10xf32>
    %c0_94 = arith.constant 0 : index
    %c0_95 = arith.constant 0 : index
    %c0_96 = arith.constant 0 : index
    %c208 = arith.constant 208 : index
    %137 = vector.load %arg7[%c0_94, %c0_95, %c0_96, %c208] : memref<2x7x8x512xf32, #tpu.memory_space<vmem>>, vector<1x7x8x10xf32>
    %138 = vector.shape_cast %137 : vector<1x7x8x10xf32> to vector<7x8x10xf32>
    %cst_97 = arith.constant 0.000000e+00 : f32
    %139 = vector.broadcast %cst_97 : f32 to vector<1x8x10xf32>
    %140 = tpu.concatenate %138, %139 in 0 : vector<7x8x10xf32>, vector<1x8x10xf32> -> vector<8x8x10xf32>
    %141 = arith.addf %136, %140 : vector<8x8x10xf32>
    %c0_98 = arith.constant 0 : index
    %c0_99 = arith.constant 0 : index
    %c0_100 = arith.constant 0 : index
    %c368 = arith.constant 368 : index
    %142 = vector.load %arg7[%c0_98, %c0_99, %c0_100, %c368] : memref<2x7x8x512xf32, #tpu.memory_space<vmem>>, vector<1x7x8x10xf32>
    %143 = vector.shape_cast %142 : vector<1x7x8x10xf32> to vector<7x8x10xf32>
    %cst_101 = arith.constant 0.000000e+00 : f32
    %144 = vector.broadcast %cst_101 : f32 to vector<1x8x10xf32>
    %145 = tpu.concatenate %144, %143 in 0 : vector<1x8x10xf32>, vector<7x8x10xf32> -> vector<8x8x10xf32>
    %146 = arith.addf %141, %145 : vector<8x8x10xf32>
    %147 = vector.extract_strided_slice %146 {offsets = [0, 7, 0], sizes = [8, 1, 10], strides = [1, 1, 1]} : vector<8x8x10xf32> to vector<8x1x10xf32>
    %148 = vector.extract_strided_slice %146 {offsets = [0, 0, 0], sizes = [8, 7, 10], strides = [1, 1, 1]} : vector<8x8x10xf32> to vector<8x7x10xf32>
    %149 = tpu.concatenate %147, %148 in 1 : vector<8x1x10xf32>, vector<8x7x10xf32> -> vector<8x8x10xf32>
    %150 = arith.addf %130, %149 : vector<8x8x10xf32>
    %151 = arith.addf %150, %23 : vector<8x8x10xf32>
    %cst_102 = arith.constant 0.000000e+00 : f32
    %152 = vector.broadcast %cst_102 : f32 to vector<8x8x10xf32>
    %153 = arith.maximumf %151, %152 : vector<8x8x10xf32>
    %cst_103 = arith.constant 0.899999976 : f32
    %154 = vector.broadcast %cst_103 : f32 to vector<8x8x10xf32>
    %155 = arith.subf %153, %154 : vector<8x8x10xf32>
    %156 = math.tanh %155 : vector<8x8x10xf32>
    %c2 = arith.constant 2 : index
    %c0_104 = arith.constant 0 : index
    %c0_105 = arith.constant 0 : index
    %c0_106 = arith.constant 0 : index
    %157 = vector.load %arg6[%c2, %c0_104, %c0_105, %c0_106] : memref<8x8x8x10xf32, #tpu.memory_space<vmem>>, vector<1x8x8x10xf32>
    %158 = vector.shape_cast %157 : vector<1x8x8x10xf32> to vector<8x8x10xf32>
    %159 = vector.shape_cast %156 : vector<8x8x10xf32> to vector<1x8x8x10xf32>
    tpu.vector_store %arg6[%c2, %c0_104, %c0_105, %c0_106], %159 {strides = array<i32>} : memref<8x8x8x10xf32, #tpu.memory_space<vmem>>, vector<1x8x8x10xf32>,
    %cst_107 = arith.constant 0.000000e+00 : f32
    %160 = vector.broadcast %cst_107 : f32 to vector<8x8x10xf32>
    %cst_108 = arith.constant 0.000000e+00 : f32
    %161 = vector.broadcast %cst_108 : f32 to vector<8x8x10xf32>
    %c0_109 = arith.constant 0 : index
    %c1_110 = arith.constant 1 : index
    %c0_111 = arith.constant 0 : index
    %c0_112 = arith.constant 0 : index
    %162 = vector.load %arg7[%c0_109, %c1_110, %c0_111, %c0_112] : memref<2x7x8x512xf32, #tpu.memory_space<vmem>>, vector<1x6x8x10xf32>
    %163 = vector.shape_cast %162 : vector<1x6x8x10xf32> to vector<6x8x10xf32>
    %cst_113 = arith.constant 0.000000e+00 : f32
    %164 = vector.broadcast %cst_113 : f32 to vector<2x8x10xf32>
    %165 = tpu.concatenate %163, %164 in 0 : vector<6x8x10xf32>, vector<2x8x10xf32> -> vector<8x8x10xf32>
    %166 = arith.addf %161, %165 : vector<8x8x10xf32>
    %c0_114 = arith.constant 0 : index
    %c0_115 = arith.constant 0 : index
    %c0_116 = arith.constant 0 : index
    %c160 = arith.constant 160 : index
    %167 = vector.load %arg7[%c0_114, %c0_115, %c0_116, %c160] : memref<2x7x8x512xf32, #tpu.memory_space<vmem>>, vector<1x7x8x10xf32>
    %168 = vector.shape_cast %167 : vector<1x7x8x10xf32> to vector<7x8x10xf32>
    %cst_117 = arith.constant 0.000000e+00 : f32
    %169 = vector.broadcast %cst_117 : f32 to vector<1x8x10xf32>
    %170 = tpu.concatenate %168, %169 in 0 : vector<7x8x10xf32>, vector<1x8x10xf32> -> vector<8x8x10xf32>
    %171 = arith.addf %166, %170 : vector<8x8x10xf32>
    %c0_118 = arith.constant 0 : index
    %c0_119 = arith.constant 0 : index
    %c0_120 = arith.constant 0 : index
    %c320 = arith.constant 320 : index
    %172 = vector.load %arg7[%c0_118, %c0_119, %c0_120, %c320] : memref<2x7x8x512xf32, #tpu.memory_space<vmem>>, vector<1x7x8x10xf32>
    %173 = vector.shape_cast %172 : vector<1x7x8x10xf32> to vector<7x8x10xf32>
    %cst_121 = arith.constant 0.000000e+00 : f32
    %174 = vector.broadcast %cst_121 : f32 to vector<1x8x10xf32>
    %175 = tpu.concatenate %174, %173 in 0 : vector<1x8x10xf32>, vector<7x8x10xf32> -> vector<8x8x10xf32>
    %176 = arith.addf %171, %175 : vector<8x8x10xf32>
    %177 = vector.extract_strided_slice %176 {offsets = [0, 1, 0], sizes = [8, 7, 10], strides = [1, 1, 1]} : vector<8x8x10xf32> to vector<8x7x10xf32>
    %178 = vector.extract_strided_slice %176 {offsets = [0, 0, 0], sizes = [8, 1, 10], strides = [1, 1, 1]} : vector<8x8x10xf32> to vector<8x1x10xf32>
    %179 = tpu.concatenate %177, %178 in 1 : vector<8x7x10xf32>, vector<8x1x10xf32> -> vector<8x8x10xf32>
    %180 = arith.addf %160, %179 : vector<8x8x10xf32>
    %cst_122 = arith.constant 0.000000e+00 : f32
    %181 = vector.broadcast %cst_122 : f32 to vector<8x8x10xf32>
    %c0_123 = arith.constant 0 : index
    %c1_124 = arith.constant 1 : index
    %c0_125 = arith.constant 0 : index
    %c32 = arith.constant 32 : index
    %182 = vector.load %arg7[%c0_123, %c1_124, %c0_125, %c32] : memref<2x7x8x512xf32, #tpu.memory_space<vmem>>, vector<1x6x8x10xf32>
    %183 = vector.shape_cast %182 : vector<1x6x8x10xf32> to vector<6x8x10xf32>
    %cst_126 = arith.constant 0.000000e+00 : f32
    %184 = vector.broadcast %cst_126 : f32 to vector<2x8x10xf32>
    %185 = tpu.concatenate %183, %184 in 0 : vector<6x8x10xf32>, vector<2x8x10xf32> -> vector<8x8x10xf32>
    %186 = arith.addf %181, %185 : vector<8x8x10xf32>
    %c0_127 = arith.constant 0 : index
    %c0_128 = arith.constant 0 : index
    %c0_129 = arith.constant 0 : index
    %c192 = arith.constant 192 : index
    %187 = vector.load %arg7[%c0_127, %c0_128, %c0_129, %c192] : memref<2x7x8x512xf32, #tpu.memory_space<vmem>>, vector<1x7x8x10xf32>
    %188 = vector.shape_cast %187 : vector<1x7x8x10xf32> to vector<7x8x10xf32>
    %cst_130 = arith.constant 0.000000e+00 : f32
    %189 = vector.broadcast %cst_130 : f32 to vector<1x8x10xf32>
    %190 = tpu.concatenate %188, %189 in 0 : vector<7x8x10xf32>, vector<1x8x10xf32> -> vector<8x8x10xf32>
    %191 = arith.addf %186, %190 : vector<8x8x10xf32>
    %c0_131 = arith.constant 0 : index
    %c0_132 = arith.constant 0 : index
    %c0_133 = arith.constant 0 : index
    %c352 = arith.constant 352 : index
    %192 = vector.load %arg7[%c0_131, %c0_132, %c0_133, %c352] : memref<2x7x8x512xf32, #tpu.memory_space<vmem>>, vector<1x7x8x10xf32>
    %193 = vector.shape_cast %192 : vector<1x7x8x10xf32> to vector<7x8x10xf32>
    %cst_134 = arith.constant 0.000000e+00 : f32
    %194 = vector.broadcast %cst_134 : f32 to vector<1x8x10xf32>
    %195 = tpu.concatenate %194, %193 in 0 : vector<1x8x10xf32>, vector<7x8x10xf32> -> vector<8x8x10xf32>
    %196 = arith.addf %191, %195 : vector<8x8x10xf32>
    %197 = arith.addf %180, %196 : vector<8x8x10xf32>
    %cst_135 = arith.constant 0.000000e+00 : f32
    %198 = vector.broadcast %cst_135 : f32 to vector<8x8x10xf32>
    %c0_136 = arith.constant 0 : index
    %c1_137 = arith.constant 1 : index
    %c0_138 = arith.constant 0 : index
    %c64 = arith.constant 64 : index
    %199 = vector.load %arg7[%c0_136, %c1_137, %c0_138, %c64] : memref<2x7x8x512xf32, #tpu.memory_space<vmem>>, vector<1x6x8x10xf32>
    %200 = vector.shape_cast %199 : vector<1x6x8x10xf32> to vector<6x8x10xf32>
    %cst_139 = arith.constant 0.000000e+00 : f32
    %201 = vector.broadcast %cst_139 : f32 to vector<2x8x10xf32>
    %202 = tpu.concatenate %200, %201 in 0 : vector<6x8x10xf32>, vector<2x8x10xf32> -> vector<8x8x10xf32>
    %203 = arith.addf %198, %202 : vector<8x8x10xf32>
    %c0_140 = arith.constant 0 : index
    %c0_141 = arith.constant 0 : index
    %c0_142 = arith.constant 0 : index
    %c224 = arith.constant 224 : index
    %204 = vector.load %arg7[%c0_140, %c0_141, %c0_142, %c224] : memref<2x7x8x512xf32, #tpu.memory_space<vmem>>, vector<1x7x8x10xf32>
    %205 = vector.shape_cast %204 : vector<1x7x8x10xf32> to vector<7x8x10xf32>
    %cst_143 = arith.constant 0.000000e+00 : f32
    %206 = vector.broadcast %cst_143 : f32 to vector<1x8x10xf32>
    %207 = tpu.concatenate %205, %206 in 0 : vector<7x8x10xf32>, vector<1x8x10xf32> -> vector<8x8x10xf32>
    %208 = arith.addf %203, %207 : vector<8x8x10xf32>
    %c0_144 = arith.constant 0 : index
    %c0_145 = arith.constant 0 : index
    %c0_146 = arith.constant 0 : index
    %c384 = arith.constant 384 : index
    %209 = vector.load %arg7[%c0_144, %c0_145, %c0_146, %c384] : memref<2x7x8x512xf32, #tpu.memory_space<vmem>>, vector<1x7x8x10xf32>
    %210 = vector.shape_cast %209 : vector<1x7x8x10xf32> to vector<7x8x10xf32>
    %cst_147 = arith.constant 0.000000e+00 : f32
    %211 = vector.broadcast %cst_147 : f32 to vector<1x8x10xf32>
    %212 = tpu.concatenate %211, %210 in 0 : vector<1x8x10xf32>, vector<7x8x10xf32> -> vector<8x8x10xf32>
    %213 = arith.addf %208, %212 : vector<8x8x10xf32>
    %214 = vector.extract_strided_slice %213 {offsets = [0, 7, 0], sizes = [8, 1, 10], strides = [1, 1, 1]} : vector<8x8x10xf32> to vector<8x1x10xf32>
    %215 = vector.extract_strided_slice %213 {offsets = [0, 0, 0], sizes = [8, 7, 10], strides = [1, 1, 1]} : vector<8x8x10xf32> to vector<8x7x10xf32>
    %216 = tpu.concatenate %214, %215 in 1 : vector<8x1x10xf32>, vector<8x7x10xf32> -> vector<8x8x10xf32>
    %217 = arith.addf %197, %216 : vector<8x8x10xf32>
    %218 = arith.addf %217, %23 : vector<8x8x10xf32>
    %cst_148 = arith.constant 0.000000e+00 : f32
    %219 = vector.broadcast %cst_148 : f32 to vector<8x8x10xf32>
    %220 = arith.maximumf %218, %219 : vector<8x8x10xf32>
    %cst_149 = arith.constant 0.899999976 : f32
    %221 = vector.broadcast %cst_149 : f32 to vector<8x8x10xf32>
    %222 = arith.subf %220, %221 : vector<8x8x10xf32>
    %223 = math.tanh %222 : vector<8x8x10xf32>
    %c3 = arith.constant 3 : index
    %c0_150 = arith.constant 0 : index
    %c0_151 = arith.constant 0 : index
    %c0_152 = arith.constant 0 : index
    %224 = vector.load %arg6[%c3, %c0_150, %c0_151, %c0_152] : memref<8x8x8x10xf32, #tpu.memory_space<vmem>>, vector<1x8x8x10xf32>
    %225 = vector.shape_cast %224 : vector<1x8x8x10xf32> to vector<8x8x10xf32>
    %226 = vector.shape_cast %223 : vector<8x8x10xf32> to vector<1x8x8x10xf32>
    tpu.vector_store %arg6[%c3, %c0_150, %c0_151, %c0_152], %226 {strides = array<i32>} : memref<8x8x8x10xf32, #tpu.memory_space<vmem>>, vector<1x8x8x10xf32>,
    %cst_153 = arith.constant 0.000000e+00 : f32
    %227 = vector.broadcast %cst_153 : f32 to vector<8x8x10xf32>
    %cst_154 = arith.constant 0.000000e+00 : f32
    %228 = vector.broadcast %cst_154 : f32 to vector<8x8x10xf32>
    %c1_155 = arith.constant 1 : index
    %c0_156 = arith.constant 0 : index
    %c0_157 = arith.constant 0 : index
    %c96_158 = arith.constant 96 : index
    %229 = vector.load %arg7[%c1_155, %c0_156, %c0_157, %c96_158] : memref<2x7x8x512xf32, #tpu.memory_space<vmem>>, vector<1x7x8x10xf32>
    %230 = vector.shape_cast %229 : vector<1x7x8x10xf32> to vector<7x8x10xf32>
    %cst_159 = arith.constant 0.000000e+00 : f32
    %231 = vector.broadcast %cst_159 : f32 to vector<1x8x10xf32>
    %232 = tpu.concatenate %230, %231 in 0 : vector<7x8x10xf32>, vector<1x8x10xf32> -> vector<8x8x10xf32>
    %233 = arith.addf %228, %232 : vector<8x8x10xf32>
    %c1_160 = arith.constant 1 : index
    %c0_161 = arith.constant 0 : index
    %c0_162 = arith.constant 0 : index
    %c256_163 = arith.constant 256 : index
    %234 = vector.load %arg7[%c1_160, %c0_161, %c0_162, %c256_163] : memref<2x7x8x512xf32, #tpu.memory_space<vmem>>, vector<1x7x8x10xf32>
    %235 = vector.shape_cast %234 : vector<1x7x8x10xf32> to vector<7x8x10xf32>
    %cst_164 = arith.constant 0.000000e+00 : f32
    %236 = vector.broadcast %cst_164 : f32 to vector<1x8x10xf32>
    %237 = tpu.concatenate %236, %235 in 0 : vector<1x8x10xf32>, vector<7x8x10xf32> -> vector<8x8x10xf32>
    %238 = arith.addf %233, %237 : vector<8x8x10xf32>
    %239 = arith.addf %227, %238 : vector<8x8x10xf32>
    %cst_165 = arith.constant 0.000000e+00 : f32
    %240 = vector.broadcast %cst_165 : f32 to vector<8x8x10xf32>
    %c1_166 = arith.constant 1 : index
    %c0_167 = arith.constant 0 : index
    %c0_168 = arith.constant 0 : index
    %c128_169 = arith.constant 128 : index
    %241 = vector.load %arg7[%c1_166, %c0_167, %c0_168, %c128_169] : memref<2x7x8x512xf32, #tpu.memory_space<vmem>>, vector<1x7x8x10xf32>
    %242 = vector.shape_cast %241 : vector<1x7x8x10xf32> to vector<7x8x10xf32>
    %cst_170 = arith.constant 0.000000e+00 : f32
    %243 = vector.broadcast %cst_170 : f32 to vector<1x8x10xf32>
    %244 = tpu.concatenate %242, %243 in 0 : vector<7x8x10xf32>, vector<1x8x10xf32> -> vector<8x8x10xf32>
    %245 = arith.addf %240, %244 : vector<8x8x10xf32>
    %c1_171 = arith.constant 1 : index
    %c0_172 = arith.constant 0 : index
    %c0_173 = arith.constant 0 : index
    %c288_174 = arith.constant 288 : index
    %246 = vector.load %arg7[%c1_171, %c0_172, %c0_173, %c288_174] : memref<2x7x8x512xf32, #tpu.memory_space<vmem>>, vector<1x7x8x10xf32>
    %247 = vector.shape_cast %246 : vector<1x7x8x10xf32> to vector<7x8x10xf32>
    %cst_175 = arith.constant 0.000000e+00 : f32
    %248 = vector.broadcast %cst_175 : f32 to vector<1x8x10xf32>
    %249 = tpu.concatenate %248, %247 in 0 : vector<1x8x10xf32>, vector<7x8x10xf32> -> vector<8x8x10xf32>
    %250 = arith.addf %245, %249 : vector<8x8x10xf32>
    %251 = vector.extract_strided_slice %250 {offsets = [0, 7, 0], sizes = [8, 1, 10], strides = [1, 1, 1]} : vector<8x8x10xf32> to vector<8x1x10xf32>
    %252 = vector.extract_strided_slice %250 {offsets = [0, 0, 0], sizes = [8, 7, 10], strides = [1, 1, 1]} : vector<8x8x10xf32> to vector<8x7x10xf32>
    %253 = tpu.concatenate %251, %252 in 1 : vector<8x1x10xf32>, vector<8x7x10xf32> -> vector<8x8x10xf32>
    %254 = arith.addf %239, %253 : vector<8x8x10xf32>
    %255 = arith.addf %254, %23 : vector<8x8x10xf32>
    %cst_176 = arith.constant 0.000000e+00 : f32
    %256 = vector.broadcast %cst_176 : f32 to vector<8x8x10xf32>
    %257 = arith.maximumf %255, %256 : vector<8x8x10xf32>
    %cst_177 = arith.constant 0.899999976 : f32
    %258 = vector.broadcast %cst_177 : f32 to vector<8x8x10xf32>
    %259 = arith.subf %257, %258 : vector<8x8x10xf32>
    %260 = math.tanh %259 : vector<8x8x10xf32>
    %c4 = arith.constant 4 : index
    %c0_178 = arith.constant 0 : index
    %c0_179 = arith.constant 0 : index
    %c0_180 = arith.constant 0 : index
    %261 = vector.load %arg6[%c4, %c0_178, %c0_179, %c0_180] : memref<8x8x8x10xf32, #tpu.memory_space<vmem>>, vector<1x8x8x10xf32>
    %262 = vector.shape_cast %261 : vector<1x8x8x10xf32> to vector<8x8x10xf32>
    %263 = vector.shape_cast %260 : vector<8x8x10xf32> to vector<1x8x8x10xf32>
    tpu.vector_store %arg6[%c4, %c0_178, %c0_179, %c0_180], %263 {strides = array<i32>} : memref<8x8x8x10xf32, #tpu.memory_space<vmem>>, vector<1x8x8x10xf32>,
    %cst_181 = arith.constant 0.000000e+00 : f32
    %264 = vector.broadcast %cst_181 : f32 to vector<8x8x10xf32>
    %cst_182 = arith.constant 0.000000e+00 : f32
    %265 = vector.broadcast %cst_182 : f32 to vector<8x8x10xf32>
    %c1_183 = arith.constant 1 : index
    %c0_184 = arith.constant 0 : index
    %c0_185 = arith.constant 0 : index
    %c80_186 = arith.constant 80 : index
    %266 = vector.load %arg7[%c1_183, %c0_184, %c0_185, %c80_186] : memref<2x7x8x512xf32, #tpu.memory_space<vmem>>, vector<1x7x8x10xf32>
    %267 = vector.shape_cast %266 : vector<1x7x8x10xf32> to vector<7x8x10xf32>
    %cst_187 = arith.constant 0.000000e+00 : f32
    %268 = vector.broadcast %cst_187 : f32 to vector<1x8x10xf32>
    %269 = tpu.concatenate %267, %268 in 0 : vector<7x8x10xf32>, vector<1x8x10xf32> -> vector<8x8x10xf32>
    %270 = arith.addf %265, %269 : vector<8x8x10xf32>
    %c1_188 = arith.constant 1 : index
    %c0_189 = arith.constant 0 : index
    %c0_190 = arith.constant 0 : index
    %c240_191 = arith.constant 240 : index
    %271 = vector.load %arg7[%c1_188, %c0_189, %c0_190, %c240_191] : memref<2x7x8x512xf32, #tpu.memory_space<vmem>>, vector<1x7x8x10xf32>
    %272 = vector.shape_cast %271 : vector<1x7x8x10xf32> to vector<7x8x10xf32>
    %cst_192 = arith.constant 0.000000e+00 : f32
    %273 = vector.broadcast %cst_192 : f32 to vector<1x8x10xf32>
    %274 = tpu.concatenate %273, %272 in 0 : vector<1x8x10xf32>, vector<7x8x10xf32> -> vector<8x8x10xf32>
    %275 = arith.addf %270, %274 : vector<8x8x10xf32>
    %276 = vector.extract_strided_slice %275 {offsets = [0, 1, 0], sizes = [8, 7, 10], strides = [1, 1, 1]} : vector<8x8x10xf32> to vector<8x7x10xf32>
    %277 = vector.extract_strided_slice %275 {offsets = [0, 0, 0], sizes = [8, 1, 10], strides = [1, 1, 1]} : vector<8x8x10xf32> to vector<8x1x10xf32>
    %278 = tpu.concatenate %276, %277 in 1 : vector<8x7x10xf32>, vector<8x1x10xf32> -> vector<8x8x10xf32>
    %279 = arith.addf %264, %278 : vector<8x8x10xf32>
    %cst_193 = arith.constant 0.000000e+00 : f32
    %280 = vector.broadcast %cst_193 : f32 to vector<8x8x10xf32>
    %c1_194 = arith.constant 1 : index
    %c0_195 = arith.constant 0 : index
    %c0_196 = arith.constant 0 : index
    %c112_197 = arith.constant 112 : index
    %281 = vector.load %arg7[%c1_194, %c0_195, %c0_196, %c112_197] : memref<2x7x8x512xf32, #tpu.memory_space<vmem>>, vector<1x7x8x10xf32>
    %282 = vector.shape_cast %281 : vector<1x7x8x10xf32> to vector<7x8x10xf32>
    %cst_198 = arith.constant 0.000000e+00 : f32
    %283 = vector.broadcast %cst_198 : f32 to vector<1x8x10xf32>
    %284 = tpu.concatenate %282, %283 in 0 : vector<7x8x10xf32>, vector<1x8x10xf32> -> vector<8x8x10xf32>
    %285 = arith.addf %280, %284 : vector<8x8x10xf32>
    %c1_199 = arith.constant 1 : index
    %c0_200 = arith.constant 0 : index
    %c0_201 = arith.constant 0 : index
    %c272_202 = arith.constant 272 : index
    %286 = vector.load %arg7[%c1_199, %c0_200, %c0_201, %c272_202] : memref<2x7x8x512xf32, #tpu.memory_space<vmem>>, vector<1x7x8x10xf32>
    %287 = vector.shape_cast %286 : vector<1x7x8x10xf32> to vector<7x8x10xf32>
    %cst_203 = arith.constant 0.000000e+00 : f32
    %288 = vector.broadcast %cst_203 : f32 to vector<1x8x10xf32>
    %289 = tpu.concatenate %288, %287 in 0 : vector<1x8x10xf32>, vector<7x8x10xf32> -> vector<8x8x10xf32>
    %290 = arith.addf %285, %289 : vector<8x8x10xf32>
    %291 = arith.addf %279, %290 : vector<8x8x10xf32>
    %cst_204 = arith.constant 0.000000e+00 : f32
    %292 = vector.broadcast %cst_204 : f32 to vector<8x8x10xf32>
    %c1_205 = arith.constant 1 : index
    %c0_206 = arith.constant 0 : index
    %c0_207 = arith.constant 0 : index
    %c144_208 = arith.constant 144 : index
    %293 = vector.load %arg7[%c1_205, %c0_206, %c0_207, %c144_208] : memref<2x7x8x512xf32, #tpu.memory_space<vmem>>, vector<1x7x8x10xf32>
    %294 = vector.shape_cast %293 : vector<1x7x8x10xf32> to vector<7x8x10xf32>
    %cst_209 = arith.constant 0.000000e+00 : f32
    %295 = vector.broadcast %cst_209 : f32 to vector<1x8x10xf32>
    %296 = tpu.concatenate %294, %295 in 0 : vector<7x8x10xf32>, vector<1x8x10xf32> -> vector<8x8x10xf32>
    %297 = arith.addf %292, %296 : vector<8x8x10xf32>
    %c1_210 = arith.constant 1 : index
    %c0_211 = arith.constant 0 : index
    %c0_212 = arith.constant 0 : index
    %c304_213 = arith.constant 304 : index
    %298 = vector.load %arg7[%c1_210, %c0_211, %c0_212, %c304_213] : memref<2x7x8x512xf32, #tpu.memory_space<vmem>>, vector<1x7x8x10xf32>
    %299 = vector.shape_cast %298 : vector<1x7x8x10xf32> to vector<7x8x10xf32>
    %cst_214 = arith.constant 0.000000e+00 : f32
    %300 = vector.broadcast %cst_214 : f32 to vector<1x8x10xf32>
    %301 = tpu.concatenate %300, %299 in 0 : vector<1x8x10xf32>, vector<7x8x10xf32> -> vector<8x8x10xf32>
    %302 = arith.addf %297, %301 : vector<8x8x10xf32>
    %303 = vector.extract_strided_slice %302 {offsets = [0, 7, 0], sizes = [8, 1, 10], strides = [1, 1, 1]} : vector<8x8x10xf32> to vector<8x1x10xf32>
    %304 = vector.extract_strided_slice %302 {offsets = [0, 0, 0], sizes = [8, 7, 10], strides = [1, 1, 1]} : vector<8x8x10xf32> to vector<8x7x10xf32>
    %305 = tpu.concatenate %303, %304 in 1 : vector<8x1x10xf32>, vector<8x7x10xf32> -> vector<8x8x10xf32>
    %306 = arith.addf %291, %305 : vector<8x8x10xf32>
    %307 = arith.addf %306, %23 : vector<8x8x10xf32>
    %cst_215 = arith.constant 0.000000e+00 : f32
    %308 = vector.broadcast %cst_215 : f32 to vector<8x8x10xf32>
    %309 = arith.maximumf %307, %308 : vector<8x8x10xf32>
    %cst_216 = arith.constant 0.899999976 : f32
    %310 = vector.broadcast %cst_216 : f32 to vector<8x8x10xf32>
    %311 = arith.subf %309, %310 : vector<8x8x10xf32>
    %312 = math.tanh %311 : vector<8x8x10xf32>
    %c5 = arith.constant 5 : index
    %c0_217 = arith.constant 0 : index
    %c0_218 = arith.constant 0 : index
    %c0_219 = arith.constant 0 : index
    %313 = vector.load %arg6[%c5, %c0_217, %c0_218, %c0_219] : memref<8x8x8x10xf32, #tpu.memory_space<vmem>>, vector<1x8x8x10xf32>
    %314 = vector.shape_cast %313 : vector<1x8x8x10xf32> to vector<8x8x10xf32>
    %315 = vector.shape_cast %312 : vector<8x8x10xf32> to vector<1x8x8x10xf32>
    tpu.vector_store %arg6[%c5, %c0_217, %c0_218, %c0_219], %315 {strides = array<i32>} : memref<8x8x8x10xf32, #tpu.memory_space<vmem>>, vector<1x8x8x10xf32>,
    %cst_220 = arith.constant 0.000000e+00 : f32
    %316 = vector.broadcast %cst_220 : f32 to vector<8x8x10xf32>
    %cst_221 = arith.constant 0.000000e+00 : f32
    %317 = vector.broadcast %cst_221 : f32 to vector<8x8x10xf32>
    %c1_222 = arith.constant 1 : index
    %c1_223 = arith.constant 1 : index
    %c0_224 = arith.constant 0 : index
    %c16_225 = arith.constant 16 : index
    %318 = vector.load %arg7[%c1_222, %c1_223, %c0_224, %c16_225] : memref<2x7x8x512xf32, #tpu.memory_space<vmem>>, vector<1x6x8x10xf32>
    %319 = vector.shape_cast %318 : vector<1x6x8x10xf32> to vector<6x8x10xf32>
    %cst_226 = arith.constant 0.000000e+00 : f32
    %320 = vector.broadcast %cst_226 : f32 to vector<2x8x10xf32>
    %321 = tpu.concatenate %319, %320 in 0 : vector<6x8x10xf32>, vector<2x8x10xf32> -> vector<8x8x10xf32>
    %322 = arith.addf %317, %321 : vector<8x8x10xf32>
    %c1_227 = arith.constant 1 : index
    %c0_228 = arith.constant 0 : index
    %c0_229 = arith.constant 0 : index
    %c176_230 = arith.constant 176 : index
    %323 = vector.load %arg7[%c1_227, %c0_228, %c0_229, %c176_230] : memref<2x7x8x512xf32, #tpu.memory_space<vmem>>, vector<1x7x8x10xf32>
    %324 = vector.shape_cast %323 : vector<1x7x8x10xf32> to vector<7x8x10xf32>
    %cst_231 = arith.constant 0.000000e+00 : f32
    %325 = vector.broadcast %cst_231 : f32 to vector<1x8x10xf32>
    %326 = tpu.concatenate %324, %325 in 0 : vector<7x8x10xf32>, vector<1x8x10xf32> -> vector<8x8x10xf32>
    %327 = arith.addf %322, %326 : vector<8x8x10xf32>
    %c1_232 = arith.constant 1 : index
    %c0_233 = arith.constant 0 : index
    %c0_234 = arith.constant 0 : index
    %c336_235 = arith.constant 336 : index
    %328 = vector.load %arg7[%c1_232, %c0_233, %c0_234, %c336_235] : memref<2x7x8x512xf32, #tpu.memory_space<vmem>>, vector<1x7x8x10xf32>
    %329 = vector.shape_cast %328 : vector<1x7x8x10xf32> to vector<7x8x10xf32>
    %cst_236 = arith.constant 0.000000e+00 : f32
    %330 = vector.broadcast %cst_236 : f32 to vector<1x8x10xf32>
    %331 = tpu.concatenate %330, %329 in 0 : vector<1x8x10xf32>, vector<7x8x10xf32> -> vector<8x8x10xf32>
    %332 = arith.addf %327, %331 : vector<8x8x10xf32>
    %333 = arith.addf %316, %332 : vector<8x8x10xf32>
    %cst_237 = arith.constant 0.000000e+00 : f32
    %334 = vector.broadcast %cst_237 : f32 to vector<8x8x10xf32>
    %c1_238 = arith.constant 1 : index
    %c1_239 = arith.constant 1 : index
    %c0_240 = arith.constant 0 : index
    %c48_241 = arith.constant 48 : index
    %335 = vector.load %arg7[%c1_238, %c1_239, %c0_240, %c48_241] : memref<2x7x8x512xf32, #tpu.memory_space<vmem>>, vector<1x6x8x10xf32>
    %336 = vector.shape_cast %335 : vector<1x6x8x10xf32> to vector<6x8x10xf32>
    %cst_242 = arith.constant 0.000000e+00 : f32
    %337 = vector.broadcast %cst_242 : f32 to vector<2x8x10xf32>
    %338 = tpu.concatenate %336, %337 in 0 : vector<6x8x10xf32>, vector<2x8x10xf32> -> vector<8x8x10xf32>
    %339 = arith.addf %334, %338 : vector<8x8x10xf32>
    %c1_243 = arith.constant 1 : index
    %c0_244 = arith.constant 0 : index
    %c0_245 = arith.constant 0 : index
    %c208_246 = arith.constant 208 : index
    %340 = vector.load %arg7[%c1_243, %c0_244, %c0_245, %c208_246] : memref<2x7x8x512xf32, #tpu.memory_space<vmem>>, vector<1x7x8x10xf32>
    %341 = vector.shape_cast %340 : vector<1x7x8x10xf32> to vector<7x8x10xf32>
    %cst_247 = arith.constant 0.000000e+00 : f32
    %342 = vector.broadcast %cst_247 : f32 to vector<1x8x10xf32>
    %343 = tpu.concatenate %341, %342 in 0 : vector<7x8x10xf32>, vector<1x8x10xf32> -> vector<8x8x10xf32>
    %344 = arith.addf %339, %343 : vector<8x8x10xf32>
    %c1_248 = arith.constant 1 : index
    %c0_249 = arith.constant 0 : index
    %c0_250 = arith.constant 0 : index
    %c368_251 = arith.constant 368 : index
    %345 = vector.load %arg7[%c1_248, %c0_249, %c0_250, %c368_251] : memref<2x7x8x512xf32, #tpu.memory_space<vmem>>, vector<1x7x8x10xf32>
    %346 = vector.shape_cast %345 : vector<1x7x8x10xf32> to vector<7x8x10xf32>
    %cst_252 = arith.constant 0.000000e+00 : f32
    %347 = vector.broadcast %cst_252 : f32 to vector<1x8x10xf32>
    %348 = tpu.concatenate %347, %346 in 0 : vector<1x8x10xf32>, vector<7x8x10xf32> -> vector<8x8x10xf32>
    %349 = arith.addf %344, %348 : vector<8x8x10xf32>
    %350 = vector.extract_strided_slice %349 {offsets = [0, 7, 0], sizes = [8, 1, 10], strides = [1, 1, 1]} : vector<8x8x10xf32> to vector<8x1x10xf32>
    %351 = vector.extract_strided_slice %349 {offsets = [0, 0, 0], sizes = [8, 7, 10], strides = [1, 1, 1]} : vector<8x8x10xf32> to vector<8x7x10xf32>
    %352 = tpu.concatenate %350, %351 in 1 : vector<8x1x10xf32>, vector<8x7x10xf32> -> vector<8x8x10xf32>
    %353 = arith.addf %333, %352 : vector<8x8x10xf32>
    %354 = arith.addf %353, %23 : vector<8x8x10xf32>
    %cst_253 = arith.constant 0.000000e+00 : f32
    %355 = vector.broadcast %cst_253 : f32 to vector<8x8x10xf32>
    %356 = arith.maximumf %354, %355 : vector<8x8x10xf32>
    %cst_254 = arith.constant 0.899999976 : f32
    %357 = vector.broadcast %cst_254 : f32 to vector<8x8x10xf32>
    %358 = arith.subf %356, %357 : vector<8x8x10xf32>
    %359 = math.tanh %358 : vector<8x8x10xf32>
    %c6 = arith.constant 6 : index
    %c0_255 = arith.constant 0 : index
    %c0_256 = arith.constant 0 : index
    %c0_257 = arith.constant 0 : index
    %360 = vector.load %arg6[%c6, %c0_255, %c0_256, %c0_257] : memref<8x8x8x10xf32, #tpu.memory_space<vmem>>, vector<1x8x8x10xf32>
    %361 = vector.shape_cast %360 : vector<1x8x8x10xf32> to vector<8x8x10xf32>
    %362 = vector.shape_cast %359 : vector<8x8x10xf32> to vector<1x8x8x10xf32>
    tpu.vector_store %arg6[%c6, %c0_255, %c0_256, %c0_257], %362 {strides = array<i32>} : memref<8x8x8x10xf32, #tpu.memory_space<vmem>>, vector<1x8x8x10xf32>,
    %cst_258 = arith.constant 0.000000e+00 : f32
    %363 = vector.broadcast %cst_258 : f32 to vector<8x8x10xf32>
    %cst_259 = arith.constant 0.000000e+00 : f32
    %364 = vector.broadcast %cst_259 : f32 to vector<8x8x10xf32>
    %c1_260 = arith.constant 1 : index
    %c1_261 = arith.constant 1 : index
    %c0_262 = arith.constant 0 : index
    %c0_263 = arith.constant 0 : index
    %365 = vector.load %arg7[%c1_260, %c1_261, %c0_262, %c0_263] : memref<2x7x8x512xf32, #tpu.memory_space<vmem>>, vector<1x6x8x10xf32>
    %366 = vector.shape_cast %365 : vector<1x6x8x10xf32> to vector<6x8x10xf32>
    %cst_264 = arith.constant 0.000000e+00 : f32
    %367 = vector.broadcast %cst_264 : f32 to vector<2x8x10xf32>
    %368 = tpu.concatenate %366, %367 in 0 : vector<6x8x10xf32>, vector<2x8x10xf32> -> vector<8x8x10xf32>
    %369 = arith.addf %364, %368 : vector<8x8x10xf32>
    %c1_265 = arith.constant 1 : index
    %c0_266 = arith.constant 0 : index
    %c0_267 = arith.constant 0 : index
    %c160_268 = arith.constant 160 : index
    %370 = vector.load %arg7[%c1_265, %c0_266, %c0_267, %c160_268] : memref<2x7x8x512xf32, #tpu.memory_space<vmem>>, vector<1x7x8x10xf32>
    %371 = vector.shape_cast %370 : vector<1x7x8x10xf32> to vector<7x8x10xf32>
    %cst_269 = arith.constant 0.000000e+00 : f32
    %372 = vector.broadcast %cst_269 : f32 to vector<1x8x10xf32>
    %373 = tpu.concatenate %371, %372 in 0 : vector<7x8x10xf32>, vector<1x8x10xf32> -> vector<8x8x10xf32>
    %374 = arith.addf %369, %373 : vector<8x8x10xf32>
    %c1_270 = arith.constant 1 : index
    %c0_271 = arith.constant 0 : index
    %c0_272 = arith.constant 0 : index
    %c320_273 = arith.constant 320 : index
    %375 = vector.load %arg7[%c1_270, %c0_271, %c0_272, %c320_273] : memref<2x7x8x512xf32, #tpu.memory_space<vmem>>, vector<1x7x8x10xf32>
    %376 = vector.shape_cast %375 : vector<1x7x8x10xf32> to vector<7x8x10xf32>
    %cst_274 = arith.constant 0.000000e+00 : f32
    %377 = vector.broadcast %cst_274 : f32 to vector<1x8x10xf32>
    %378 = tpu.concatenate %377, %376 in 0 : vector<1x8x10xf32>, vector<7x8x10xf32> -> vector<8x8x10xf32>
    %379 = arith.addf %374, %378 : vector<8x8x10xf32>
    %380 = vector.extract_strided_slice %379 {offsets = [0, 1, 0], sizes = [8, 7, 10], strides = [1, 1, 1]} : vector<8x8x10xf32> to vector<8x7x10xf32>
    %381 = vector.extract_strided_slice %379 {offsets = [0, 0, 0], sizes = [8, 1, 10], strides = [1, 1, 1]} : vector<8x8x10xf32> to vector<8x1x10xf32>
    %382 = tpu.concatenate %380, %381 in 1 : vector<8x7x10xf32>, vector<8x1x10xf32> -> vector<8x8x10xf32>
    %383 = arith.addf %363, %382 : vector<8x8x10xf32>
    %cst_275 = arith.constant 0.000000e+00 : f32
    %384 = vector.broadcast %cst_275 : f32 to vector<8x8x10xf32>
    %c1_276 = arith.constant 1 : index
    %c1_277 = arith.constant 1 : index
    %c0_278 = arith.constant 0 : index
    %c32_279 = arith.constant 32 : index
    %385 = vector.load %arg7[%c1_276, %c1_277, %c0_278, %c32_279] : memref<2x7x8x512xf32, #tpu.memory_space<vmem>>, vector<1x6x8x10xf32>
    %386 = vector.shape_cast %385 : vector<1x6x8x10xf32> to vector<6x8x10xf32>
    %cst_280 = arith.constant 0.000000e+00 : f32
    %387 = vector.broadcast %cst_280 : f32 to vector<2x8x10xf32>
    %388 = tpu.concatenate %386, %387 in 0 : vector<6x8x10xf32>, vector<2x8x10xf32> -> vector<8x8x10xf32>
    %389 = arith.addf %384, %388 : vector<8x8x10xf32>
    %c1_281 = arith.constant 1 : index
    %c0_282 = arith.constant 0 : index
    %c0_283 = arith.constant 0 : index
    %c192_284 = arith.constant 192 : index
    %390 = vector.load %arg7[%c1_281, %c0_282, %c0_283, %c192_284] : memref<2x7x8x512xf32, #tpu.memory_space<vmem>>, vector<1x7x8x10xf32>
    %391 = vector.shape_cast %390 : vector<1x7x8x10xf32> to vector<7x8x10xf32>
    %cst_285 = arith.constant 0.000000e+00 : f32
    %392 = vector.broadcast %cst_285 : f32 to vector<1x8x10xf32>
    %393 = tpu.concatenate %391, %392 in 0 : vector<7x8x10xf32>, vector<1x8x10xf32> -> vector<8x8x10xf32>
    %394 = arith.addf %389, %393 : vector<8x8x10xf32>
    %c1_286 = arith.constant 1 : index
    %c0_287 = arith.constant 0 : index
    %c0_288 = arith.constant 0 : index
    %c352_289 = arith.constant 352 : index
    %395 = vector.load %arg7[%c1_286, %c0_287, %c0_288, %c352_289] : memref<2x7x8x512xf32, #tpu.memory_space<vmem>>, vector<1x7x8x10xf32>
    %396 = vector.shape_cast %395 : vector<1x7x8x10xf32> to vector<7x8x10xf32>
    %cst_290 = arith.constant 0.000000e+00 : f32
    %397 = vector.broadcast %cst_290 : f32 to vector<1x8x10xf32>
    %398 = tpu.concatenate %397, %396 in 0 : vector<1x8x10xf32>, vector<7x8x10xf32> -> vector<8x8x10xf32>
    %399 = arith.addf %394, %398 : vector<8x8x10xf32>
    %400 = arith.addf %383, %399 : vector<8x8x10xf32>
    %cst_291 = arith.constant 0.000000e+00 : f32
    %401 = vector.broadcast %cst_291 : f32 to vector<8x8x10xf32>
    %c1_292 = arith.constant 1 : index
    %c1_293 = arith.constant 1 : index
    %c0_294 = arith.constant 0 : index
    %c64_295 = arith.constant 64 : index
    %402 = vector.load %arg7[%c1_292, %c1_293, %c0_294, %c64_295] : memref<2x7x8x512xf32, #tpu.memory_space<vmem>>, vector<1x6x8x10xf32>
    %403 = vector.shape_cast %402 : vector<1x6x8x10xf32> to vector<6x8x10xf32>
    %cst_296 = arith.constant 0.000000e+00 : f32
    %404 = vector.broadcast %cst_296 : f32 to vector<2x8x10xf32>
    %405 = tpu.concatenate %403, %404 in 0 : vector<6x8x10xf32>, vector<2x8x10xf32> -> vector<8x8x10xf32>
    %406 = arith.addf %401, %405 : vector<8x8x10xf32>
    %c1_297 = arith.constant 1 : index
    %c0_298 = arith.constant 0 : index
    %c0_299 = arith.constant 0 : index
    %c224_300 = arith.constant 224 : index
    %407 = vector.load %arg7[%c1_297, %c0_298, %c0_299, %c224_300] : memref<2x7x8x512xf32, #tpu.memory_space<vmem>>, vector<1x7x8x10xf32>
    %408 = vector.shape_cast %407 : vector<1x7x8x10xf32> to vector<7x8x10xf32>
    %cst_301 = arith.constant 0.000000e+00 : f32
    %409 = vector.broadcast %cst_301 : f32 to vector<1x8x10xf32>
    %410 = tpu.concatenate %408, %409 in 0 : vector<7x8x10xf32>, vector<1x8x10xf32> -> vector<8x8x10xf32>
    %411 = arith.addf %406, %410 : vector<8x8x10xf32>
    %c1_302 = arith.constant 1 : index
    %c0_303 = arith.constant 0 : index
    %c0_304 = arith.constant 0 : index
    %c384_305 = arith.constant 384 : index
    %412 = vector.load %arg7[%c1_302, %c0_303, %c0_304, %c384_305] : memref<2x7x8x512xf32, #tpu.memory_space<vmem>>, vector<1x7x8x10xf32>
    %413 = vector.shape_cast %412 : vector<1x7x8x10xf32> to vector<7x8x10xf32>
    %cst_306 = arith.constant 0.000000e+00 : f32
    %414 = vector.broadcast %cst_306 : f32 to vector<1x8x10xf32>
    %415 = tpu.concatenate %414, %413 in 0 : vector<1x8x10xf32>, vector<7x8x10xf32> -> vector<8x8x10xf32>
    %416 = arith.addf %411, %415 : vector<8x8x10xf32>
    %417 = vector.extract_strided_slice %416 {offsets = [0, 7, 0], sizes = [8, 1, 10], strides = [1, 1, 1]} : vector<8x8x10xf32> to vector<8x1x10xf32>
    %418 = vector.extract_strided_slice %416 {offsets = [0, 0, 0], sizes = [8, 7, 10], strides = [1, 1, 1]} : vector<8x8x10xf32> to vector<8x7x10xf32>
    %419 = tpu.concatenate %417, %418 in 1 : vector<8x1x10xf32>, vector<8x7x10xf32> -> vector<8x8x10xf32>
    %420 = arith.addf %400, %419 : vector<8x8x10xf32>
    %421 = arith.addf %420, %23 : vector<8x8x10xf32>
    %cst_307 = arith.constant 0.000000e+00 : f32
    %422 = vector.broadcast %cst_307 : f32 to vector<8x8x10xf32>
    %423 = arith.maximumf %421, %422 : vector<8x8x10xf32>
    %cst_308 = arith.constant 0.899999976 : f32
    %424 = vector.broadcast %cst_308 : f32 to vector<8x8x10xf32>
    %425 = arith.subf %423, %424 : vector<8x8x10xf32>
    %426 = math.tanh %425 : vector<8x8x10xf32>
    %c7 = arith.constant 7 : index
    %c0_309 = arith.constant 0 : index
    %c0_310 = arith.constant 0 : index
    %c0_311 = arith.constant 0 : index
    %427 = vector.load %arg6[%c7, %c0_309, %c0_310, %c0_311] : memref<8x8x8x10xf32, #tpu.memory_space<vmem>>, vector<1x8x8x10xf32>
    %428 = vector.shape_cast %427 : vector<1x8x8x10xf32> to vector<8x8x10xf32>
    %429 = vector.shape_cast %426 : vector<8x8x10xf32> to vector<1x8x8x10xf32>
    tpu.vector_store %arg6[%c7, %c0_309, %c0_310, %c0_311], %429 {strides = array<i32>} : memref<8x8x8x10xf32, #tpu.memory_space<vmem>>, vector<1x8x8x10xf32>,
    return
  }
  func.func @transform_0(%arg0: i32) -> (i32, i32) {
    %c0_i32 = arith.constant 0 : i32
    %c0_i32_0 = arith.constant 0 : i32
    return %arg0, %c0_i32 : i32, i32
  }
  func.func @transform_1(%arg0: i32) -> (i32, i32) {
    %c0_i32 = arith.constant 0 : i32
    %c0_i32_0 = arith.constant 0 : i32
    %c0_i32_1 = arith.constant 0 : i32
    return %c0_i32, %c0_i32_0 : i32, i32
  }
  func.func @transform_2(%arg0: i32) -> (i32, i32) {
    %c0_i32 = arith.constant 0 : i32
    %c0_i32_0 = arith.constant 0 : i32
    %c0_i32_1 = arith.constant 0 : i32
    return %c0_i32, %c0_i32_0 : i32, i32
  }
  func.func @transform_3(%arg0: i32) -> (i32, i32) {
    %c0_i32 = arith.constant 0 : i32
    %c0_i32_0 = arith.constant 0 : i32
    %c0_i32_1 = arith.constant 0 : i32
    return %c0_i32, %c0_i32_0 : i32, i32
  }
  func.func @transform_4(%arg0: i32) -> (i32, i32) {
    %c0_i32 = arith.constant 0 : i32
    %c0_i32_0 = arith.constant 0 : i32
    %c0_i32_1 = arith.constant 0 : i32
    return %c0_i32, %c0_i32_0 : i32, i32
  }
  func.func @transform_5(%arg0: i32) -> (i32, i32, i32, i32) {
    %c0_i32 = arith.constant 0 : i32
    %c0_i32_0 = arith.constant 0 : i32
    %c0_i32_1 = arith.constant 0 : i32
    %c0_i32_2 = arith.constant 0 : i32
    return %arg0, %c0_i32, %c0_i32_0, %c0_i32_1 : i32, i32, i32, i32
  }
}

</mosaic_0001>

<bundles_post_ra>
// kernel: model_forward.1
= control target key start
LH: loop header
LB: loop body
LE: loop exit
PB: predicated region body
PF: predicated region fallthrough
CT: control target
= control target key end

     0   :  { %s4181_s18 = smov 0   ;;  %s6104_s0 = inlined_call_operand.vmem [shape: bf16[224,256], index: 0, kind: input, shape index: {}]   ;;  %s6105_s1 = inlined_call_operand.vmem [shape: bf16[256,32], index: 1, kind: input, shape index: {}]   ;;  %s6106_s2 = inlined_call_operand.vmem [shape: f32[1,32], index: 2, kind: input, shape index: {}]   ;;  %s6107_s3 = inlined_call_operand.vmem [shape: bf16[32,512], index: 3, kind: input, shape index: {}]   ;;  %s6108_s4 = inlined_call_operand.vmem [shape: f32[1,10], index: 4, kind: input, shape index: {}]   ;;  %s6109_s5 = inlined_call_operand.vmem [shape: f32[16,8,8,10], index: 5, kind: output, shape index: {}]  }
   0x1 LB: > { %s3688_s19 = sadd.s32 4294967295, %s4140_s18   ;;  %p3692_p0 = scmp.ge.s32.totalorder %s4140_s18, 1  ;;  %s4140_s18 = sphi %s4181_s18, %s15_s18  }
   0x2   : > { %p189_p1 = scmp.lt.s32.totalorder %s4140_s18, 3 }
   0x4   : > { %p190_p2 = pnand %p3692_p0, %p189_p1 }
   0x6   : > { %193 = sbr.rel (%p190_p2) target bundleno = 1385 (0x569), region = 40 }
   0xb   : > { %v3955_v0 = vld [vmem:[%s6105_s1 + $0x78] sm:$0xff]   ;;  %s219_s22 = smul.u32 14, %s3688_s19  ;;  %v3957_v2 = vld [vmem:[%s6105_s1 + $0x70] sm:$0xff]   ;;  %v3959_v4 = vld [vmem:[%s6105_s1 + $0x68] sm:$0xff]   ;;  %v4142_v34 = vmov 0   ;;  %v4143_v36 = vmov 0.0   ;;  %v556_v38 = vlaneseq }
   0xc   : > { %v3956_v1 = vld [vmem:[%s6105_s1 + $0x38] sm:$0xff]   ;;  %3876 = vmatprep.subr.bf16.mxu0 %v3955_v0  ;;  %v3958_v3 = vld [vmem:[%s6105_s1 + $0x30] sm:$0xff]   ;;  %v3960_v5 = vld [vmem:[%s6105_s1 + $0x28] sm:$0xff]   ;;  %742 = vmatprep.mubr.bf16.mxu1 %v4142_v34  ;;  %s4144_s23 = smov 96   ;;  %s4146_s25 = smov 112   ;;  %vm668_vm2 = vcmask 261120  }
   0xd   : > { %3877 = vmatpush3.bf16.msra.mxu0 %v3956_v1  ;;  %p220_p3 = scmp.lt.s32.totalorder %s219_s22, 27  ;;  %v3961_v6 = vld [vmem:[%s6105_s1 + $0x60] sm:$0xff]   ;;  %v3963_v8 = vld [vmem:[%s6105_s1 + $0x58] sm:$0xff]   ;;  %v3965_v10 = vld [vmem:[%s6105_s1 + $0x50] sm:$0xff]   ;;  %988 = vrot.lane.b32.xlu0 %v4143_v36, %s4144_s23  ;;  %s4147_s26 = smov 16   ;;  %v4286_v40 = vshrl.u32 %v556_v38, 7 }
   0xe   : > { %3878 = vmatprep.subr.bf16.mxu0 %v3957_v2  ;;  %v3962_v7 = vld [vmem:[%s6105_s1 + $0x20] sm:$0xff]   ;;  %v3964_v9 = vld [vmem:[%s6105_s1 + $0x18] sm:$0xff]   ;;  %v3966_v12 = vld [vmem:[%s6105_s1 + $0x10] sm:$0xff]   ;;  %1341 = vrot.lane.b32.xlu1 %v4143_v36, %s4146_s25  ;;  %s4148_s27 = smov 48   ;;  %s4149_s28 = smov 32   ;;  %vm1189_vm15 = vcmask 80896  }
   0xf   : > { %s6527_s22 = smov (!%p220_p3, %s219_s22), 27  ;;  %v3967_v13 = vld [vmem:[%s6105_s1 + $0x48] sm:$0xff]   ;;  %v3969_v15 = vld [vmem:[%s6105_s1 + $0x40] sm:$0xff]   ;;  %v558_v43 = vadd.s32 8, %v4286_v40  ;;  %s4150_s6 = smov 64   ;;  %v571_v47 = vand.u32 7, %v4286_v40 }
  0x10   : > { %s3874_s12 = sshll.u32 %s6527_s22, 3  ;;  %v3968_v14 = vld [vmem:[%s6105_s1 + $0x8] sm:$0xff]   ;;  %v3970_v16 = vld [vmem:[%s6105_s1] sm:$0xff]   ;;  %v559_v52 = vadd.s32 16, %v4286_v40  ;;  %v560_v56 = vadd.s32 24, %v4286_v40  ;;  %s3695_s13 = sshll.u32 %s3688_s19, 3 }
  0x11   : > { %3879 = vmatpush3.bf16.msra.mxu0 %v3958_v3  ;;  %s4221_s17 = scalar_lea.vmem %s6104_s0, %s3874_s12  ;;  %v3994_v17 = vld [vmem:[%s6107_s3 + $0x24] ss:$16 sps:$4 sm:$0xff]   ;;  %v3992_v18 = vld [vmem:[%s6107_s3 + $0x20] ss:$16 sps:$4 sm:$0xff]   ;;  %v4000_v35 = vld [vmem:[%s6107_s3 + $0x2c] ss:$16 sps:$4 sm:$0xff]  }
  0x12   : > { %3880 = vmatprep.subr.bf16.mxu0 %v3959_v4  ;;  %v3973_v11 = vld [vmem:[%s4221_s17 + $0x4] ss:$8 sps:$4 sm:$0xff]   ;;  %3934 = vmatprep.subr.bf16.mxu1 %v3994_v17  ;;  %v3971_v20 = vld [vmem:[%s4221_s17] ss:$8 sps:$4 sm:$0xff]   ;;  %v3974_v21 = vld [vmem:[%s4221_s17 + $0x14] ss:$8 sps:$4 sm:$0xff]  }
  0x13   : > { %485 = vmatprep.mubr.bf16.mxu0 %v3973_v11  ;;  %v3997_v19 = vld [vmem:[%s6107_s3 + $0x4] ss:$16 sps:$4 sm:$0xff]   ;;  %3936 = vmatpush1.bf16.msra.mxu1 %v3992_v18  ;;  %v3995_v22 = vld [vmem:[%s6107_s3] ss:$16 sps:$4 sm:$0xff]   ;;  %v572_v49 = vand.u32 7, %v558_v43  ;;  %vm585_vm0 = vcmp.lt.s32.totalorder %v571_v47, 7 }
  0x14   : > { %3935 = vmatprep.subr.bf16.mxu1 %v3997_v19  ;;  %v3976_v23 = vld [vmem:[%s4221_s17 + $0x10] ss:$8 sps:$4 sm:$0xff]   ;;  %v3977_v24 = vld [vmem:[%s4221_s17 + $0x24] ss:$8 sps:$4 sm:$0xff]   ;;  %v3979_v25 = vld [vmem:[%s4221_s17 + $0x20] ss:$8 sps:$4 sm:$0xff]   ;;  %1749 = vrot.lane.b32.xlu1 %v4143_v36, %s4148_s27 }
  0x15   : > { %3881 = vmatpush3.bf16.msra.mxu0 %v3960_v5  ;;  %v3980_v26 = vld [vmem:[%s4221_s17 + $0x34] ss:$8 sps:$4 sm:$0xff]   ;;  %v3982_v27 = vld [vmem:[%s4221_s17 + $0x30] ss:$8 sps:$4 sm:$0xff]   ;;  %v3983_v28 = vld [vmem:[%s4221_s17 + $0x44] ss:$8 sps:$4 sm:$0xff]  }
  0x16   : > { %3882 = vmatprep.subr.bf16.mxu0 %v3961_v6  ;;  %v3985_v29 = vld [vmem:[%s4221_s17 + $0x40] ss:$8 sps:$4 sm:$0xff]   ;;  %v3986_v30 = vld [vmem:[%s4221_s17 + $0x54] ss:$8 sps:$4 sm:$0xff]   ;;  %v3988_v31 = vld [vmem:[%s4221_s17 + $0x50] ss:$8 sps:$4 sm:$0xff]  }
  0x17   : > { %3937 = vmatpush1.bf16.msra.mxu1 %v3995_v22  ;;  %v3989_v32 = vld [vmem:[%s4221_s17 + $0x64] ss:$8 sps:$4 sm:$0xff]   ;;  %v3991_v33 = vld [vmem:[%s4221_s17 + $0x60] ss:$8 sps:$4 sm:$0xff]   ;;  %s4145_s17 = smov 80   ;;  %vm586_vm1 = vcmp.lt.s32.totalorder %v572_v49, 7 }
  0x18   : > { %805 = vmatprep.subr.bf16.mxu1 %v4000_v35  ;;  %v3751_v37 = vld [vmem:[%s6108_s4] ss:$0 sm:$0xff]  ;;  %v573_v59 = vand.u32 7, %v559_v52  ;;  %v574_v2 = vand.u32 7, %v560_v56  ;;  %v561_v6 = vadd.s32 32, %v4286_v40  ;;  %v566_v49 = vadd.s32 72, %v4286_v40 }
  0x19   : > { %3883 = vmatpush3.bf16.msra.mxu0 %v3962_v7  ;;  %1122 = vrot.lane.b32.xlu0 %v3751_v37, %s4144_s23  ;;  %v4292_v41 = vld [vmem:[%s6106_s2] ss:$0 sm:$0xff]  ;;  %v3998_v35 = vld [vmem:[%s6107_s3 + $0x28] ss:$16 sps:$4 sm:$0xff]   ;;  %p227_p4 = scmp.lt.s32.totalorder %s3695_s13, 15 }
  0x1a   : > { %3884 = vmatprep.subr.bf16.mxu0 %v3963_v8  ;;  %1853 = vrot.lane.b32.xlu1 %v3751_v37, %s4147_s26  ;;  %vm587_vm3 = vcmp.lt.s32.totalorder %v573_v59, 7  ;;  %vm588_vm4 = vcmp.lt.s32.totalorder %v574_v2, 7  ;;  %v4001_v47 = vld [vmem:[%s6107_s3 + $0x8] ss:$16 sps:$4 sm:$0xff]   ;;  %v580_v59 = vand.u32 7, %v566_v49 }
  0x1b   : > { %s6529_s13 = smov (!%p227_p4, %s3695_s13), 15 }
  0x1c   : > { %vm594_vm10 = vcmp.lt.s32.totalorder %v580_v59, 7  ;;  %s3875_s15 = sshll.u32 %s6529_s13, 6 }
  0x1d   : > { %3885 = vmatpush3.bf16.msra.mxu0 %v3964_v9  ;;  %1240 = vrot.lane.b32.xlu0 %v4143_v36, %s4145_s17  ;;  %v562_v9 = vadd.s32 40, %v4286_v40  ;;  %s5176_s21 = scalar_lea.vmem %s6109_s5, %s3875_s15 }
  0x1e   : > { %3886 = vmatprep.subr.bf16.mxu0 %v3965_v10  ;;  %2080 = vrot.lane.b32.xlu1 %v4143_v36, %s4149_s28 }
  0x21   : > { %3887 = vmatpush3.bf16.msra.mxu0 %v3966_v12  ;;  %1434 = vrot.lane.b32.xlu0 %v4143_v36, %s4147_s26 }
  0x22   : > { %3888 = vmatprep.subr.bf16.mxu0 %v3967_v13  ;;  %2166 = vrot.lane.b32.xlu1 %v4143_v36, %s4150_s6  ;;  %v575_v13 = vand.u32 7, %v561_v6 }
  0x24   : > { %vm589_vm5 = vcmp.lt.s32.totalorder %v575_v13, 7 }
  0x25   : > { %3889 = vmatpush3.bf16.msra.mxu0 %v3968_v14  ;;  %1538 = vrot.lane.b32.xlu0 %v3751_v37, %s4145_s17 }
  0x26   : > { %3890 = vmatprep.subr.bf16.mxu0 %v3969_v15 }
  0x29   : > { %3891 = vmatpush3.bf16.msra.mxu0 %v3970_v16 }
  0x2a   : > { %702 = vmatprep.subr.bf16.mxu0 %v3994_v17 }
  0x2c   : > { %486 = vmatmul.mubr.bf16.vlgmr.msra.gmra.mxu0 %v3971_v20 }
  0x2d   : > { %493 = vmatprep.mubr.bf16.mxu0 %v3974_v21  ;;  %703 = vmatpush1.bf16.msra.mxu0 %v3992_v18 }
  0x2e   : > { %704 = vmatprep.subr.bf16.mxu0 %v3997_v19  ;;  %v576_v19 = vand.u32 7, %v562_v9 }
  0x30   : > { %vm590_vm6 = vcmp.lt.s32.totalorder %v576_v19, 7 }
  0x31   : > { %705 = vmatpush1.bf16.msra.mxu0 %v3995_v22 }
  0x34   : > { %494 = vmatmul.mubr.bf16.gmra.mxu0 %v3976_v23  ;;  %v563_v23 = vadd.s32 48, %v4286_v40 }
  0x35   : > { %501 = vmatprep.mubr.bf16.mxu0 %v3977_v24 }
  0x3c   : > { %502 = vmatmul.mubr.bf16.gmra.mxu0 %v3979_v25 }
  0x3d   : > { %509 = vmatprep.mubr.bf16.mxu0 %v3980_v26  ;;  %v564_v26 = vadd.s32 56, %v4286_v40 }
  0x3f   : > { %v578_v38 = vand.u32 7, %v564_v26 }
  0x41   : > { %vm592_vm8 = vcmp.lt.s32.totalorder %v578_v38, 7 }
  0x44   : > { %510 = vmatmul.mubr.bf16.gmra.mxu0 %v3982_v27 }
  0x45   : > { %517 = vmatprep.mubr.bf16.mxu0 %v3983_v28 }
  0x4c   : > { %518 = vmatmul.mubr.bf16.gmra.mxu0 %v3985_v29 }
  0x4d   : > { %525 = vmatprep.mubr.bf16.mxu0 %v3986_v30  ;;  %v577_v30 = vand.u32 7, %v563_v23 }
  0x4f   : > { %vm591_vm7 = vcmp.lt.s32.totalorder %v577_v30, 7 }
  0x54   : > { %526 = vmatmul.mubr.bf16.gmra.mxu0 %v3988_v31 }
  0x55   : > { %533 = vmatprep.mubr.bf16.mxu0 %v3989_v32 }
  0x5c   : > { %534 = vmatmul.mubr.bf16.gmra.mxu0 %v3991_v33 }
  0x5d   : > { %722 = vmatprep.mubr.bf16.mxu0 %v4142_v34 }
  0xec   : > { %v3892_v39 = vpop.f32.mrf.mxu0 }
  0xee   : > { %v3893_v42 = vpop.f32.mrf.mxu0 }
  0xef   : > { %v3894_v44 = vadd.f32 %v3893_v42, %v3892_v39  ;;  %v4003_v39 = vld [vmem:[%s6107_s3 + $0xc] ss:$16 sps:$4 sm:$0xff]  }
  0xf0   : > { %v3895_v45 = vpop.f32.mrf.mxu0 }
  0xf1   : > { %v488_v46 = vadd.f32 %v3894_v44, %v4292_v41 }
  0xf2   : > { %v3896_v48 = vpop.f32.mrf.mxu0 }
  0xf3   : > { %v3897_v50 = vadd.f32 %v3896_v48, %v3895_v45  ;;  %v542_v53 = vmax.f32 %v488_v46, 0.0  ;;  %v565_v45 = vadd.s32 64, %v4286_v40 }
  0xf4   : > { %v3898_v51 = vpop.f32.mrf.mxu0 }
  0xf5   : > { %v491_v54 = vadd.f32 %v3897_v50, %v4292_v41  ;;  %v599_v61 = vsel %vm585_vm0, %v542_v53, 0.0  ;;  %v579_v53 = vand.u32 7, %v565_v45 }
  0xf6   : > { %v3899_v55 = vpop.f32.mrf.mxu0 }
  0xf7   : > { %v543_v57 = vmax.f32 %v491_v54, 0.0  ;;  %v3900_v58 = vadd.f32 %v3899_v55, %v3898_v51  ;;  %vm593_vm9 = vcmp.lt.s32.totalorder %v579_v53, 7 }
  0xf8   : > { %v3901_v60 = vpop.f32.mrf.mxu0 }
  0xf9   : > { %v600_v62 = vsel %vm586_vm1, %v543_v57, 0.0  ;;  %v496_v63 = vadd.f32 %v3900_v58, %v4292_v41 }
  0xfa   : > { %v4302_v0 = vpack.c.bf16 %v600_v62, %v599_v61  ;;  %v3902_v1 = vpop.f32.mrf.mxu0 }
  0xfb   : > { %v544_v3 = vmax.f32 %v496_v63, 0.0  ;;  %v3903_v4 = vadd.f32 %v3902_v1, %v3901_v60  ;;  %v567_v63 = vadd.s32 80, %v4286_v40 }
  0xfc   : > { %v3904_v5 = vpop.f32.mrf.mxu0  ;;  %3737 = vmatmul.mubr.msk.bf16.vlgmr.msra.gmra.mxu0 %vm668_vm2, %v4302_v0 }
  0xfd   : > { %v499_v7 = vadd.f32 %v3903_v4, %v4292_v41  ;;  %732 = vmatprep.mubr.bf16.mxu0 %v4142_v34  ;;  %v601_v10 = vsel %vm587_vm3, %v544_v3, 0.0  ;;  %v568_v3 = vadd.s32 88, %v4286_v40 }
  0xfe   : > { %v3905_v8 = vpop.f32.mrf.mxu0 }
  0xff   : > { %v545_v11 = vmax.f32 %v499_v7, 0.0  ;;  %v3906_v12 = vadd.f32 %v3905_v8, %v3904_v5  ;;  %v581_v7 = vand.u32 7, %v567_v63  ;;  %v582_v13 = vand.u32 7, %v568_v3 }
 0x100   : > { %v3907_v14 = vpop.f32.mrf.mxu0 }
 0x101   : > { %v602_v15 = vsel %vm588_vm4, %v545_v11, 0.0  ;;  %v504_v16 = vadd.f32 %v3906_v12, %v4292_v41  ;;  %vm595_vm11 = vcmp.lt.s32.totalorder %v581_v7, 7  ;;  %vm596_vm12 = vcmp.lt.s32.totalorder %v582_v13, 7 }
 0x102   : > { %v4311_v17 = vpack.c.bf16 %v602_v15, %v601_v10  ;;  %v3908_v18 = vpop.f32.mrf.mxu0 }
 0x103   : > { %v546_v20 = vmax.f32 %v504_v16, 0.0  ;;  %v3909_v21 = vadd.f32 %v3908_v18, %v3907_v14  ;;  %v569_v18 = vadd.s32 96, %v4286_v40 }
 0x104   : > { %v3910_v22 = vpop.f32.mrf.mxu0  ;;  %3738 = vmatmul.mubr.msk.bf16.gmra.mxu0 %vm668_vm2, %v4311_v17 }
 0x105   : > { %v507_v24 = vadd.f32 %v3909_v21, %v4292_v41  ;;  %v603_v27 = vsel %vm589_vm5, %v546_v20, 0.0  ;;  %v570_v21 = vadd.s32 104, %v4286_v40 }
 0x106   : > { %v3911_v25 = vpop.f32.mrf.mxu0 }
 0x107   : > { %v547_v28 = vmax.f32 %v507_v24, 0.0  ;;  %v3912_v29 = vadd.f32 %v3911_v25, %v3910_v22  ;;  %v583_v25 = vand.u32 7, %v569_v18 }
 0x108   : > { %v3913_v31 = vpop.f32.mrf.mxu0 }
 0x109   : > { %v604_v32 = vsel %vm590_vm6, %v547_v28, 0.0  ;;  %v512_v33 = vadd.f32 %v3912_v29, %v4292_v41  ;;  %vm597_vm13 = vcmp.lt.s32.totalorder %v583_v25, 7 }
 0x10a   : > { %v4322_v36 = vpack.c.bf16 %v604_v32, %v603_v27  ;;  %v3914_v37 = vpop.f32.mrf.mxu0 }
 0x10b   : > { %v548_v42 = vmax.f32 %v512_v33, 0.0  ;;  %v3915_v43 = vadd.f32 %v3914_v37, %v3913_v31  ;;  %v584_v31 = vand.u32 7, %v570_v21 }
 0x10c   : > { %v3916_v44 = vpop.f32.mrf.mxu0  ;;  %3739 = vmatmul.mubr.msk.bf16.vlgmr.msra.gmra.mxu1 %vm668_vm2, %v4322_v36 }
 0x10d   : > { %v515_v46 = vadd.f32 %v3915_v43, %v4292_v41  ;;  %752 = vmatprep.mubr.bf16.mxu1 %v4142_v34  ;;  %806 = vmatpush1.bf16.msra.mxu1 %v3998_v35  ;;  %v605_v50 = vsel %vm591_vm7, %v548_v42, 0.0  ;;  %vm598_vm14 = vcmp.lt.s32.totalorder %v584_v31, 7  ;;  %v1342_v42 = vpop.permute.xlu1 %1341 }
 0x10e   : > { %v3917_v48 = vpop.f32.mrf.mxu0  ;;  %807 = vmatprep.subr.bf16.mxu1 %v4003_v39 }
 0x10f   : > { %v549_v51 = vmax.f32 %v515_v46, 0.0  ;;  %v3918_v52 = vadd.f32 %v3917_v48, %v3916_v44 }
 0x110   : > { %v3919_v54 = vpop.f32.mrf.mxu0 }
 0x111   : > { %v606_v55 = vsel %vm592_vm8, %v549_v51, 0.0  ;;  %v520_v56 = vadd.f32 %v3918_v52, %v4292_v41  ;;  %808 = vmatpush1.bf16.msra.mxu1 %v4001_v47 }
 0x112   : > { %v4337_v57 = vpack.c.bf16 %v606_v55, %v605_v50  ;;  %v3920_v58 = vpop.f32.mrf.mxu0 }
 0x113   : > { %v550_v60 = vmax.f32 %v520_v56, 0.0  ;;  %v3921_v61 = vadd.f32 %v3920_v58, %v3919_v54 }
 0x114   : > { %v3922_v62 = vpop.f32.mrf.mxu0  ;;  %3740 = vmatmul.mubr.msk.bf16.gmra.mxu1 %vm668_vm2, %v4337_v57 }
 0x115   : > { %v523_v1 = vadd.f32 %v3921_v61, %v4292_v41  ;;  %762 = vmatprep.mubr.bf16.mxu1 %v4142_v34  ;;  %v607_v4 = vsel %vm593_vm9, %v550_v60, 0.0 }
 0x116   : > { %v3923_v2 = vpop.f32.mrf.mxu0 }
 0x117   : > { %v551_v5 = vmax.f32 %v523_v1, 0.0  ;;  %v3924_v6 = vadd.f32 %v3923_v2, %v3922_v62 }
 0x118   : > { %v3925_v8 = vpop.f32.mrf.mxu0 }
 0x119   : > { %v608_v9 = vsel %vm594_vm10, %v551_v5, 0.0  ;;  %v528_v10 = vadd.f32 %v3924_v6, %v4292_v41 }
 0x11a   : > { %v617_v11 = vpack.c.bf16 %v608_v9, %v607_v4  ;;  %v3926_v12 = vpop.f32.mrf.mxu0 }
 0x11b   : > { %v552_v14 = vmax.f32 %v528_v10, 0.0  ;;  %v3927_v15 = vadd.f32 %v3926_v12, %v3925_v8 }
 0x11c   : > { %v3928_v16 = vpop.f32.mrf.mxu0  ;;  %3741 = vmatmul.mubr.msk.bf16.gmra.mxu1 %vm668_vm2, %v617_v11 }
 0x11d   : > { %v531_v19 = vadd.f32 %v3927_v15, %v4292_v41  ;;  %772 = vmatprep.mubr.bf16.mxu1 %v4142_v34  ;;  %v609_v22 = vsel %vm595_vm11, %v552_v14, 0.0  ;;  %v4518_v15 = vpop.permute.xlu1 %1749 }
 0x11e   : > { %v3929_v20 = vpop.f32.mrf.mxu0 }
 0x11f   : > { %v553_v23 = vmax.f32 %v531_v19, 0.0  ;;  %v3930_v24 = vadd.f32 %v3929_v20, %v3928_v16 }
 0x120   : > { %v3931_v26 = vpop.f32.mrf.mxu0 }
 0x121   : > { %v610_v27 = vsel %vm596_vm12, %v553_v23, 0.0  ;;  %v536_v28 = vadd.f32 %v3930_v24, %v4292_v41  ;;  %v4526_v19 = vpop.permute.xlu1 %1853 }
 0x122   : > { %v618_v29 = vpack.c.bf16 %v610_v27, %v609_v22  ;;  %v3932_v30 = vpop.f32.mrf.mxu0  ;;  %6219 = vst [vmem:[#allocation29_spill] sm:$0xff] %v4526_v19 }
 0x123   : > { %v554_v32 = vmax.f32 %v536_v28, 0.0  ;;  %v3933_v33 = vadd.f32 %v3932_v30, %v3931_v26 }
 0x124   : > { %3742 = vmatmul.mubr.msk.bf16.gmra.mxu1 %vm668_vm2, %v618_v29 }
 0x125   : > { %v539_v35 = vadd.f32 %v3933_v33, %v4292_v41  ;;  %782 = vmatprep.mubr.bf16.mxu1 %v4142_v34  ;;  %v611_v40 = vsel %vm597_vm13, %v554_v32, 0.0  ;;  %v4374_v41 = vpop.permute.xlu0 %988  ;;  %v4530_v21 = vpop.permute.xlu1 %2080 }
 0x127   : > { %v555_v37 = vmax.f32 %v539_v35, 0.0 }
 0x129   : > { %v612_v38 = vsel %vm598_vm14, %v555_v37, 0.0  ;;  %v4536_v22 = vpop.permute.xlu1 %2166 }
 0x12a   : > { %v619_v39 = vpack.c.bf16 %v612_v38, %v611_v40 }
 0x12c   : > { %3743 = vmatmul.mubr.msk.bf16.gmra.mxu1 %vm668_vm2, %v619_v39 }
 0x12d   : > { %825 = vmatprep.mubr.bf16.mxu1 %v4142_v34 }
 0x134   : > { %3744 = vmatmul.mubr.msk.bf16.vlgmr.msra.gmra.mxu1 %vm668_vm2, %v4302_v0  ;;  %v4376_v0 = vpop.permute.xlu0 %1122 }
 0x135   : > { %835 = vmatprep.mubr.bf16.mxu1 %v4142_v34  ;;  %6193 = vst [vmem:[#allocation3_spill] sm:$0xff] %v4376_v0 }
 0x13c   : > { %3745 = vmatmul.mubr.msk.bf16.gmra.mxu1 %vm668_vm2, %v4311_v17  ;;  %v4378_v17 = vpop.permute.xlu0 %1240 }
 0x13d   : > { %845 = vmatprep.mubr.bf16.mxu1 %v4142_v34 }
 0x144   : > { %3746 = vmatmul.mubr.msk.bf16.gmra.mxu1 %vm668_vm2, %v4322_v36 }
 0x145   : > { %855 = vmatprep.mubr.bf16.mxu1 %v4142_v34 }
 0x14c   : > { %3747 = vmatmul.mubr.msk.bf16.gmra.mxu1 %vm668_vm2, %v4337_v57 }
 0x14d   : > { %865 = vmatprep.mubr.bf16.mxu1 %v4142_v34 }
 0x154   : > { %3748 = vmatmul.mubr.msk.bf16.gmra.mxu1 %vm668_vm2, %v617_v11 }
 0x155   : > { %875 = vmatprep.mubr.bf16.mxu1 %v4142_v34 }
 0x15c   : > { %3749 = vmatmul.mubr.msk.bf16.gmra.mxu1 %vm668_vm2, %v618_v29 }
 0x15d   : > { %885 = vmatprep.mubr.bf16.mxu1 %v4142_v34  ;;  %v4385_v34 = vpop.permute.xlu0 %1434 }
 0x15e   : > { %6194 = vst [vmem:[#allocation4_spill] sm:$0xff] %v4385_v34 }
 0x161   : > { %v4538_v23 = vpop.permute.xlu0 %1538 }
 0x162   : > { %6220 = vst [vmem:[#allocation30_spill] sm:$0xff] %v4538_v23 }
 0x164   : > { %3750 = vmatmul.mubr.msk.bf16.gmra.mxu1 %vm668_vm2, %v619_v39 }
 0x1bc   : > { %v4380_v36 = vpop.f32.mrf.mxu0 }
 0x1bd   : > { %v1365_v44 = vadd.f32 %v1342_v42, %v4380_v36 }
 0x1be   : > { %v726_v43 = vpop.f32.mrf.mxu0 }
 0x1bf   : > { %1955 = vrot.lane.b32.xlu0 %v726_v43, %s4144_s23  ;;  %1226 = vrot.lane.b32.xlu1 %v726_v43, %s4147_s26  ;;  %v1057_v45 = vrot.slane %v726_v43, 7  ;;  %v1458_v47 = vadd.f32 %v4385_v34, %v726_v43 }
 0x1c0   : > { %v4387_v46 = vpop.f32.mrf.mxu0 }
 0x1c1   : > { %6195 = vst [vmem:[#allocation5_spill] sm:$0xff] %v4387_v46  ;;  %v1474_v49 = vrot.slane %v1458_v47, 7 }
 0x1c2   : > { %v4392_v48 = vpop.f32.mrf.mxu0 }
 0x1c3   : > { %1381 = vrot.lane.b32.xlu1 %v1365_v44, %s4144_s23  ;;  %1090 = vrot.lane.b32.xlu0 %v1057_v45, %s4144_s23  ;;  %6196 = vst [vmem:[#allocation6_spill] sm:$0xff] %v4392_v48 }
 0x1c4   : > { %v4397_v50 = vpop.f32.mrf.mxu0 }
 0x1c5   : > { %6197 = vst [vmem:[#allocation7_spill] sm:$0xff] %v4397_v50 }
 0x1c6   : > { %v4404_v52 = vpop.f32.mrf.mxu0 }
 0x1c7   : > { %1641 = vrot.lane.b32.xlu1 %v726_v43, %s4144_s23  ;;  %1228 = vrot.lane.b32.xlu0 %v4392_v48, %s4147_s26  ;;  %6199 = vst [vmem:[#allocation9_spill] sm:$0xff] %v4404_v52 }
 0x1c8   : > { %v4412_v54 = vpop.f32.mrf.mxu0 }
 0x1c9   : > { %6201 = vst [vmem:[#allocation11_spill] sm:$0xff] %v4412_v54 }
 0x1ca   : > { %v4420_v56 = vpop.f32.mrf.mxu0 }
 0x1cb   : > { %1957 = vrot.lane.b32.xlu1 %v4392_v48, %s4144_s23  ;;  %1506 = vrot.lane.b32.xlu0 %v1474_v49, %s4150_s6  ;;  %6203 = vst [vmem:[#allocation13_spill] sm:$0xff] %v4420_v56 }
 0x1cc   : > { %v4402_v51 = vpop.f32.mrf.mxu1 }
 0x1cd   : > { %6198 = vst [vmem:[#allocation8_spill] sm:$0xff] %v4402_v51 }
 0x1ce   : > { %v4406_v53 = vpop.f32.mrf.mxu1 }
 0x1cf   : > { %6200 = vst [vmem:[#allocation10_spill] sm:$0xff] %v4406_v53  ;;  %1643 = vrot.lane.b32.xlu0 %v4392_v48, %s4144_s23  ;;  %1230 = vrot.lane.b32.xlu1 %v4404_v52, %s4147_s26 }
 0x1d0   : > { %v4414_v55 = vpop.f32.mrf.mxu1 }
 0x1d1   : > { %6202 = vst [vmem:[#allocation12_spill] sm:$0xff] %v4414_v55 }
 0x1d2   : > { %v4422_v57 = vpop.f32.mrf.mxu1 }
 0x1d3   : > { %1959 = vrot.lane.b32.xlu0 %v4404_v52, %s4144_s23  ;;  %1645 = vrot.lane.b32.xlu1 %v4404_v52, %s4144_s23  ;;  %6204 = vst [vmem:[#allocation14_spill] sm:$0xff] %v4422_v57 }
 0x1d4   : > { %v4428_v58 = vpop.f32.mrf.mxu1 }
 0x1d5   : > { %6205 = vst [vmem:[#allocation15_spill] sm:$0xff] %v4428_v58 }
 0x1d6   : > { %v4434_v59 = vpop.f32.mrf.mxu1 }
 0x1d7   : > { %1961 = vrot.lane.b32.xlu1 %v4420_v56, %s4144_s23  ;;  %1232 = vrot.lane.b32.xlu0 %v4420_v56, %s4147_s26  ;;  %6206 = vst [vmem:[#allocation16_spill] sm:$0xff] %v4434_v59 }
 0x1d8   : > { %v4440_v60 = vpop.f32.mrf.mxu1 }
 0x1d9   : > { %v2703_v1 = vadd.f32 %v1342_v42, %v4440_v60 }
 0x1da   : > { %v760_v61 = vpop.f32.mrf.mxu1 }
 0x1db   : > { %1234 = vrot.lane.b32.xlu1 %v4406_v53, %s4147_s26  ;;  %1647 = vrot.lane.b32.xlu0 %v4420_v56, %s4144_s23  ;;  %v2793_v2 = vadd.f32 %v4385_v34, %v760_v61  ;;  %v2406_v6 = vrot.slane %v760_v61, 7 }
 0x1dc   : > { %v4450_v62 = vpop.f32.mrf.mxu1 }
 0x1dd   : > { %6207 = vst [vmem:[#allocation17_spill] sm:$0xff] %v4450_v62  ;;  %v2809_v4 = vrot.slane %v2793_v2, 7 }
 0x1de   : > { %v4456_v63 = vpop.f32.mrf.mxu1 }
 0x1df   : > { %1649 = vrot.lane.b32.xlu1 %v4406_v53, %s4144_s23  ;;  %1963 = vrot.lane.b32.xlu0 %v4406_v53, %s4144_s23  ;;  %6208 = vst [vmem:[#allocation18_spill] sm:$0xff] %v4456_v63 }
 0x1e0   : > { %v4462_v3 = vpop.f32.mrf.mxu1 }
 0x1e1   : > { %6209 = vst [vmem:[#allocation19_spill] sm:$0xff] %v4462_v3 }
 0x1e2   : > { %v4467_v5 = vpop.f32.mrf.mxu1 }
 0x1e3   : > { %1965 = vrot.lane.b32.xlu1 %v4422_v57, %s4144_s23  ;;  %1236 = vrot.lane.b32.xlu0 %v4422_v57, %s4147_s26  ;;  %6210 = vst [vmem:[#allocation20_spill] sm:$0xff] %v4467_v5 }
 0x1e4   : > { %v4471_v7 = vpop.f32.mrf.mxu1 }
 0x1e5   : > { %6211 = vst [vmem:[#allocation21_spill] sm:$0xff] %v4471_v7 }
 0x1e6   : > { %v4476_v8 = vpop.f32.mrf.mxu1 }
 0x1e7   : > { %1238 = vrot.lane.b32.xlu1 %v4434_v59, %s4147_s26  ;;  %1651 = vrot.lane.b32.xlu0 %v4422_v57, %s4144_s23  ;;  %6212 = vst [vmem:[#allocation22_spill] sm:$0xff] %v4476_v8 }
 0x1e8   : > { %v4482_v9 = vpop.f32.mrf.mxu1 }
 0x1e9   : > { %6213 = vst [vmem:[#allocation23_spill] sm:$0xff] %v4482_v9 }
 0x1ea   : > { %v4488_v10 = vpop.f32.mrf.mxu1 }
 0x1eb   : > { %1653 = vrot.lane.b32.xlu1 %v4434_v59, %s4144_s23  ;;  %1967 = vrot.lane.b32.xlu0 %v4434_v59, %s4144_s23  ;;  %6214 = vst [vmem:[#allocation24_spill] sm:$0xff] %v4488_v10 }
 0x1ec   : > { %v4494_v11 = vpop.f32.mrf.mxu1 }
 0x1ed   : > { %6215 = vst [vmem:[#allocation25_spill] sm:$0xff] %v4494_v11 }
 0x1ee   : > { %v4500_v12 = vpop.f32.mrf.mxu1 }
 0x1ef   : > { %2973 = vrot.lane.b32.xlu1 %v760_v61, %s4144_s23  ;;  %2571 = vrot.lane.b32.xlu0 %v760_v61, %s4147_s26  ;;  %6216 = vst [vmem:[#allocation26_spill] sm:$0xff] %v4500_v12 }
 0x1f0   : > { %v4506_v13 = vpop.f32.mrf.mxu1 }
 0x1f1   : > { %6217 = vst [vmem:[#allocation27_spill] sm:$0xff] %v4506_v13 }
 0x1f2   : > { %v4512_v14 = vpop.f32.mrf.mxu1 }
 0x1f3   : > { %2573 = vrot.lane.b32.xlu1 %v4456_v63, %s4147_s26  ;;  %2719 = vrot.lane.b32.xlu0 %v2703_v1, %s4144_s23  ;;  %6218 = vst [vmem:[#allocation28_spill] sm:$0xff] %v4512_v14 }
 0x1f4   : > { %v827_v16 = vpop.f32.mrf.mxu1 }
 0x1f6   : > { %v829_v18 = vpop.f32.mrf.mxu1 }
 0x1f7   : > { %2841 = vrot.lane.b32.xlu1 %v2809_v4, %s4150_s6  ;;  %3280 = vrot.lane.b32.xlu0 %v760_v61, %s4144_s23 }
 0x1f8   : > { %v831_v20 = vpop.f32.mrf.mxu1 }
 0x1fa   : > { %v833_v28 = vpop.f32.mrf.mxu1 }
 0x1fb   : > { %3282 = vrot.lane.b32.xlu1 %v4456_v63, %s4144_s23  ;;  %2438 = vrot.lane.b32.xlu0 %v2406_v6, %s4144_s23 }
 0x1fc   : > { %v837_v31 = vpop.f32.mrf.mxu1 }
 0x1fe   : > { %v839_v37 = vpop.f32.mrf.mxu1 }
 0x1ff   : > { %2977 = vrot.lane.b32.xlu1 %v4467_v5, %s4144_s23  ;;  %2975 = vrot.lane.b32.xlu0 %v4456_v63, %s4144_s23 }
 0x200   : > { %v841_v42 = vpop.f32.mrf.mxu1 }
 0x202   : > { %v843_v4 = vpop.f32.mrf.mxu1 }
 0x203   : > { %2577 = vrot.lane.b32.xlu1 %v4476_v8, %s4147_s26  ;;  %2575 = vrot.lane.b32.xlu0 %v4467_v5, %s4147_s26 }
 0x207   : > { %3286 = vrot.lane.b32.xlu1 %v4476_v8, %s4144_s23  ;;  %3284 = vrot.lane.b32.xlu0 %v4467_v5, %s4144_s23 }
 0x20b   : > { %2981 = vrot.lane.b32.xlu1 %v4488_v10, %s4144_s23  ;;  %2979 = vrot.lane.b32.xlu0 %v4476_v8, %s4144_s23 }
 0x20f   : > { %2581 = vrot.lane.b32.xlu1 %v4500_v12, %s4147_s26  ;;  %2579 = vrot.lane.b32.xlu0 %v4488_v10, %s4147_s26 }
 0x213   : > { %3290 = vrot.lane.b32.xlu1 %v4500_v12, %s4144_s23  ;;  %3288 = vrot.lane.b32.xlu0 %v4488_v10, %s4144_s23 }
 0x217   : > { %2985 = vrot.lane.b32.xlu1 %v4512_v14, %s4144_s23  ;;  %2983 = vrot.lane.b32.xlu0 %v4500_v12, %s4144_s23 }
 0x21b   : > { %1420 = vrot.lane.b32.xlu1 %v827_v16, %s4145_s17  ;;  %2583 = vrot.lane.b32.xlu0 %v4512_v14, %s4147_s26 }
 0x21f   : > { %1997 = vrot.lane.b32.xlu1 %v827_v16, %s4150_s6  ;;  %3292 = vrot.lane.b32.xlu0 %v4512_v14, %s4144_s23 }
 0x223   : > { %992 = vrot.lane.b32.xlu1 %v831_v20, %s4144_s23  ;;  %990 = vrot.lane.b32.xlu0 %v827_v16, %s4144_s23 }
 0x227   : > { %1329 = vrot.lane.b32.xlu1 %v831_v20, %s4146_s25  ;;  %1327 = vrot.lane.b32.xlu0 %v827_v16, %s4146_s25 }
 0x22b   : > { %1686 = vrot.lane.b32.xlu1 %v831_v20, %s4148_s27  ;;  %1684 = vrot.lane.b32.xlu0 %v827_v16, %s4148_s27 }
 0x22f   : > { %1737 = vrot.lane.b32.xlu1 %v831_v20, %s4147_s26  ;;  %1735 = vrot.lane.b32.xlu0 %v827_v16, %s4147_s26 }
 0x231   : > { %v4542_v24 = vpop.permute.xlu0 %1955  ;;  %v4544_v25 = vpop.permute.xlu1 %1226 }
 0x233   : > { %2068 = vrot.lane.b32.xlu1 %v831_v20, %s4149_s28  ;;  %2066 = vrot.lane.b32.xlu0 %v827_v16, %s4149_s28 }
 0x235   : > { %v4548_v26 = vpop.permute.xlu1 %1381  ;;  %v4550_v27 = vpop.permute.xlu0 %1090 }
 0x237   : > { %2170 = vrot.lane.b32.xlu1 %v833_v28, %s4150_s6  ;;  %2168 = vrot.lane.b32.xlu0 %v829_v18, %s4150_s6  ;;  %v847_v18 = vpop.f32.mrf.mxu1 }
 0x239   : > { %v4554_v29 = vpop.permute.xlu1 %1641  ;;  %v4556_v30 = vpop.permute.xlu0 %1228 }
 0x23b   : > { %994 = vrot.lane.b32.xlu1 %v837_v31, %s4144_s23  ;;  %1422 = vrot.lane.b32.xlu0 %v831_v20, %s4145_s17 }
 0x23d   : > { %v4560_v32 = vpop.permute.xlu1 %1957  ;;  %v4562_v33 = vpop.permute.xlu0 %1506 }
 0x23f   : > { %1424 = vrot.lane.b32.xlu1 %v837_v31, %s4145_s17  ;;  %1999 = vrot.lane.b32.xlu0 %v831_v20, %s4150_s6 }
 0x241   : > { %v4566_v35 = vpop.permute.xlu0 %1643  ;;  %v4568_v40 = vpop.permute.xlu1 %1230 }
 0x242   : > { %6221 = vst [vmem:[#allocation31_spill] sm:$0xff] %v4566_v35 }
 0x243   : > { %2001 = vrot.lane.b32.xlu1 %v837_v31, %s4150_s6  ;;  %1331 = vrot.lane.b32.xlu0 %v837_v31, %s4146_s25 }
 0x245   : > { %v4572_v38 = vpop.permute.xlu0 %1959  ;;  %v4574_v39 = vpop.permute.xlu1 %1645 }
 0x246   : > { %6222 = vst [vmem:[#allocation32_spill] sm:$0xff] %v4572_v38  ;;  %6223 = vst [vmem:[#allocation33_spill] sm:$0xff] %v4574_v39 }
 0x247   : > { %1333 = vrot.lane.b32.xlu1 %v841_v42, %s4146_s25  ;;  %1688 = vrot.lane.b32.xlu0 %v837_v31, %s4148_s27 }
 0x249   : > { %v4578_v43 = vpop.permute.xlu1 %1961  ;;  %v4580_v44 = vpop.permute.xlu0 %1232 }
 0x24a   : > { %6224 = vst [vmem:[#allocation34_spill] sm:$0xff] %v4578_v43 }
 0x24b   : > { %1690 = vrot.lane.b32.xlu1 %v841_v42, %s4148_s27  ;;  %1739 = vrot.lane.b32.xlu0 %v837_v31, %s4147_s26 }
 0x24d   : > { %v4584_v45 = vpop.permute.xlu1 %1234  ;;  %v4586_v47 = vpop.permute.xlu0 %1647 }
 0x24e   : > { %6225 = vst [vmem:[#allocation35_spill] sm:$0xff] %v4586_v47 }
 0x24f   : > { %1741 = vrot.lane.b32.xlu1 %v841_v42, %s4147_s26  ;;  %2070 = vrot.lane.b32.xlu0 %v837_v31, %s4149_s28 }
 0x251   : > { %v4590_v49 = vpop.permute.xlu1 %1649  ;;  %v4592_v61 = vpop.permute.xlu0 %1963 }
 0x252   : > { %6226 = vst [vmem:[#allocation36_spill] sm:$0xff] %v4590_v49  ;;  %6227 = vst [vmem:[#allocation37_spill] sm:$0xff] %v4592_v61 }
 0x253   : > { %2072 = vrot.lane.b32.xlu1 %v841_v42, %s4149_s28  ;;  %2172 = vrot.lane.b32.xlu0 %v839_v37, %s4150_s6 }
 0x255   : > { %v4596_v1 = vpop.permute.xlu1 %1965  ;;  %v4598_v2 = vpop.permute.xlu0 %1236 }
 0x256   : > { %6228 = vst [vmem:[#allocation38_spill] sm:$0xff] %v4596_v1 }
 0x257   : > { %2174 = vrot.lane.b32.xlu1 %v843_v4, %s4150_s6  ;;  %996 = vrot.lane.b32.xlu0 %v841_v42, %s4144_s23  ;;  %v849_v4 = vpop.f32.mrf.mxu1 }
 0x259   : > { %v4602_v6 = vpop.permute.xlu1 %1238  ;;  %v4604_v16 = vpop.permute.xlu0 %1651 }
 0x25a   : > { %6229 = vst [vmem:[#allocation39_spill] sm:$0xff] %v4604_v16 }
 0x25b   : > { %998 = vrot.lane.b32.xlu1 %v847_v18, %s4144_s23  ;;  %1426 = vrot.lane.b32.xlu0 %v841_v42, %s4145_s17 }
 0x25d   : > { %v4608_v20 = vpop.permute.xlu1 %1653  ;;  %v4610_v28 = vpop.permute.xlu0 %1967 }
 0x25e   : > { %6230 = vst [vmem:[#allocation40_spill] sm:$0xff] %v4608_v20  ;;  %6231 = vst [vmem:[#allocation41_spill] sm:$0xff] %v4610_v28  ;;  %v851_v20 = vpop.f32.mrf.mxu1 }
 0x25f   : > { %1428 = vrot.lane.b32.xlu1 %v847_v18, %s4145_s17  ;;  %2003 = vrot.lane.b32.xlu0 %v841_v42, %s4150_s6 }
 0x260   : > { %v853_v12 = vpop.f32.mrf.mxu1 }
 0x261   : > { %v4614_v31 = vpop.permute.xlu1 %2973  ;;  %v4616_v37 = vpop.permute.xlu0 %2571 }
 0x263   : > { %2005 = vrot.lane.b32.xlu1 %v847_v18, %s4150_s6  ;;  %1335 = vrot.lane.b32.xlu0 %v847_v18, %s4146_s25 }
 0x265   : > { %v4620_v13 = vpop.permute.xlu1 %2573  ;;  %v4622_v11 = vpop.permute.xlu0 %2719 }
 0x267   : > { %1337 = vrot.lane.b32.xlu1 %v851_v20, %s4146_s25  ;;  %1692 = vrot.lane.b32.xlu0 %v847_v18, %s4148_s27 }
 0x269   : > { %v4626_v16 = vpop.permute.xlu1 %2841  ;;  %v4628_v42 = vpop.permute.xlu0 %3280 }
 0x26b   : > { %1694 = vrot.lane.b32.xlu1 %v851_v20, %s4148_s27  ;;  %1743 = vrot.lane.b32.xlu0 %v847_v18, %s4147_s26 }
 0x26d   : > { %v4632_v49 = vpop.permute.xlu1 %3282  ;;  %v4634_v47 = vpop.permute.xlu0 %2438 }
 0x26e   : > { %6232 = vst [vmem:[#allocation42_spill] sm:$0xff] %v4632_v49 }
 0x26f   : > { %1745 = vrot.lane.b32.xlu1 %v851_v20, %s4147_s26  ;;  %2074 = vrot.lane.b32.xlu0 %v847_v18, %s4149_s28 }
 0x271   : > { %v4638_v39 = vpop.permute.xlu1 %2977  ;;  %v4640_v35 = vpop.permute.xlu0 %2975 }
 0x272   : > { %6233 = vst [vmem:[#allocation43_spill] sm:$0xff] %v4638_v39  ;;  %6234 = vst [vmem:[#allocation44_spill] sm:$0xff] %v4640_v35  ;;  %v857_v39 = vpop.f32.mrf.mxu1 }
 0x273   : > { %2076 = vrot.lane.b32.xlu1 %v851_v20, %s4149_s28  ;;  %2176 = vrot.lane.b32.xlu0 %v849_v4, %s4150_s6 }
 0x275   : > { %v4644_v14 = vpop.permute.xlu1 %2577  ;;  %v4646_v19 = vpop.permute.xlu0 %2575 }
 0x277   : > { %2178 = vrot.lane.b32.xlu1 %v853_v12, %s4150_s6  ;;  %1000 = vrot.lane.b32.xlu0 %v851_v20, %s4144_s23 }
 0x279   : > { %v4650_v34 = vpop.permute.xlu1 %3286  ;;  %v4652_v18 = vpop.permute.xlu0 %3284 }
 0x27a   : > { %6235 = vst [vmem:[#allocation45_spill] sm:$0xff] %v4650_v34  ;;  %6236 = vst [vmem:[#allocation46_spill] sm:$0xff] %v4652_v18  ;;  %v859_v34 = vpop.f32.mrf.mxu1 }
 0x27b   : > { %1002 = vrot.lane.b32.xlu1 %v857_v39, %s4144_s23  ;;  %1430 = vrot.lane.b32.xlu0 %v851_v20, %s4145_s17 }
 0x27d   : > { %v4656_v35 = vpop.permute.xlu1 %2981  ;;  %v4658_v4 = vpop.permute.xlu0 %2979 }
 0x27e   : > { %6237 = vst [vmem:[#allocation47_spill] sm:$0xff] %v4656_v35  ;;  %6238 = vst [vmem:[#allocation48_spill] sm:$0xff] %v4658_v4  ;;  %v861_v35 = vpop.f32.mrf.mxu1 }
 0x27f   : > { %1432 = vrot.lane.b32.xlu1 %v857_v39, %s4145_s17  ;;  %2007 = vrot.lane.b32.xlu0 %v851_v20, %s4150_s6 }
 0x280   : > { %v863_v18 = vpop.f32.mrf.mxu1 }
 0x281   : > { %v4662_v12 = vpop.permute.xlu1 %2581  ;;  %v4664_v10 = vpop.permute.xlu0 %2579 }
 0x283   : > { %2009 = vrot.lane.b32.xlu1 %v857_v39, %s4150_s6  ;;  %1339 = vrot.lane.b32.xlu0 %v857_v39, %s4146_s25 }
 0x285   : > { %v4668_v9 = vpop.permute.xlu1 %3290  ;;  %v4670_v8 = vpop.permute.xlu0 %3288 }
 0x286   : > { %6239 = vst [vmem:[#allocation49_spill] sm:$0xff] %v4668_v9  ;;  %6240 = vst [vmem:[#allocation50_spill] sm:$0xff] %v4670_v8  ;;  %v867_v9 = vpop.f32.mrf.mxu1 }
 0x287   : > { %2340 = vrot.lane.b32.xlu1 %v861_v35, %s4144_s23  ;;  %1696 = vrot.lane.b32.xlu0 %v857_v39, %s4148_s27 }
 0x288   : > { %v869_v28 = vpop.f32.mrf.mxu1 }
 0x289   : > { %v4674_v4 = vpop.permute.xlu1 %2985  ;;  %v4676_v20 = vpop.permute.xlu0 %2983 }
 0x28a   : > { %6241 = vst [vmem:[#allocation51_spill] sm:$0xff] %v4674_v4  ;;  %6242 = vst [vmem:[#allocation52_spill] sm:$0xff] %v4676_v20  ;;  %v871_v58 = vpop.f32.mrf.mxu1 }
 0x28b   : > { %3391 = vrot.lane.b32.xlu1 %v861_v35, %s4149_s28  ;;  %1747 = vrot.lane.b32.xlu0 %v857_v39, %s4147_s26 }
 0x28c   : > { %v873_v55 = vpop.f32.mrf.mxu1 }
 0x28d   : > { %v4680_v7 = vpop.permute.xlu1 %1420  ;;  %v4682_v5 = vpop.permute.xlu0 %2583 }
 0x28e   : > { %v877_v43 = vpop.f32.mrf.mxu1 }
 0x28f   : > { %2670 = vrot.lane.b32.xlu1 %v867_v9, %s4146_s25  ;;  %2078 = vrot.lane.b32.xlu0 %v857_v39, %s4149_s28 }
 0x290   : > { %v879_v38 = vpop.f32.mrf.mxu1 }
 0x291   : > { %v4686_v8 = vpop.permute.xlu1 %1997  ;;  %v4688_v49 = vpop.permute.xlu0 %3292 }
 0x292   : > { %6243 = vst [vmem:[#allocation53_spill] sm:$0xff] %v4686_v8  ;;  %6244 = vst [vmem:[#allocation54_spill] sm:$0xff] %v4688_v49 }
 0x293   : > { %2760 = vrot.lane.b32.xlu1 %v867_v9, %s4145_s17  ;;  %2180 = vrot.lane.b32.xlu0 %v859_v34, %s4150_s6 }
 0x295   : > { %v4692_v4 = vpop.permute.xlu1 %992  ;;  %v4694_v20 = vpop.permute.xlu0 %990 }
 0x296   : > { %6245 = vst [vmem:[#allocation55_spill] sm:$0xff] %v4692_v4  ;;  %6246 = vst [vmem:[#allocation56_spill] sm:$0xff] %v4694_v20 }
 0x297   : > { %3068 = vrot.lane.b32.xlu1 %v867_v9, %s4147_s26  ;;  %2668 = vrot.lane.b32.xlu0 %v861_v35, %s4146_s25 }
 0x299   : > { %v4698_v3 = vpop.permute.xlu1 %1329  ;;  %v4700_v63 = vpop.permute.xlu0 %1327 }
 0x29b   : > { %3017 = vrot.lane.b32.xlu1 %v867_v9, %s4148_s27  ;;  %2758 = vrot.lane.b32.xlu0 %v861_v35, %s4145_s17 }
 0x29d   : > { %v4704_v39 = vpop.permute.xlu1 %1686  ;;  %v4706_v8 = vpop.permute.xlu0 %1684 }
 0x29f   : > { %3324 = vrot.lane.b32.xlu1 %v867_v9, %s4150_s6  ;;  %3066 = vrot.lane.b32.xlu0 %v861_v35, %s4147_s26 }
 0x2a1   : > { %v4710_v34 = vpop.permute.xlu1 %1737  ;;  %v4712_v49 = vpop.permute.xlu0 %1735 }
 0x2a3   : > { %3490 = vrot.lane.b32.xlu1 %v869_v28, %s4150_s6  ;;  %3015 = vrot.lane.b32.xlu0 %v861_v35, %s4148_s27 }
 0x2a5   : > { %v4716_v59 = vpop.permute.xlu1 %2068  ;;  %v4718_v1 = vpop.permute.xlu0 %2066 }
 0x2a7   : > { %2344 = vrot.lane.b32.xlu1 %v871_v58, %s4144_s23  ;;  %3322 = vrot.lane.b32.xlu0 %v861_v35, %s4150_s6 }
 0x2a9   : > { %v4722_v57 = vpop.permute.xlu1 %2170  ;;  %v4724_v61 = vpop.permute.xlu0 %2168 }
 0x2aa   : > { %6247 = vst [vmem:[#allocation57_spill] sm:$0xff] %v4722_v57 }
 0x2ab   : > { %3395 = vrot.lane.b32.xlu1 %v871_v58, %s4149_s28  ;;  %3488 = vrot.lane.b32.xlu0 %v863_v18, %s4150_s6 }
 0x2ad   : > { %v4728_v28 = vpop.permute.xlu1 %994  ;;  %v4730_v53 = vpop.permute.xlu0 %1422 }
 0x2ae   : > { %6248 = vst [vmem:[#allocation58_spill] sm:$0xff] %v4728_v28 }
 0x2af   : > { %2674 = vrot.lane.b32.xlu1 %v877_v43, %s4146_s25  ;;  %2342 = vrot.lane.b32.xlu0 %v867_v9, %s4144_s23 }
 0x2b1   : > { %v4734_v51 = vpop.permute.xlu1 %1424  ;;  %v4736_v35 = vpop.permute.xlu0 %1999 }
 0x2b2   : > { %6249 = vst [vmem:[#allocation59_spill] sm:$0xff] %v4734_v51  ;;  %6250 = vst [vmem:[#allocation60_spill] sm:$0xff] %v4736_v35 }
 0x2b3   : > { %2764 = vrot.lane.b32.xlu1 %v877_v43, %s4145_s17  ;;  %3393 = vrot.lane.b32.xlu0 %v867_v9, %s4149_s28 }
 0x2b5   : > { %v4740_v56 = vpop.permute.xlu1 %2001  ;;  %v4742_v18 = vpop.permute.xlu0 %1331 }
 0x2b6   : > { %6251 = vst [vmem:[#allocation61_spill] sm:$0xff] %v4740_v56 }
 0x2b7   : > { %3072 = vrot.lane.b32.xlu1 %v877_v43, %s4147_s26  ;;  %2672 = vrot.lane.b32.xlu0 %v871_v58, %s4146_s25 }
 0x2b9   : > { %v4746_v28 = vpop.permute.xlu1 %1333  ;;  %v4748_v57 = vpop.permute.xlu0 %1688 }
 0x2ba   : > { %6252 = vst [vmem:[#allocation62_spill] sm:$0xff] %v4746_v28  ;;  %6253 = vst [vmem:[#allocation63_spill] sm:$0xff] %v4748_v57 }
 0x2bb   : > { %3021 = vrot.lane.b32.xlu1 %v877_v43, %s4148_s27  ;;  %2762 = vrot.lane.b32.xlu0 %v871_v58, %s4145_s17 }
 0x2bd   : > { %v4752_v35 = vpop.permute.xlu1 %1690  ;;  %v4754_v51 = vpop.permute.xlu0 %1739 }
 0x2be   : > { %6254 = vst [vmem:[#allocation64_spill] sm:$0xff] %v4752_v35  ;;  %6255 = vst [vmem:[#allocation65_spill] sm:$0xff] %v4754_v51  ;;  %v881_v35 = vpop.f32.mrf.mxu1 }
 0x2bf   : > { %3328 = vrot.lane.b32.xlu1 %v877_v43, %s4150_s6  ;;  %3070 = vrot.lane.b32.xlu0 %v871_v58, %s4147_s26 }
 0x2c1   : > { %v4758_v9 = vpop.permute.xlu1 %1741  ;;  %v4760_v56 = vpop.permute.xlu0 %2070 }
 0x2c2   : > { %6256 = vst [vmem:[#allocation66_spill] sm:$0xff] %v4758_v9  ;;  %6257 = vst [vmem:[#allocation67_spill] sm:$0xff] %v4760_v56  ;;  %v883_v9 = vpop.f32.mrf.mxu1 }
 0x2c3   : > { %3494 = vrot.lane.b32.xlu1 %v879_v38, %s4150_s6  ;;  %3019 = vrot.lane.b32.xlu0 %v871_v58, %s4148_s27 }
 0x2c5   : > { %v4764_v28 = vpop.permute.xlu1 %2072  ;;  %v4766_v57 = vpop.permute.xlu0 %2172 }
 0x2c6   : > { %6258 = vst [vmem:[#allocation68_spill] sm:$0xff] %v4764_v28  ;;  %6259 = vst [vmem:[#allocation69_spill] sm:$0xff] %v4766_v57  ;;  %v887_v28 = vpop.f32.mrf.mxu1 }
 0x2c7   : > { %2348 = vrot.lane.b32.xlu1 %v881_v35, %s4144_s23  ;;  %3326 = vrot.lane.b32.xlu0 %v871_v58, %s4150_s6 }
 0x2c9   : > { %v4770_v51 = vpop.permute.xlu1 %2174  ;;  %v4772_v54 = vpop.permute.xlu0 %996 }
 0x2ca   : > { %6260 = vst [vmem:[#allocation70_spill] sm:$0xff] %v4770_v51  ;;  %6261 = vst [vmem:[#allocation71_spill] sm:$0xff] %v4772_v54 }
 0x2cb   : > { %3399 = vrot.lane.b32.xlu1 %v881_v35, %s4149_s28  ;;  %3492 = vrot.lane.b32.xlu0 %v873_v55, %s4150_s6 }
 0x2cd   : > { %v4776_v38 = vpop.permute.xlu1 %998  ;;  %v4778_v56 = vpop.permute.xlu0 %1426 }
 0x2ce   : > { %6262 = vst [vmem:[#allocation72_spill] sm:$0xff] %v4776_v38  ;;  %6263 = vst [vmem:[#allocation73_spill] sm:$0xff] %v4778_v56 }
 0x2cf   : > { %2678 = vrot.lane.b32.xlu1 %v887_v28, %s4146_s25  ;;  %2346 = vrot.lane.b32.xlu0 %v877_v43, %s4144_s23 }
 0x2d1   : > { %v4782_v57 = vpop.permute.xlu1 %1428  ;;  %v4784_v58 = vpop.permute.xlu0 %2003 }
 0x2d2   : > { %6264 = vst [vmem:[#allocation74_spill] sm:$0xff] %v4782_v57  ;;  %6265 = vst [vmem:[#allocation75_spill] sm:$0xff] %v4784_v58 }
 0x2d3   : > { %2768 = vrot.lane.b32.xlu1 %v887_v28, %s4145_s17  ;;  %3397 = vrot.lane.b32.xlu0 %v877_v43, %s4149_s28 }
 0x2d5   : > { %v4788_v51 = vpop.permute.xlu1 %2005  ;;  %v4790_v55 = vpop.permute.xlu0 %1335 }
 0x2d6   : > { %6266 = vst [vmem:[#allocation76_spill] sm:$0xff] %v4788_v51  ;;  %6267 = vst [vmem:[#allocation77_spill] sm:$0xff] %v4790_v55  ;;  %v889_v55 = vpop.f32.mrf.mxu1 }
 0x2d7   : > { %3076 = vrot.lane.b32.xlu1 %v887_v28, %s4147_s26  ;;  %2676 = vrot.lane.b32.xlu0 %v881_v35, %s4146_s25 }
 0x2d9   : > { %v4794_v38 = vpop.permute.xlu1 %1337  ;;  %v4796_v54 = vpop.permute.xlu0 %1692 }
 0x2da   : > { %6268 = vst [vmem:[#allocation78_spill] sm:$0xff] %v4794_v38  ;;  %6269 = vst [vmem:[#allocation79_spill] sm:$0xff] %v4796_v54 }
 0x2db   : > { %3025 = vrot.lane.b32.xlu1 %v887_v28, %s4148_s27  ;;  %2766 = vrot.lane.b32.xlu0 %v881_v35, %s4145_s17 }
 0x2dd   : > { %v4800_v58 = vpop.permute.xlu1 %1694  ;;  %v4802_v57 = vpop.permute.xlu0 %1743 }
 0x2de   : > { %6270 = vst [vmem:[#allocation80_spill] sm:$0xff] %v4800_v58  ;;  %6271 = vst [vmem:[#allocation81_spill] sm:$0xff] %v4802_v57  ;;  %v891_v58 = vpop.f32.mrf.mxu1 }
 0x2df   : > { %3332 = vrot.lane.b32.xlu1 %v887_v28, %s4150_s6  ;;  %3074 = vrot.lane.b32.xlu0 %v881_v35, %s4147_s26 }
 0x2e1   : > { %v4806_v43 = vpop.permute.xlu1 %1745  ;;  %v4808_v51 = vpop.permute.xlu0 %2074 }
 0x2e2   : > { %6272 = vst [vmem:[#allocation82_spill] sm:$0xff] %v4806_v43  ;;  %6273 = vst [vmem:[#allocation83_spill] sm:$0xff] %v4808_v51  ;;  %v1012_v43 = vadd.f32 %v4374_v41, %v4380_v36 }
 0x2e3   : > { %3498 = vrot.lane.b32.xlu1 %v889_v55, %s4150_s6  ;;  %3023 = vrot.lane.b32.xlu0 %v881_v35, %s4148_s27  ;;  %v1264_v55 = vadd.f32 %v4378_v17, %v4380_v36  ;;  %v4842_v36 = vadd.f32 %v4554_v29, %v4387_v46 }
 0x2e5   : > { %v4812_v38 = vpop.permute.xlu1 %2076  ;;  %v4814_v54 = vpop.permute.xlu0 %2176  ;;  %6278 = vst [vmem:[#allocation88_spill] sm:$0xff] %v4842_v36 }
 0x2e6   : > { %6274 = vst [vmem:[#allocation84_spill] sm:$0xff] %v4812_v38  ;;  %6275 = vst [vmem:[#allocation85_spill] sm:$0xff] %v4814_v54  ;;  %v1114_v38 = vadd.f32 %v4550_v27, %v1012_v43 }
 0x2e7   : > { %2352 = vrot.lane.b32.xlu1 %v891_v58, %s4144_s23  ;;  %3330 = vrot.lane.b32.xlu0 %v881_v35, %s4150_s6  ;;  %v4837_v35 = vadd.f32 %v4542_v24, %v4387_v46 }
 0x2e9   : > { %v4818_v57 = vpop.permute.xlu1 %2178  ;;  %v4820_v56 = vpop.permute.xlu0 %1000  ;;  %v2104_v24 = vadd.f32 %v4530_v21, %v4837_v35 }
 0x2ea   : > { %6276 = vst [vmem:[#allocation86_spill] sm:$0xff] %v4818_v57  ;;  %v1280_v57 = vrot.slane %v1264_v55, 1 }
 0x2eb   : > { %2770 = vrot.lane.b32.xlu1 %v891_v58, %s4145_s17  ;;  %3496 = vrot.lane.b32.xlu0 %v883_v9, %s4150_s6  ;;  %v1125_v9 = vadd.f32 %v4376_v0, %v1114_v38  ;;  %v1773_v38 = vadd.f32 %v4518_v15, %v4842_v36 }
 0x2ed   : > { %v4829_v54 = vpop.permute.xlu1 %1002  ;;  %v4831_v51 = vpop.permute.xlu0 %1430  ;;  %v1133_v55 = vmax.f32 %v1125_v9, 0.0 }
 0x2ee   : > { %6277 = vst [vmem:[#allocation87_spill] sm:$0xff] %v4829_v54  ;;  %v1405_v54 = vadd.f32 %v4548_v26, %v1280_v57  ;;  %v2190_v57 = vadd.f32 %v4536_v22, %v4837_v35  ;;  %v1789_v26 = vrot.slane %v1773_v38, 7 }
 0x2ef   : > { %3403 = vrot.lane.b32.xlu1 %v891_v58, %s4149_s28  ;;  %2350 = vrot.lane.b32.xlu0 %v887_v28, %s4144_s23 }
 0x2f0   : > { %v1530_v29 = vadd.f32 %v4562_v33, %v1405_v54  ;;  %v2206_v54 = vrot.slane %v2190_v57, 7 }
 0x2f1   : > { %v4844_v27 = vpop.permute.xlu1 %1432  ;;  %v4846_v43 = vpop.permute.xlu0 %2007 }
 0x2f2   : > { %6279 = vst [vmem:[#allocation89_spill] sm:$0xff] %v4844_v27  ;;  %6280 = vst [vmem:[#allocation90_spill] sm:$0xff] %v4846_v43 }
 0x2f3   : > { %1242 = vrot.lane.b32.xlu1 %v4544_v25, %s4145_s17  ;;  %3401 = vrot.lane.b32.xlu0 %v887_v28, %s4149_s28  ;;  %v3752_v25 = vadd.f32 -0.9, %v1133_v55  ;;  %v1541_v28 = vadd.f32 %v4538_v23, %v1530_v29 }
 0x2f5   : > { %v4857_v46 = vpop.permute.xlu1 %2009  ;;  %v4859_v27 = vpop.permute.xlu0 %1339  ;;  %4004 = vtanh.f32 %v3752_v25  ;;  %v1549_v33 = vmax.f32 %v1541_v28, 0.0  ;;  %v2361_v28 = vadd.f32 %v4374_v41, %v4440_v60 }
 0x2f6   : > { %6281 = vst [vmem:[#allocation91_spill] sm:$0xff] %v4857_v46 }
 0x2f7   : > { %2120 = vrot.lane.b32.xlu1 %v2104_v24, %s4144_s23  ;;  %2680 = vrot.lane.b32.xlu0 %v891_v58, %s4146_s25  ;;  %v3760_v55 = vadd.f32 -0.9, %v1549_v33 }
 0x2f9   : > { %v4866_v9 = vpop.permute.xlu1 %2340  ;;  %v4868_v43 = vpop.permute.xlu0 %1696  ;;  %4006 = vtanh.f32 %v3760_v55 }
 0x2fb   : > { %1821 = vrot.lane.b32.xlu1 %v1789_v26, %s4144_s23  ;;  %3078 = vrot.lane.b32.xlu0 %v891_v58, %s4147_s26  ;;  %v893_v26 = vpop.f32.mrf.mxu1 }
 0x2fd   : > { %v4872_v24 = vpop.permute.xlu1 %3391  ;;  %v4874_v46 = vpop.permute.xlu0 %1747 }
 0x2ff   : > { %2238 = vrot.lane.b32.xlu1 %v2206_v54, %s4150_s6  ;;  %3027 = vrot.lane.b32.xlu0 %v891_v58, %s4148_s27  ;;  %v2462_v54 = vadd.f32 %v4634_v47, %v2361_v28  ;;  %v2606_v47 = vadd.f32 %v4378_v17, %v4440_v60 }
 0x301   : > { %v4878_v38 = vpop.permute.xlu1 %2670  ;;  %v4880_v29 = vpop.permute.xlu0 %2078  ;;  %v2470_v55 = vadd.f32 %v2462_v54, %v4376_v0 }
 0x303   : > { %1246 = vrot.lane.b32.xlu1 %v4568_v40, %s4145_s17  ;;  %3334 = vrot.lane.b32.xlu0 %v891_v58, %s4150_s6  ;;  %v4005_v58 = vpop.eup %4004 }
 0x305   : > { %v4885_v57 = vpop.permute.xlu1 %2760  ;;  %v4887_v25 = vpop.permute.xlu0 %2180 }
 0x306   : > { %6282 = vst [vmem:[#allocation92_spill] sm:$0xff] %v4885_v57  ;;  %v4007_v54 = vpop.eup %4006 }
 0x307   : > { %1250 = vrot.lane.b32.xlu1 %v4584_v45, %s4145_s17  ;;  %3500 = vrot.lane.b32.xlu0 %v893_v26, %s4150_s6  ;;  %v4913_v45 = vadd.f32 %v4614_v31, %v4450_v62  ;;  %v4928_v31 = vadd.f32 %v4628_v42, %v4450_v62  ;;  %v6303_v62 = vld [vmem:[#allocation8_spill] sm:$0xff] }
 0x309   : > { %v4895_v33 = vpop.permute.xlu1 %3068  ;;  %v4897_v40 = vpop.permute.xlu0 %2668  ;;  %6283 = vst [vmem:[#allocation93_spill] sm:$0xff] %v4913_v45  ;;  %v3426_v42 = vadd.f32 %v4928_v31, %v4530_v21 }
 0x30b   : > { %1165 = vrot.lane.b32.xlu1 %v4005_v58, %s4149_s28  ;;  %1244 = vrot.lane.b32.xlu0 %v4556_v30, %s4145_s17  ;;  %v2478_v30 = vmax.f32 %v2470_v55, 0.0 }
 0x30d   : > { %v4903_v36 = vpop.permute.xlu1 %3017  ;;  %v4905_v57 = vpop.permute.xlu0 %2758  ;;  %v3808_v17 = vadd.f32 -0.9, %v2478_v30 }
 0x30f   : > { %1254 = vrot.lane.b32.xlu1 %v4602_v6, %s4145_s17  ;;  %1248 = vrot.lane.b32.xlu0 %v4580_v44, %s4145_s17  ;;  %v3101_v44 = vadd.f32 %v4913_v45, %v4518_v15  ;;  %v2622_v6 = vrot.slane %v2606_v47, 1  ;;  %v3509_v47 = vadd.f32 %v4928_v31, %v4536_v22  ;;  %4008 = vtanh.f32 %v3808_v17 }
 0x311   : > { %v4917_v26 = vpop.permute.xlu1 %3324  ;;  %v4919_v28 = vpop.permute.xlu0 %3066  ;;  %v2743_v55 = vadd.f32 %v4622_v11, %v2622_v6 }
 0x312   : > { %6284 = vst [vmem:[#allocation94_spill] sm:$0xff] %v4917_v26  ;;  %v6298_v26 = vld [vmem:[#allocation63_spill] sm:$0xff] }
 0x313   : > { %1581 = vrot.lane.b32.xlu1 %v4007_v54, %s4148_s27  ;;  %1252 = vrot.lane.b32.xlu0 %v4598_v2, %s4145_s17  ;;  %v3117_v2 = vrot.slane %v3101_v44, 7  ;;  %v2865_v15 = vadd.f32 %v4626_v16, %v2743_v55 }
 0x315   : > { %v4930_v60 = vpop.permute.xlu1 %3490  ;;  %v4932_v58 = vpop.permute.xlu0 %3015  ;;  %v2873_v11 = vadd.f32 %v2865_v15, %v4538_v23  ;;  %v6300_v23 = vld [vmem:[#allocation13_spill] sm:$0xff] }
 0x317   : > { %2585 = vrot.lane.b32.xlu1 %v4616_v37, %s4145_s17  ;;  %2587 = vrot.lane.b32.xlu0 %v4620_v13, %s4145_s17  ;;  %v3525_v13 = vrot.slane %v3509_v47, 7  ;;  %v2881_v21 = vmax.f32 %v2873_v11, 0.0 }
 0x319   : > { %v4944_v30 = vpop.permute.xlu1 %2344  ;;  %v4946_v54 = vpop.permute.xlu0 %3322  ;;  %v3824_v6 = vadd.f32 -0.9, %v2881_v21 }
 0x31a   : > { %6285 = vst [vmem:[#allocation95_spill] sm:$0xff] %v4946_v54  ;;  %v6299_v54 = vld [vmem:[#allocation67_spill] sm:$0xff] }
 0x31b   : > { %3442 = vrot.lane.b32.xlu1 %v3426_v42, %s4144_s23  ;;  %3149 = vrot.lane.b32.xlu0 %v3117_v2, %s4144_s23  ;;  %4010 = vtanh.f32 %v3824_v6 }
 0x31c   : > { %v4009_v2 = vpop.eup %4008 }
 0x31d   : > { %v4951_v37 = vpop.permute.xlu1 %3395  ;;  %v4953_v16 = vpop.permute.xlu0 %3488 }
 0x31f   : > { %3557 = vrot.lane.b32.xlu1 %v3525_v13, %s4150_s6  ;;  %2591 = vrot.lane.b32.xlu0 %v4644_v14, %s4145_s17 }
 0x321   : > { %v4958_v22 = vpop.permute.xlu1 %2674  ;;  %v4960_v44 = vpop.permute.xlu0 %2342 }
 0x322   : > { %6286 = vst [vmem:[#allocation96_spill] sm:$0xff] %v4960_v44 }
 0x323   : > { %2589 = vrot.lane.b32.xlu1 %v4646_v19, %s4145_s17  ;;  %2595 = vrot.lane.b32.xlu0 %v4662_v12, %s4145_s17 }
 0x325   : > { %v4966_v17 = vpop.permute.xlu1 %2764  ;;  %v4968_v55 = vpop.permute.xlu0 %3393 }
 0x327   : > { %2593 = vrot.lane.b32.xlu1 %v4664_v10, %s4145_s17  ;;  %2510 = vrot.lane.b32.xlu0 %v4009_v2, %s4149_s28 }
 0x329   : > { %v4973_v14 = vpop.permute.xlu1 %3072  ;;  %v4975_v15 = vpop.permute.xlu0 %2672 }
 0x32b   : > { %2597 = vrot.lane.b32.xlu1 %v4682_v5, %s4145_s17  ;;  %1343 = vrot.lane.b32.xlu0 %v4700_v63, %s4146_s25  ;;  %v1043_v63 = vadd.f32 %v4694_v20, %v4392_v48 }
 0x32d   : > { %v4981_v19 = vpop.permute.xlu1 %3021  ;;  %v4983_v12 = vpop.permute.xlu0 %2762 }
 0x32f   : > { %1436 = vrot.lane.b32.xlu1 %v4680_v7, %s4147_s26  ;;  %1751 = vrot.lane.b32.xlu0 %v4712_v49, %s4148_s27  ;;  %v4011_v7 = vpop.eup %4010  ;;  %v5005_v49 = vadd.f32 %v4560_v32, %v4397_v50  ;;  %v1044_v32 = vadd.f32 %v4692_v4, %v4404_v52  ;;  %v6306_v4 = vld [vmem:[#allocation73_spill] sm:$0xff]  ;;  %v6332_v50 = vld [vmem:[#allocation72_spill] sm:$0xff] }
 0x331   : > { %v4989_v10 = vpop.permute.xlu1 %3328  ;;  %v4991_v42 = vpop.permute.xlu0 %3070  ;;  %6289 = vst [vmem:[#allocation99_spill] sm:$0xff] %v5005_v49 }
 0x332   : > { %6287 = vst [vmem:[#allocation97_spill] sm:$0xff] %v4989_v10  ;;  %v6297_v10 = vld [vmem:[#allocation57_spill] sm:$0xff] }
 0x333   : > { %1698 = vrot.lane.b32.xlu1 %v4706_v8, %s4147_s26  ;;  %2082 = vrot.lane.b32.xlu0 %v4718_v1, %s4149_s28  ;;  %v1058_v8 = vrot.slane %v1043_v63, 7  ;;  %v2191_v1 = vadd.f32 %v4724_v61, %v5005_v49  ;;  %v1059_v61 = vrot.slane %v1044_v32, 7  ;;  %v6293_v32 = vld [vmem:[#allocation32_spill] sm:$0xff] }
 0x335   : > { %v4999_v5 = vpop.permute.xlu1 %3494  ;;  %v5001_v47 = vpop.permute.xlu0 %3019  ;;  %v2207_v21 = vrot.slane %v2191_v1, 7  ;;  %v6292_v1 = vld [vmem:[#allocation11_spill] sm:$0xff] }
 0x336   : > { %6288 = vst [vmem:[#allocation98_spill] sm:$0xff] %v4999_v5  ;;  %v6301_v5 = vld [vmem:[#allocation58_spill] sm:$0xff] }
 0x337   : > { %2913 = vrot.lane.b32.xlu1 %v4011_v7, %s4148_s27  ;;  %1438 = vrot.lane.b32.xlu0 %v4730_v53, %s4147_s26 }
 0x339   : > { %v5012_v11 = vpop.permute.xlu1 %2348  ;;  %v5014_v13 = vpop.permute.xlu0 %3326 }
 0x33a   : > { %6290 = vst [vmem:[#allocation100_spill] sm:$0xff] %v5014_v13 }
 0x33b   : > { %1092 = vrot.lane.b32.xlu1 %v1058_v8, %s4144_s23  ;;  %1700 = vrot.lane.b32.xlu0 %v4704_v39, %s4147_s26 }
 0x33d   : > { %v5021_v6 = vpop.permute.xlu1 %3399  ;;  %v5023_v53 = vpop.permute.xlu0 %3492 }
 0x33f   : > { %1345 = vrot.lane.b32.xlu1 %v4698_v3, %s4146_s25  ;;  %2240 = vrot.lane.b32.xlu0 %v2207_v21, %s4150_s6  ;;  %v5049_v21 = vadd.f32 %v6293_v32, %v6292_v1 }
 0x341   : > { %v5028_v2 = vpop.permute.xlu1 %2678  ;;  %v5030_v63 = vpop.permute.xlu0 %2346  ;;  %6294 = vst [vmem:[#allocation32_spill] sm:$0xff] %v5049_v21 }
 0x342   : > { %6291 = vst [vmem:[#allocation101_spill] sm:$0xff] %v5030_v63 }
 0x343   : > { %1753 = vrot.lane.b32.xlu1 %v4710_v34, %s4148_s27  ;;  %1094 = vrot.lane.b32.xlu0 %v1059_v61, %s4144_s23  ;;  %v6295_v34 = vld [vmem:[#allocation59_spill] sm:$0xff]  ;;  %v6296_v61 = vld [vmem:[#allocation65_spill] sm:$0xff] }
 0x345   : > { %v5035_v39 = vpop.permute.xlu1 %2768  ;;  %v5037_v7 = vpop.permute.xlu0 %3397 }
 0x347   : > { %2084 = vrot.lane.b32.xlu1 %v4716_v59, %s4149_s28  ;;  %1347 = vrot.lane.b32.xlu0 %v4742_v18, %s4146_s25  ;;  %v2192_v59 = vadd.f32 %v6297_v10, %v5049_v21  ;;  %v6304_v10 = vld [vmem:[#allocation34_spill] sm:$0xff] }
 0x348   : > { %v5073_v0 = vadd.f32 %v6304_v10, %v6303_v62  ;;  %v6310_v62 = vld [vmem:[#allocation10_spill] sm:$0xff] }
 0x349   : > { %v5043_v3 = vpop.permute.xlu1 %3076  ;;  %v5045_v8 = vpop.permute.xlu0 %2676  ;;  %v2208_v32 = vrot.slane %v2192_v59, 7 }
 0x34a   : > { %6305 = vst [vmem:[#allocation65_spill] sm:$0xff] %v5073_v0 }
 0x34b   : > { %1440 = vrot.lane.b32.xlu1 %v6295_v34, %s4147_s26  ;;  %1755 = vrot.lane.b32.xlu0 %v6296_v61, %s4148_s27  ;;  %v1045_v34 = vadd.f32 %v6301_v5, %v6300_v23  ;;  %v6311_v23 = vld [vmem:[#allocation71_spill] sm:$0xff] }
 0x34d   : > { %v5057_v13 = vpop.permute.xlu1 %3025  ;;  %v5059_v18 = vpop.permute.xlu0 %2766 }
 0x34f   : > { %1702 = vrot.lane.b32.xlu1 %v6298_v26, %s4147_s26  ;;  %2086 = vrot.lane.b32.xlu0 %v6299_v54, %s4149_s28  ;;  %v1060_v26 = vrot.slane %v1045_v34, 7  ;;  %v6307_v54 = vld [vmem:[#allocation69_spill] sm:$0xff]  ;;  %v6314_v34 = vld [vmem:[#allocation62_spill] sm:$0xff] }
 0x350   : > { %v2193_v59 = vadd.f32 %v6307_v54, %v5073_v0  ;;  %v6327_v0 = vld [vmem:[#allocation81_spill] sm:$0xff] }
 0x351   : > { %v5067_v45 = vpop.permute.xlu1 %3332  ;;  %v5069_v61 = vpop.permute.xlu0 %3074 }
 0x352   : > { %6302 = vst [vmem:[#allocation59_spill] sm:$0xff] %v5067_v45  ;;  %v6309_v45 = vld [vmem:[#allocation64_spill] sm:$0xff]  ;;  %v2209_v10 = vrot.slane %v2193_v59, 7 }
 0x353   : > { %2242 = vrot.lane.b32.xlu1 %v2208_v32, %s4150_s6  ;;  %1442 = vrot.lane.b32.xlu0 %v6306_v4, %s4147_s26  ;;  %v1046_v32 = vadd.f32 %v6311_v23, %v6310_v62  ;;  %v6324_v62 = vld [vmem:[#allocation37_spill] sm:$0xff] }
 0x355   : > { %v5080_v20 = vpop.permute.xlu1 %3498  ;;  %v5082_v5 = vpop.permute.xlu0 %3023  ;;  %v1061_v54 = vrot.slane %v1046_v32, 7 }
 0x356   : > { %6308 = vst [vmem:[#allocation57_spill] sm:$0xff] %v5080_v20 }
 0x357   : > { %1096 = vrot.lane.b32.xlu1 %v1060_v26, %s4144_s23  ;;  %1704 = vrot.lane.b32.xlu0 %v6309_v45, %s4147_s26  ;;  %v6317_v45 = vld [vmem:[#allocation66_spill] sm:$0xff] }
 0x359   : > { %v5089_v21 = vpop.permute.xlu1 %2352  ;;  %v5091_v4 = vpop.permute.xlu0 %3330 }
 0x35a   : > { %6312 = vst [vmem:[#allocation63_spill] sm:$0xff] %v5089_v21  ;;  %6313 = vst [vmem:[#allocation67_spill] sm:$0xff] %v5091_v4  ;;  %v6320_v4 = vld [vmem:[#allocation68_spill] sm:$0xff] }
 0x35b   : > { %1349 = vrot.lane.b32.xlu1 %v6314_v34, %s4146_s25  ;;  %2244 = vrot.lane.b32.xlu0 %v2209_v10, %s4150_s6  ;;  %v6321_v34 = vld [vmem:[#allocation77_spill] sm:$0xff] }
 0x35d   : > { %v5096_v20 = vpop.permute.xlu1 %2770  ;;  %v5098_v26 = vpop.permute.xlu0 %3496 }
 0x35e   : > { %6315 = vst [vmem:[#allocation34_spill] sm:$0xff] %v5096_v20  ;;  %6316 = vst [vmem:[#allocation73_spill] sm:$0xff] %v5098_v26  ;;  %v6323_v26 = vld [vmem:[#allocation12_spill] sm:$0xff] }
 0x35f   : > { %1757 = vrot.lane.b32.xlu1 %v6317_v45, %s4148_s27  ;;  %1098 = vrot.lane.b32.xlu0 %v1061_v54, %s4144_s23  ;;  %v5117_v45 = vadd.f32 %v6324_v62, %v6323_v26  ;;  %v6326_v54 = vld [vmem:[#allocation74_spill] sm:$0xff] }
 0x360   : > { %v6331_v26 = vld [vmem:[#allocation14_spill] sm:$0xff] }
 0x361   : > { %v5103_v59 = vpop.permute.xlu1 %3403  ;;  %v5105_v23 = vpop.permute.xlu0 %2350  ;;  %6325 = vst [vmem:[#allocation66_spill] sm:$0xff] %v5117_v45  ;;  %v1047_v48 = vadd.f32 %v6332_v50, %v6331_v26 }
 0x362   : > { %6318 = vst [vmem:[#allocation69_spill] sm:$0xff] %v5103_v59  ;;  %6319 = vst [vmem:[#allocation64_spill] sm:$0xff] %v5105_v23 }
 0x363   : > { %2088 = vrot.lane.b32.xlu1 %v6320_v4, %s4149_s28  ;;  %1351 = vrot.lane.b32.xlu0 %v6321_v34, %s4146_s25  ;;  %v6328_v4 = vld [vmem:[#allocation70_spill] sm:$0xff]  ;;  %v6329_v34 = vld [vmem:[#allocation79_spill] sm:$0xff] }
 0x364   : > { %v2194_v1 = vadd.f32 %v6328_v4, %v5117_v45  ;;  %v6334_v4 = vld [vmem:[#allocation15_spill] sm:$0xff]  ;;  %v6335_v45 = vld [vmem:[#allocation38_spill] sm:$0xff] }
 0x365   : > { %v5111_v10 = vpop.permute.xlu1 %1242  ;;  %v5113_v32 = vpop.permute.xlu0 %3401  ;;  %v5142_v59 = vadd.f32 %v6335_v45, %v6334_v4  ;;  %v6340_v45 = vld [vmem:[#allocation16_spill] sm:$0xff] }
 0x366   : > { %6322 = vst [vmem:[#allocation62_spill] sm:$0xff] %v5111_v10  ;;  %v6330_v10 = vld [vmem:[#allocation83_spill] sm:$0xff]  ;;  %v2210_v62 = vrot.slane %v2194_v1, 7 }
 0x367   : > { %1444 = vrot.lane.b32.xlu1 %v6326_v54, %s4147_s26  ;;  %1759 = vrot.lane.b32.xlu0 %v6327_v0, %s4148_s27  ;;  %v2034_v0 = vrot.slane %v4837_v35, 1  ;;  %6336 = vst [vmem:[#allocation77_spill] sm:$0xff] %v5142_v59  ;;  %v6338_v35 = vld [vmem:[#allocation80_spill] sm:$0xff] }
 0x369   : > { %v2121_v52 = vpop.permute.xlu1 %2120  ;;  %v5125_v49 = vpop.permute.xlu0 %2680 }
 0x36a   : > { %v2144_v1 = vadd.f32 %v2121_v52, %v2034_v0 }
 0x36b   : > { %1706 = vrot.lane.b32.xlu1 %v6329_v34, %s4147_s26  ;;  %2090 = vrot.lane.b32.xlu0 %v6330_v10, %s4149_s28  ;;  %v1062_v10 = vrot.slane %v1047_v48, 7  ;;  %v6337_v34 = vld [vmem:[#allocation85_spill] sm:$0xff] }
 0x36c   : > { %v2195_v50 = vadd.f32 %v6337_v34, %v5142_v59 }
 0x36d   : > { %v5133_v54 = vpop.permute.xlu1 %1821  ;;  %v5135_v21 = vpop.permute.xlu0 %3078 }
 0x36e   : > { %6333 = vst [vmem:[#allocation68_spill] sm:$0xff] %v5135_v21  ;;  %v2211_v52 = vrot.slane %v2195_v50, 7  ;;  %v6346_v50 = vld [vmem:[#allocation82_spill] sm:$0xff] }
 0x36f   : > { %2246 = vrot.lane.b32.xlu1 %v2210_v62, %s4150_s6  ;;  %1446 = vrot.lane.b32.xlu0 %v4831_v51, %s4147_s26  ;;  %v5157_v51 = vld [vmem:[%s6108_s4] ss:$0 sm:$0xff]  ;;  %v1048_v62 = vadd.f32 %v4820_v56, %v6340_v45 }
 0x370   : > { %6339 = vst [vmem:[#allocation37_spill] sm:$0xff] %v5157_v51 }
 0x371   : > { %v2239_v26 = vpop.permute.xlu1 %2238  ;;  %v5149_v21 = vpop.permute.xlu0 %3027 }
 0x372   : > { %v2262_v20 = vadd.f32 %v2239_v26, %v2144_v1 }
 0x373   : > { %1100 = vrot.lane.b32.xlu1 %v1062_v10, %s4144_s23  ;;  %1708 = vrot.lane.b32.xlu0 %v6338_v35, %s4147_s26  ;;  %v6343_v10 = vld [vmem:[#allocation78_spill] sm:$0xff]  ;;  %v1063_v35 = vrot.slane %v1048_v62, 7  ;;  %v6348_v62 = vld [vmem:[#allocation84_spill] sm:$0xff] }
 0x374   : > { %v2270_v48 = vadd.f32 %v5157_v51, %v2262_v20 }
 0x375   : > { %v5162_v0 = vpop.permute.xlu1 %1246  ;;  %v5164_v26 = vpop.permute.xlu0 %3334 }
 0x376   : > { %6341 = vst [vmem:[#allocation74_spill] sm:$0xff] %v5162_v0  ;;  %6342 = vst [vmem:[#allocation81_spill] sm:$0xff] %v5164_v26  ;;  %v2278_v1 = vmax.f32 %v2270_v48, 0.0  ;;  %v6355_v26 = vld [vmem:[#allocation87_spill] sm:$0xff]  ;;  %v6380_v0 = vld [vmem:[#allocation88_spill] sm:$0xff] }
 0x377   : > { %1353 = vrot.lane.b32.xlu1 %v6343_v10, %s4146_s25  ;;  %2248 = vrot.lane.b32.xlu0 %v2211_v52, %s4150_s6 }
 0x378   : > { %v3792_v34 = vadd.f32 -0.9, %v2278_v1 }
 0x379   : > { %v5169_v59 = vpop.permute.xlu1 %1250  ;;  %v5171_v20 = vpop.permute.xlu0 %3500 }
 0x37a   : > { %6344 = vst [vmem:[#allocation70_spill] sm:$0xff] %v5169_v59  ;;  %6345 = vst [vmem:[#allocation79_spill] sm:$0xff] %v5171_v20  ;;  %4012 = vtanh.f32 %v3792_v34  ;;  %v6351_v34 = vld [vmem:[#allocation89_spill] sm:$0xff] }
 0x37b   : > { %1761 = vrot.lane.b32.xlu1 %v6346_v50, %s4148_s27  ;;  %1102 = vrot.lane.b32.xlu0 %v1063_v35, %s4144_s23 }
 0x37d   : > { %v1166_v48 = vpop.permute.xlu1 %1165  ;;  %v5181_v52 = vpop.permute.xlu0 %1244 }
 0x37e   : > { %6347 = vst [vmem:[#allocation83_spill] sm:$0xff] %v5181_v52  ;;  %1190 = vst.msk [vmem:[%s5176_s21] sm:$0xff] %vm1189_vm15, %v1166_v48 }
 0x37f   : > { %2092 = vrot.lane.b32.xlu1 %v6348_v62, %s4149_s28  ;;  %1355 = vrot.lane.b32.xlu0 %v4859_v27, %s4146_s25  ;;  %v6353_v27 = vld [vmem:[#allocation41_spill] sm:$0xff]  ;;  %v6354_v62 = vld [vmem:[#allocation86_spill] sm:$0xff] }
 0x381   : > { %v5189_v1 = vpop.permute.xlu1 %1254  ;;  %v5191_v10 = vpop.permute.xlu0 %1248 }
 0x382   : > { %6349 = vst [vmem:[#allocation15_spill] sm:$0xff] %v5189_v1  ;;  %6350 = vst [vmem:[#allocation38_spill] sm:$0xff] %v5191_v10  ;;  %v1064_v1 = vrot.slane %v6355_v26, 7  ;;  %v6376_v10 = vld [vmem:[#allocation24_spill] sm:$0xff] }
 0x383   : > { %1448 = vrot.lane.b32.xlu1 %v6351_v34, %s4147_s26  ;;  %1763 = vrot.lane.b32.xlu0 %v4874_v46, %s4148_s27  ;;  %v2196_v34 = vadd.f32 %v6354_v62, %v6353_v27  ;;  %v3359_v62 = vrot.slane %v4928_v31, 1 }
 0x385   : > { %v1582_v35 = vpop.permute.xlu1 %1581  ;;  %v5197_v50 = vpop.permute.xlu0 %1252 }
 0x386   : > { %6352 = vst [vmem:[#allocation85_spill] sm:$0xff] %v5197_v50  ;;  %3768 = vst.msk [vmem:[%s5176_s21 + $0x40] sm:$0xff] %vm1189_vm15, %v1582_v35 }
 0x387   : > { %v4013_v48 = vpop.eup %4012  ;;  %1710 = vrot.lane.b32.xlu1 %v4868_v43, %s4147_s26  ;;  %2094 = vrot.lane.b32.xlu0 %v4880_v29, %s4149_s28  ;;  %v2212_v43 = vrot.slane %v2196_v34, 7  ;;  %v2197_v29 = vadd.f32 %v4887_v25, %v4374_v41 }
 0x388   : > { %3800 = vst.msk [vmem:[%s5176_s21 + $0xc0] sm:$0xff] %vm1189_vm15, %v4013_v48 }
 0x389   : > { %v5210_v46 = vpop.permute.xlu1 %2585  ;;  %v5212_v59 = vpop.permute.xlu0 %2587 }
 0x38a   : > { %6356 = vst [vmem:[#allocation80_spill] sm:$0xff] %v5210_v46  ;;  %6357 = vst [vmem:[#allocation16_spill] sm:$0xff] %v5212_v59  ;;  %v2213_v46 = vrot.slane %v2197_v29, 7 }
 0x38b   : > { %1104 = vrot.lane.b32.xlu1 %v1064_v1, %s4144_s23  ;;  %2772 = vrot.lane.b32.xlu0 %v4905_v57, %s4147_s26 }
 0x38d   : > { %v3443_v35 = vpop.permute.xlu1 %3442  ;;  %v5219_v48 = vpop.permute.xlu0 %3149 }
 0x38e   : > { %v3466_v59 = vadd.f32 %v3443_v35, %v3359_v62  ;;  %v6363_v35 = vld [vmem:[#allocation19_spill] sm:$0xff]  ;;  %v6364_v62 = vld [vmem:[#allocation42_spill] sm:$0xff] }
 0x38f   : > { %2250 = vrot.lane.b32.xlu1 %v2212_v43, %s4150_s6  ;;  %3080 = vrot.lane.b32.xlu0 %v4919_v28, %s4148_s27 }
 0x391   : > { %v3558_v1 = vpop.permute.xlu1 %3557  ;;  %v5225_v50 = vpop.permute.xlu0 %2591 }
 0x392   : > { %6358 = vst [vmem:[#allocation78_spill] sm:$0xff] %v5225_v50  ;;  %v3581_v57 = vadd.f32 %v3558_v1, %v3466_v59  ;;  %v6361_v59 = vld [vmem:[#allocation18_spill] sm:$0xff]  ;;  %v5247_v1 = vadd.f32 %v6364_v62, %v6363_v35 }
 0x393   : > { %2682 = vrot.lane.b32.xlu1 %v4897_v40, %s4146_s25  ;;  %2252 = vrot.lane.b32.xlu0 %v2213_v46, %s4150_s6  ;;  %v2392_v29 = vadd.f32 %v4866_v9, %v6361_v59 }
 0x394   : > { %v3589_v25 = vadd.f32 %v5157_v51, %v3581_v57 }
 0x395   : > { %v5231_v31 = vpop.permute.xlu1 %2589  ;;  %v5233_v34 = vpop.permute.xlu0 %2595 }
 0x396   : > { %6359 = vst [vmem:[#allocation82_spill] sm:$0xff] %v5231_v31  ;;  %6360 = vst [vmem:[#allocation84_spill] sm:$0xff] %v5233_v34  ;;  %v3597_v43 = vmax.f32 %v3589_v25, 0.0 }
 0x397   : > { %3405 = vrot.lane.b32.xlu1 %v4872_v24, %s4149_s28  ;;  %2684 = vrot.lane.b32.xlu0 %v4878_v38, %s4146_s25  ;;  %v2407_v24 = vrot.slane %v2392_v29, 7  ;;  %v3510_v38 = vadd.f32 %v4953_v16, %v5247_v1  ;;  %v6367_v16 = vld [vmem:[#allocation92_spill] sm:$0xff] }
 0x398   : > { %v3856_v28 = vadd.f32 -0.9, %v3597_v43 }
 0x399   : > { %v5241_v40 = vpop.permute.xlu1 %2593  ;;  %v2511_v46 = vpop.permute.xlu0 %2510  ;;  %v3526_v43 = vrot.slane %v3510_v38, 7 }
 0x39a   : > { %6362 = vst [vmem:[#allocation89_spill] sm:$0xff] %v5241_v40  ;;  %4014 = vtanh.f32 %v3856_v28  ;;  %3816 = vst.msk [vmem:[%s5176_s21 + $0x100] sm:$0xff] %vm1189_vm15, %v2511_v46  ;;  %v6374_v40 = vld [vmem:[#allocation23_spill] sm:$0xff] }
 0x39b   : > { %3029 = vrot.lane.b32.xlu1 %v4932_v58, %s4147_s26  ;;  %3407 = vrot.lane.b32.xlu0 %v4968_v55, %s4149_s28  ;;  %v6366_v58 = vld [vmem:[#allocation20_spill] sm:$0xff] }
 0x39c   : > { %v2393_v28 = vadd.f32 %v4960_v44, %v6366_v58 }
 0x39d   : > { %v5255_v57 = vpop.permute.xlu1 %2597  ;;  %v5257_v25 = vpop.permute.xlu0 %1343 }
 0x39e   : > { %6365 = vst [vmem:[#allocation41_spill] sm:$0xff] %v5255_v57  ;;  %v2408_v46 = vrot.slane %v2393_v28, 7 }
 0x39f   : > { %2440 = vrot.lane.b32.xlu1 %v2407_v24, %s4144_s23  ;;  %3031 = vrot.lane.b32.xlu0 %v4903_v36, %s4147_s26 }
 0x3a1   : > { %v5264_v55 = vpop.permute.xlu1 %1436  ;;  %v5266_v29 = vpop.permute.xlu0 %1751 }
 0x3a3   : > { %2774 = vrot.lane.b32.xlu1 %v6367_v16, %s4147_s26  ;;  %3559 = vrot.lane.b32.xlu0 %v3526_v43, %s4150_s6  ;;  %v6371_v16 = vld [vmem:[#allocation46_spill] sm:$0xff] }
 0x3a5   : > { %v5271_v62 = vpop.permute.xlu1 %1698  ;;  %v5273_v24 = vpop.permute.xlu0 %2082 }
 0x3a6   : > { %6368 = vst [vmem:[#allocation86_spill] sm:$0xff] %v5271_v62  ;;  %v6394_v62 = vld [vmem:[#allocation6_spill] sm:$0xff] }
 0x3a7   : > { %v4015_v36 = vpop.eup %4014  ;;  %3082 = vrot.lane.b32.xlu1 %v4895_v33, %s4148_s27  ;;  %2442 = vrot.lane.b32.xlu0 %v2408_v46, %s4144_s23  ;;  %v6370_v33 = vld [vmem:[#allocation21_spill] sm:$0xff] }
 0x3a8   : > { %3864 = vst.msk [vmem:[%s5176_s21 + $0x1c0] sm:$0xff] %vm1189_vm15, %v4015_v36  ;;  %v5294_v46 = vadd.f32 %v6371_v16, %v6370_v33  ;;  %v6373_v16 = vld [vmem:[#allocation22_spill] sm:$0xff] }
 0x3a9   : > { %v2914_v38 = vpop.permute.xlu1 %2913  ;;  %v5280_v57 = vpop.permute.xlu0 %1438 }
 0x3aa   : > { %3832 = vst.msk [vmem:[%s5176_s21 + $0x140] sm:$0xff] %vm1189_vm15, %v2914_v38 }
 0x3ab   : > { %2686 = vrot.lane.b32.xlu1 %v4975_v15, %s4146_s25  ;;  %2776 = vrot.lane.b32.xlu0 %v4983_v12, %s4147_s26  ;;  %v3511_v15 = vadd.f32 %v4930_v60, %v5294_v46  ;;  %v6375_v60 = vld [vmem:[#allocation45_spill] sm:$0xff] }
 0x3ac   : > { %v5318_v50 = vadd.f32 %v6375_v60, %v6374_v40 }
 0x3ad   : > { %v5288_v43 = vpop.permute.xlu1 %1092  ;;  %v5290_v28 = vpop.permute.xlu0 %1700  ;;  %v3527_v38 = vrot.slane %v3511_v15, 7 }
 0x3ae   : > { %6369 = vst [vmem:[#allocation87_spill] sm:$0xff] %v5290_v28  ;;  %v6379_v28 = vld [vmem:[#allocation4_spill] sm:$0xff] }
 0x3af   : > { %3409 = vrot.lane.b32.xlu1 %v4951_v37, %s4149_s28  ;;  %3084 = vrot.lane.b32.xlu0 %v4991_v42, %s4148_s27  ;;  %v2394_v37 = vadd.f32 %v4944_v30, %v6373_v16  ;;  %v1719_v51 = vadd.f32 %v6380_v0, %v6379_v28 }
 0x3b1   : > { %v5302_v36 = vpop.permute.xlu1 %1345  ;;  %v5304_v12 = vpop.permute.xlu0 %2240 }
 0x3b2   : > { %6372 = vst [vmem:[#allocation18_spill] sm:$0xff] %v5304_v12 }
 0x3b3   : > { %3033 = vrot.lane.b32.xlu1 %v5001_v47, %s4147_s26  ;;  %2688 = vrot.lane.b32.xlu0 %v4958_v22, %s4146_s25  ;;  %v2409_v47 = vrot.slane %v2394_v37, 7  ;;  %v3512_v22 = vadd.f32 %v5023_v53, %v5318_v50 }
 0x3b5   : > { %v5312_v34 = vpop.permute.xlu1 %1753  ;;  %v5314_v42 = vpop.permute.xlu0 %1094  ;;  %v3528_v60 = vrot.slane %v3512_v22, 7 }
 0x3b7   : > { %3561 = vrot.lane.b32.xlu1 %v3527_v38, %s4150_s6  ;;  %3411 = vrot.lane.b32.xlu0 %v5037_v7, %s4149_s28  ;;  %v2395_v38 = vadd.f32 %v5030_v63, %v6376_v10 }
 0x3b9   : > { %v5325_v15 = vpop.permute.xlu1 %2084  ;;  %v5327_v31 = vpop.permute.xlu0 %1347  ;;  %v2410_v53 = vrot.slane %v2395_v38, 7  ;;  %v6382_v38 = vld [vmem:[#allocation26_spill] sm:$0xff] }
 0x3ba   : > { %v2396_v0 = vadd.f32 %v5012_v11, %v6382_v38 }
 0x3bb   : > { %2444 = vrot.lane.b32.xlu1 %v2409_v47, %s4144_s23  ;;  %3035 = vrot.lane.b32.xlu0 %v4981_v19, %s4147_s26 }
 0x3bd   : > { %v5334_v20 = vpop.permute.xlu1 %1440  ;;  %v5336_v7 = vpop.permute.xlu0 %1755 }
 0x3bf   : > { %2778 = vrot.lane.b32.xlu1 %v4966_v17, %s4147_s26  ;;  %3563 = vrot.lane.b32.xlu0 %v3528_v60, %s4150_s6  ;;  %v1845_v17 = vadd.f32 %v5133_v54, %v1719_v51  ;;  %v2411_v54 = vrot.slane %v2396_v0, 7 }
 0x3c1   : > { %v5341_v37 = vpop.permute.xlu1 %1702  ;;  %v5343_v47 = vpop.permute.xlu0 %2086 }
 0x3c2   : > { %6377 = vst [vmem:[#allocation19_spill] sm:$0xff] %v5341_v37 }
 0x3c3   : > { %3086 = vrot.lane.b32.xlu1 %v4973_v14, %s4148_s27  ;;  %2446 = vrot.lane.b32.xlu0 %v2410_v53, %s4144_s23  ;;  %v6383_v53 = vld [vmem:[#allocation29_spill] sm:$0xff] }
 0x3c5   : > { %v5348_v19 = vpop.permute.xlu1 %2242  ;;  %v5350_v22 = vpop.permute.xlu0 %1442 }
 0x3c6   : > { %6378 = vst [vmem:[#allocation42_spill] sm:$0xff] %v5348_v19 }
 0x3c7   : > { %2690 = vrot.lane.b32.xlu1 %v5045_v8, %s4146_s25  ;;  %2780 = vrot.lane.b32.xlu0 %v5059_v18, %s4147_s26  ;;  %v1856_v8 = vadd.f32 %v6383_v53, %v1845_v17  ;;  %v6385_v17 = vld [vmem:[#allocation28_spill] sm:$0xff] }
 0x3c9   : > { %v5359_v60 = vpop.permute.xlu1 %1096  ;;  %v5361_v14 = vpop.permute.xlu0 %1704 }
 0x3ca   : > { %6381 = vst [vmem:[#allocation20_spill] sm:$0xff] %v5361_v14  ;;  %v2397_v14 = vadd.f32 %v5105_v23, %v6385_v17  ;;  %v6396_v23 = vld [vmem:[#allocation7_spill] sm:$0xff] }
 0x3cb   : > { %3413 = vrot.lane.b32.xlu1 %v5021_v6, %s4149_s28  ;;  %3088 = vrot.lane.b32.xlu0 %v5069_v61, %s4148_s27  ;;  %v1864_v6 = vmax.f32 %v1856_v8, 0.0 }
 0x3cd   : > { %v5370_v37 = vpop.permute.xlu1 %1349  ;;  %v5372_v18 = vpop.permute.xlu0 %2244 }
 0x3ce   : > { %6384 = vst [vmem:[#allocation92_spill] sm:$0xff] %v5372_v18  ;;  %v3776_v18 = vadd.f32 -0.9, %v1864_v6 }
 0x3cf   : > { %3037 = vrot.lane.b32.xlu1 %v5082_v5, %s4147_s26  ;;  %2692 = vrot.lane.b32.xlu0 %v5028_v2, %s4146_s25  ;;  %v2412_v2 = vrot.slane %v2397_v14, 7 }
 0x3d0   : > { %4016 = vtanh.f32 %v3776_v18  ;;  %v6389_v18 = vld [vmem:[#allocation69_spill] sm:$0xff] }
 0x3d1   : > { %v5378_v51 = vpop.permute.xlu1 %1757  ;;  %v5380_v61 = vpop.permute.xlu0 %1098 }
 0x3d3   : > { %2448 = vrot.lane.b32.xlu1 %v2411_v54, %s4144_s23  ;;  %3415 = vrot.lane.b32.xlu0 %v5113_v32, %s4149_s28 }
 0x3d5   : > { %v5387_v19 = vpop.permute.xlu1 %2088  ;;  %v5389_v5 = vpop.permute.xlu0 %1351 }
 0x3d7   : > { %2782 = vrot.lane.b32.xlu1 %v5035_v39, %s4147_s26  ;;  %3039 = vrot.lane.b32.xlu0 %v5057_v13, %s4147_s26  ;;  %v6387_v13 = vld [vmem:[#allocation34_spill] sm:$0xff] }
 0x3d9   : > { %v5395_v0 = vpop.permute.xlu1 %1444  ;;  %v5397_v8 = vpop.permute.xlu0 %1759 }
 0x3db   : > { %3090 = vrot.lane.b32.xlu1 %v5043_v3, %s4148_s27  ;;  %2450 = vrot.lane.b32.xlu0 %v2412_v2, %s4144_s23  ;;  %v6390_v3 = vld [vmem:[#allocation68_spill] sm:$0xff] }
 0x3dd   : > { %v5402_v32 = vpop.permute.xlu1 %1706  ;;  %v5404_v54 = vpop.permute.xlu0 %2090 }
 0x3de   : > { %6386 = vst [vmem:[#allocation21_spill] sm:$0xff] %v5402_v32  ;;  %v4017_v32 = vpop.eup %4016 }
 0x3df   : > { %2694 = vrot.lane.b32.xlu1 %v5125_v49, %s4146_s25  ;;  %2784 = vrot.lane.b32.xlu0 %v6387_v13, %s4147_s26  ;;  %v6392_v49 = vld [vmem:[#allocation63_spill] sm:$0xff] }
 0x3e0   : > { %v2413_v13 = vrot.slane %v6392_v49, 7 }
 0x3e1   : > { %v5410_v39 = vpop.permute.xlu1 %2246  ;;  %v5412_v14 = vpop.permute.xlu0 %1446 }
 0x3e2   : > { %6388 = vst [vmem:[#allocation46_spill] sm:$0xff] %v5410_v39  ;;  %v6393_v39 = vld [vmem:[#allocation5_spill] sm:$0xff] }
 0x3e3   : > { %3417 = vrot.lane.b32.xlu1 %v6389_v18, %s4149_s28  ;;  %3092 = vrot.lane.b32.xlu0 %v6390_v3, %s4148_s27  ;;  %v1366_v12 = vadd.f32 %v5257_v25, %v6393_v39  ;;  %v1459_v18 = vadd.f32 %v5264_v55, %v6394_v62  ;;  %v6399_v25 = vld [vmem:[#allocation99_spill] sm:$0xff] }
 0x3e4   : > { %v2105_v49 = vadd.f32 %v5273_v24, %v6399_v25  ;;  %v6401_v24 = vld [vmem:[#allocation11_spill] sm:$0xff]  ;;  %v6415_v25 = vld [vmem:[#allocation36_spill] sm:$0xff] }
 0x3e5   : > { %v5418_v6 = vpop.permute.xlu1 %1100  ;;  %v5420_v2 = vpop.permute.xlu0 %1708 }
 0x3e6   : > { %6391 = vst [vmem:[#allocation22_spill] sm:$0xff] %v5420_v2  ;;  %v6397_v2 = vld [vmem:[#allocation31_spill] sm:$0xff] }
 0x3e7   : > { %3041 = vrot.lane.b32.xlu1 %v5149_v21, %s4147_s26  ;;  %1896 = vrot.lane.b32.xlu0 %v4017_v32, %s4146_s25  ;;  %v5436_v63 = vadd.f32 %v6397_v2, %v6396_v23  ;;  %v1475_v21 = vrot.slane %v1459_v18, 7 }
 0x3e9   : > { %v5430_v52 = vpop.permute.xlu1 %1353  ;;  %v5432_v3 = vpop.permute.xlu0 %2248  ;;  %6398 = vst [vmem:[#allocation24_spill] sm:$0xff] %v5436_v63  ;;  %v1774_v32 = vadd.f32 %v5266_v29, %v5436_v63  ;;  %v6402_v63 = vld [vmem:[#allocation33_spill] sm:$0xff] }
 0x3ea   : > { %6395 = vst [vmem:[#allocation45_spill] sm:$0xff] %v5432_v3  ;;  %v6400_v3 = vld [vmem:[#allocation9_spill] sm:$0xff]  ;;  %v5460_v53 = vadd.f32 %v6402_v63, %v6401_v24 }
 0x3eb   : > { %2452 = vrot.lane.b32.xlu1 %v2413_v13, %s4144_s23  ;;  %1383 = vrot.lane.b32.xlu0 %v1366_v12, %s4144_s23  ;;  %v1790_v2 = vrot.slane %v1774_v32, 7  ;;  %v1460_v13 = vadd.f32 %v5280_v57, %v6400_v3  ;;  %v1367_v12 = vadd.f32 %v5302_v36, %v6396_v23  ;;  %v6404_v57 = vld [vmem:[#allocation32_spill] sm:$0xff] }
 0x3ec   : > { %6403 = vst [vmem:[#allocation4_spill] sm:$0xff] %v5460_v53  ;;  %v2106_v3 = vadd.f32 %v5325_v15, %v6404_v57  ;;  %v6407_v15 = vld [vmem:[#allocation8_spill] sm:$0xff] }
 0x3ed   : > { %v5444_v55 = vpop.permute.xlu1 %1761  ;;  %v5446_v62 = vpop.permute.xlu0 %1102 }
 0x3ef   : > { %1508 = vrot.lane.b32.xlu1 %v1475_v21, %s4150_s6  ;;  %2122 = vrot.lane.b32.xlu0 %v2105_v49, %s4144_s23  ;;  %v1476_v49 = vrot.slane %v1460_v13, 7  ;;  %v1775_v21 = vadd.f32 %v5312_v34, %v5460_v53  ;;  %v6408_v53 = vld [vmem:[#allocation35_spill] sm:$0xff] }
 0x3f0   : > { %v5484_v57 = vadd.f32 %v6408_v53, %v6407_v15 }
 0x3f1   : > { %v5454_v18 = vpop.permute.xlu1 %2092  ;;  %v5456_v29 = vpop.permute.xlu0 %1355  ;;  %v1791_v63 = vrot.slane %v1775_v21, 7 }
 0x3f2   : > { %6409 = vst [vmem:[#allocation26_spill] sm:$0xff] %v5484_v57  ;;  %v1776_v21 = vadd.f32 %v5336_v7, %v5484_v57 }
 0x3f3   : > { %1385 = vrot.lane.b32.xlu1 %v1367_v12, %s4144_s23  ;;  %1823 = vrot.lane.b32.xlu0 %v1790_v2, %s4144_s23  ;;  %v1368_v12 = vadd.f32 %v5327_v31, %v6401_v24  ;;  %v6405_v2 = vld [vmem:[#allocation13_spill] sm:$0xff] }
 0x3f4   : > { %v1461_v13 = vadd.f32 %v5334_v20, %v6405_v2  ;;  %v6410_v31 = vld [vmem:[#allocation65_spill] sm:$0xff] }
 0x3f5   : > { %v5468_v36 = vpop.permute.xlu1 %1448  ;;  %v5470_v32 = vpop.permute.xlu0 %1763 }
 0x3f7   : > { %2124 = vrot.lane.b32.xlu1 %v2106_v3, %s4144_s23  ;;  %1510 = vrot.lane.b32.xlu0 %v1476_v49, %s4150_s6  ;;  %v1477_v49 = vrot.slane %v1461_v13, 7  ;;  %v2107_v3 = vadd.f32 %v5343_v47, %v6410_v31  ;;  %v1369_v47 = vadd.f32 %v5370_v37, %v6407_v15  ;;  %v6414_v31 = vld [vmem:[#allocation12_spill] sm:$0xff] }
 0x3f9   : > { %v5478_v17 = vpop.permute.xlu1 %1710  ;;  %v5480_v34 = vpop.permute.xlu0 %2094 }
 0x3fa   : > { %6406 = vst [vmem:[#allocation88_spill] sm:$0xff] %v5478_v17  ;;  %v6411_v17 = vld [vmem:[#allocation56_spill] sm:$0xff] }
 0x3fb   : > { %1825 = vrot.lane.b32.xlu1 %v1791_v63, %s4144_s23  ;;  %1387 = vrot.lane.b32.xlu0 %v1368_v12, %s4144_s23  ;;  %v1013_v44 = vadd.f32 %v6411_v17, %v6393_v39  ;;  %v1792_v63 = vrot.slane %v1776_v21, 7  ;;  %v6412_v12 = vld [vmem:[#allocation10_spill] sm:$0xff]  ;;  %v5511_v17 = vadd.f32 %v6415_v25, %v6414_v31 }
 0x3fc   : > { %v1462_v7 = vadd.f32 %v5350_v22, %v6412_v12  ;;  %v6418_v12 = vld [vmem:[#allocation66_spill] sm:$0xff] }
 0x3fd   : > { %v5492_v20 = vpop.permute.xlu1 %1104  ;;  %v5494_v2 = vpop.permute.xlu0 %2772  ;;  %v1115_v53 = vadd.f32 %v5288_v43, %v1013_v44  ;;  %v6417_v44 = vld [vmem:[#allocation3_spill] sm:$0xff]  ;;  %v1777_v21 = vadd.f32 %v5378_v51, %v5511_v17 }
 0x3fe   : > { %v1478_v37 = vrot.slane %v1462_v7, 7  ;;  %v6420_v7 = vld [vmem:[#allocation14_spill] sm:$0xff] }
 0x3ff   : > { %1512 = vrot.lane.b32.xlu1 %v1477_v49, %s4150_s6  ;;  %2126 = vrot.lane.b32.xlu0 %v2107_v3, %s4144_s23  ;;  %v6416_v49 = vld [vmem:[#allocation55_spill] sm:$0xff]  ;;  %v1126_v43 = vadd.f32 %v6417_v44, %v1115_v53  ;;  %v1463_v51 = vadd.f32 %v5395_v0, %v6420_v7 }
 0x400   : > { %v1014_v3 = vadd.f32 %v6416_v49, %v6396_v23 }
 0x401   : > { %v5505_v13 = vpop.permute.xlu1 %2250  ;;  %v5507_v57 = vpop.permute.xlu0 %3080 }
 0x402   : > { %6413 = vst [vmem:[#allocation34_spill] sm:$0xff] %v5505_v13  ;;  %v1116_v22 = vadd.f32 %v5314_v42, %v1014_v3  ;;  %v2108_v13 = vadd.f32 %v5387_v19, %v6418_v12  ;;  %v1370_v42 = vadd.f32 %v5389_v5, %v6414_v31  ;;  %v6421_v3 = vld [vmem:[#allocation39_spill] sm:$0xff] }
 0x403   : > { %1389 = vrot.lane.b32.xlu1 %v1369_v47, %s4144_s23  ;;  %1827 = vrot.lane.b32.xlu0 %v1792_v63, %s4144_s23  ;;  %v1134_v63 = vmax.f32 %v1126_v43, 0.0  ;;  %v1793_v47 = vrot.slane %v1777_v21, 7 }
 0x404   : > { %v1127_v53 = vadd.f32 %v6417_v44, %v1116_v22  ;;  %v1479_v22 = vrot.slane %v1463_v51, 7 }
 0x405   : > { %v5523_v25 = vpop.permute.xlu1 %2682  ;;  %v5525_v39 = vpop.permute.xlu0 %2252 }
 0x406   : > { %6419 = vst [vmem:[#allocation69_spill] sm:$0xff] %v5525_v39  ;;  %v5540_v39 = vadd.f32 %v6421_v3, %v6334_v4  ;;  %v1135_v43 = vmax.f32 %v1127_v53, 0.0 }
 0x407   : > { %2128 = vrot.lane.b32.xlu1 %v2108_v13, %s4144_s23  ;;  %1514 = vrot.lane.b32.xlu0 %v1478_v37, %s4150_s6  ;;  %v3753_v13 = vadd.f32 -0.9, %v1134_v63  ;;  %v6422_v37 = vld [vmem:[#allocation77_spill] sm:$0xff]  ;;  %v1371_v63 = vadd.f32 %v5430_v52, %v6334_v4 }
 0x408   : > { %v1778_v5 = vadd.f32 %v5397_v8, %v5540_v39  ;;  %v2109_v0 = vadd.f32 %v5404_v54, %v6422_v37  ;;  %v6424_v54 = vld [vmem:[#allocation58_spill] sm:$0xff] }
 0x409   : > { %v5534_v49 = vpop.permute.xlu1 %3405  ;;  %v5536_v19 = vpop.permute.xlu0 %2684  ;;  %4018 = vtanh.f32 %v3753_v13  ;;  %v1015_v51 = vadd.f32 %v6424_v54, %v6401_v24  ;;  %v1464_v13 = vadd.f32 %v5412_v14, %v6340_v45  ;;  %v6427_v54 = vld [vmem:[#allocation71_spill] sm:$0xff] }
 0x40b   : > { %1829 = vrot.lane.b32.xlu1 %v1793_v47, %s4144_s23  ;;  %1391 = vrot.lane.b32.xlu0 %v1370_v42, %s4144_s23  ;;  %v3754_v47 = vadd.f32 -0.9, %v1135_v43  ;;  %v1794_v42 = vrot.slane %v1778_v5, 7  ;;  %v1117_v3 = vadd.f32 %v5359_v60, %v1015_v51  ;;  %v6425_v43 = vld [vmem:[#allocation40_spill] sm:$0xff]  ;;  %v1480_v14 = vrot.slane %v1464_v13, 7 }
 0x40c   : > { %v1779_v52 = vadd.f32 %v5444_v55, %v6425_v43 }
 0x40d   : > { %v5548_v21 = vpop.permute.xlu1 %3029  ;;  %v5550_v7 = vpop.permute.xlu0 %3407  ;;  %4020 = vtanh.f32 %v3754_v47  ;;  %v1128_v60 = vadd.f32 %v6417_v44, %v1117_v3 }
 0x40e   : > { %v1795_v55 = vrot.slane %v1779_v52, 7 }
 0x40f   : > { %1516 = vrot.lane.b32.xlu1 %v1479_v22, %s4150_s6  ;;  %2130 = vrot.lane.b32.xlu0 %v2109_v0, %s4144_s23  ;;  %v2110_v22 = vadd.f32 %v5454_v18, %v6353_v27 }
 0x411   : > { %v5556_v53 = vpop.permute.xlu1 %2440  ;;  %v5558_v8 = vpop.permute.xlu0 %3031 }
 0x412   : > { %6423 = vst [vmem:[#allocation68_spill] sm:$0xff] %v5558_v8 }
 0x413   : > { %1393 = vrot.lane.b32.xlu1 %v1371_v63, %s4144_s23  ;;  %1831 = vrot.lane.b32.xlu0 %v1794_v42, %s4144_s23  ;;  %v1016_v63 = vadd.f32 %v6427_v54, %v6407_v15  ;;  %v1136_v42 = vmax.f32 %v1128_v60, 0.0  ;;  %v1780_v54 = vadd.f32 %v5470_v32, %v4374_v41 }
 0x415   : > { %v2775_v5 = vpop.permute.xlu1 %2774  ;;  %v5571_v0 = vpop.permute.xlu0 %3559  ;;  %v1118_v45 = vadd.f32 %v5380_v61, %v1016_v63  ;;  %v3755_v13 = vadd.f32 -0.9, %v1136_v42  ;;  %v2111_v63 = vadd.f32 %v5480_v34, %v4374_v41 }
 0x416   : > { %6426 = vst [vmem:[#allocation6_spill] sm:$0xff] %v5571_v0  ;;  %v4019_v61 = vpop.eup %4018 }
 0x417   : > { %2132 = vrot.lane.b32.xlu1 %v2110_v22, %s4144_s23  ;;  %1395 = vrot.lane.b32.xlu0 %v5456_v29, %s4144_s23  ;;  %v1129_v51 = vadd.f32 %v6417_v44, %v1118_v45  ;;  %v1481_v22 = vrot.slane %v5468_v36, 7  ;;  %4022 = vtanh.f32 %v3755_v13 }
 0x419   : > { %v5580_v47 = vpop.permute.xlu1 %3082  ;;  %v5582_v18 = vpop.permute.xlu0 %2442  ;;  %v1137_v52 = vmax.f32 %v1129_v51, 0.0  ;;  %v1796_v51 = vrot.slane %v1780_v54, 7 }
 0x41a   : > { %v4021_v45 = vpop.eup %4020 }
 0x41b   : > { %1833 = vrot.lane.b32.xlu1 %v1795_v55, %s4144_s23  ;;  %1518 = vrot.lane.b32.xlu0 %v1480_v14, %s4150_s6  ;;  %v6428_v14 = vld [vmem:[#allocation44_spill] sm:$0xff]  ;;  %v3756_v42 = vadd.f32 -0.9, %v1137_v52 }
 0x41c   : > { %v5602_v55 = vadd.f32 %v6428_v14, %v6363_v35  ;;  %v6430_v14 = vld [vmem:[#allocation72_spill] sm:$0xff] }
 0x41d   : > { %v5588_v29 = vpop.permute.xlu1 %2686  ;;  %v5590_v3 = vpop.permute.xlu0 %2776  ;;  %v1017_v0 = vadd.f32 %v6430_v14, %v6414_v31  ;;  %4024 = vtanh.f32 %v3756_v42 }
 0x41e   : > { %v3102_v32 = vadd.f32 %v5507_v57, %v5602_v55  ;;  %v2794_v57 = vadd.f32 %v5494_v2, %v6361_v59  ;;  %v3428_v59 = vadd.f32 %v5550_v7, %v5294_v46  ;;  %v2795_v2 = vadd.f32 %v2775_v5, %v6366_v58  ;;  %v6432_v7 = vld [vmem:[#allocation43_spill] sm:$0xff] }
 0x41f   : > { %1520 = vrot.lane.b32.xlu1 %v1481_v22, %s4150_s6  ;;  %1167 = vrot.lane.b32.xlu0 %v4019_v61, %s4149_s28  ;;  %v6429_v22 = vld [vmem:[#allocation17_spill] sm:$0xff]  ;;  %v1119_v13 = vadd.f32 %v5418_v6, %v1017_v0 }
 0x420   : > { %v2704_v34 = vadd.f32 %v5523_v25, %v6429_v22  ;;  %v3118_v52 = vrot.slane %v3102_v32, 7  ;;  %v3427_v25 = vadd.f32 %v5534_v49, %v5247_v1  ;;  %v2810_v42 = vrot.slane %v2794_v57, 7 }
 0x421   : > { %v5598_v60 = vpop.permute.xlu1 %3409  ;;  %v3085_v36 = vpop.permute.xlu0 %3084  ;;  %v1130_v6 = vadd.f32 %v6417_v44, %v1119_v13  ;;  %v2811_v14 = vrot.slane %v2795_v2, 7  ;;  %v5645_v57 = vadd.f32 %v6432_v7, %v6370_v33 }
 0x423   : > { %1169 = vrot.lane.b32.xlu1 %v4021_v45, %s4149_s28  ;;  %2134 = vrot.lane.b32.xlu0 %v2111_v63, %s4144_s23  ;;  %v1018_v45 = vadd.f32 %v4820_v56, %v6334_v4  ;;  %v1138_v56 = vmax.f32 %v1130_v6, 0.0 }
 0x425   : > { %v5610_v61 = vpop.permute.xlu1 %3033  ;;  %v5612_v8 = vpop.permute.xlu0 %2688  ;;  %v1120_v0 = vadd.f32 %v5446_v62, %v1018_v45  ;;  %v3757_v58 = vadd.f32 -0.9, %v1138_v56 }
 0x427   : > { %2721 = vrot.lane.b32.xlu1 %v2704_v34, %s4144_s23  ;;  %1835 = vrot.lane.b32.xlu0 %v1796_v51, %s4144_s23  ;;  %v1131_v32 = vadd.f32 %v6417_v44, %v1120_v0  ;;  %v4023_v34 = vpop.eup %4022  ;;  %4026 = vtanh.f32 %v3757_v58  ;;  %v2796_v58 = vadd.f32 %v5590_v3, %v6373_v16 }
 0x429   : > { %v5623_v54 = vpop.permute.xlu1 %3561  ;;  %v3412_v63 = vpop.permute.xlu0 %3411  ;;  %v1139_v5 = vmax.f32 %v1131_v32, 0.0 }
 0x42a   : > { %v4025_v0 = vpop.eup %4024 }
 0x42b   : > { %3444 = vrot.lane.b32.xlu0 %v3427_v25, %s4144_s23  ;;  %3151 = vrot.lane.b32.xlu1 %v3118_v52, %s4144_s23  ;;  %v2705_v52 = vadd.f32 %v5536_v19, %v6363_v35  ;;  %v3103_v25 = vadd.f32 %v5580_v47, %v5645_v57  ;;  %v3758_v2 = vadd.f32 -0.9, %v1139_v5  ;;  %v1121_v19 = vadd.f32 %v5492_v20, %v6355_v26 }
 0x42c   : > { %v2706_v47 = vadd.f32 %v5588_v29, %v6370_v33  ;;  %v3429_v26 = vadd.f32 %v5598_v60, %v5318_v50 }
 0x42d   : > { %v5634_v49 = vpop.permute.xlu1 %2444  ;;  %v5636_v51 = vpop.permute.xlu0 %3035  ;;  %v3119_v56 = vrot.slane %v3103_v25, 7  ;;  %4028 = vtanh.f32 %v3758_v2  ;;  %v1132_v7 = vadd.f32 %v6417_v44, %v1121_v19  ;;  %v2362_v19 = vadd.f32 %v4866_v9, %v6429_v22 }
 0x42e   : > { %6431 = vst [vmem:[#allocation7_spill] sm:$0xff] %v5636_v51 }
 0x42f   : > { %2843 = vrot.lane.b32.xlu0 %v2810_v42, %s4150_s6  ;;  %3446 = vrot.lane.b32.xlu1 %v3428_v59, %s4144_s23  ;;  %v6433_v42 = vld [vmem:[#allocation48_spill] sm:$0xff] }
 0x430   : > { %v5657_v59 = vadd.f32 %v6433_v42, %v6374_v40  ;;  %v2812_v42 = vrot.slane %v2796_v58, 7 }
 0x431   : > { %v2779_v62 = vpop.permute.xlu1 %2778  ;;  %v5641_v13 = vpop.permute.xlu0 %3563 }
 0x432   : > { %v3104_v32 = vadd.f32 %v3085_v36, %v5657_v59  ;;  %v6435_v36 = vld [vmem:[#allocation50_spill] sm:$0xff]  ;;  %v2797_v16 = vadd.f32 %v2779_v62, %v6376_v10  ;;  %v6438_v10 = vld [vmem:[#allocation47_spill] sm:$0xff] }
 0x433   : > { %1171 = vrot.lane.b32.xlu0 %v4023_v34, %s4149_s28  ;;  %2845 = vrot.lane.b32.xlu1 %v2811_v14, %s4150_s6 }
 0x434   : > { %v3120_v20 = vrot.slane %v3104_v32, 7  ;;  %v2463_v32 = vadd.f32 %v5556_v53, %v2362_v19 }
 0x435   : > { %v3087_v45 = vpop.permute.xlu1 %3086  ;;  %v5653_v6 = vpop.permute.xlu0 %2446 }
 0x437   : > { %2723 = vrot.lane.b32.xlu0 %v2705_v52, %s4144_s23  ;;  %1173 = vrot.lane.b32.xlu1 %v4025_v0, %s4149_s28  ;;  %v6434_v52 = vld [vmem:[#allocation25_spill] sm:$0xff]  ;;  %v1140_v0 = vmax.f32 %v1132_v7, 0.0  ;;  %v2813_v7 = vrot.slane %v2797_v16, 7 }
 0x438   : > { %v5675_v25 = vadd.f32 %v6435_v36, %v6434_v52  ;;  %v5692_v62 = vadd.f32 %v6438_v10, %v6434_v52 }
 0x439   : > { %v2691_v34 = vpop.permute.xlu1 %2690  ;;  %v2781_v14 = vpop.permute.xlu0 %2780 }
 0x43a   : > { %6436 = vst [vmem:[#allocation31_spill] sm:$0xff] %v5675_v25  ;;  %v3430_v2 = vadd.f32 %v3412_v63, %v5675_v25  ;;  %6439 = vst [vmem:[#allocation11_spill] sm:$0xff] %v5692_v62  ;;  %v3105_v53 = vadd.f32 %v3087_v45, %v5692_v62  ;;  %v6444_v45 = vld [vmem:[#allocation49_spill] sm:$0xff] }
 0x43b   : > { %3153 = vrot.lane.b32.xlu0 %v3119_v56, %s4144_s23  ;;  %2725 = vrot.lane.b32.xlu1 %v2706_v47, %s4144_s23  ;;  %v4027_v56 = vpop.eup %4026  ;;  %v3759_v47 = vadd.f32 -0.9, %v1140_v0 }
 0x43c   : > { %v4029_v9 = vpop.eup %4028 }
 0x43d   : > { %v3414_v5 = vpop.permute.xlu1 %3413  ;;  %v3089_v29 = vpop.permute.xlu0 %3088  ;;  %4030 = vtanh.f32 %v3759_v47  ;;  %v2708_v47 = vadd.f32 %v2691_v34, %v6434_v52  ;;  %v2364_v34 = vadd.f32 %v4944_v30, %v6370_v33  ;;  %v2366_v30 = vadd.f32 %v5012_v11, %v6434_v52 }
 0x43f   : > { %3448 = vrot.lane.b32.xlu0 %v3429_v26, %s4144_s23  ;;  %3155 = vrot.lane.b32.xlu1 %v3120_v20, %s4144_s23  ;;  %v2471_v26 = vadd.f32 %v2463_v32, %v6417_v44  ;;  %v2707_v20 = vadd.f32 %v5612_v8, %v6374_v40 }
 0x441   : > { %v5681_v3 = vpop.permute.xlu1 %3037  ;;  %v5683_v60 = vpop.permute.xlu0 %2692  ;;  %v2479_v19 = vmax.f32 %v2471_v26, 0.0 }
 0x442   : > { %6437 = vst [vmem:[#allocation9_spill] sm:$0xff] %v5681_v3 }
 0x443   : > { %2847 = vrot.lane.b32.xlu0 %v2812_v42, %s4150_s6  ;;  %3450 = vrot.lane.b32.xlu1 %v3430_v2, %s4144_s23  ;;  %v6441_v42 = vld [vmem:[#allocation27_spill] sm:$0xff]  ;;  %v6442_v2 = vld [vmem:[#allocation52_spill] sm:$0xff] }
 0x444   : > { %v5704_v16 = vadd.f32 %v6442_v2, %v6441_v42  ;;  %v5714_v10 = vadd.f32 %v6444_v45, %v6441_v42 }
 0x445   : > { %v2449_v58 = vpop.permute.xlu1 %2448  ;;  %v3416_v63 = vpop.permute.xlu0 %3415 }
 0x446   : > { %6443 = vst [vmem:[#allocation13_spill] sm:$0xff] %v5704_v16  ;;  %v3106_v32 = vadd.f32 %v3089_v29, %v5704_v16  ;;  %6445 = vst [vmem:[#allocation8_spill] sm:$0xff] %v5714_v10  ;;  %v6446_v29 = vld [vmem:[#allocation93_spill] sm:$0xff] }
 0x447   : > { %1175 = vrot.lane.b32.xlu0 %v4027_v56, %s4149_s28  ;;  %2849 = vrot.lane.b32.xlu1 %v2813_v7, %s4150_s6  ;;  %v3121_v56 = vrot.slane %v3105_v53, 7  ;;  %v3050_v45 = vadd.f32 %v6446_v29, %v6379_v28  ;;  %v6448_v28 = vld [vmem:[#allocation99_spill] sm:$0xff]  ;;  %v6451_v29 = vld [vmem:[#allocation28_spill] sm:$0xff] }
 0x448   : > { %v3122_v26 = vrot.slane %v3106_v32, 7 }
 0x449   : > { %v2783_v36 = vpop.permute.xlu1 %2782  ;;  %v5700_v0 = vpop.permute.xlu0 %3039 }
 0x44a   : > { %6440 = vst [vmem:[#allocation33_spill] sm:$0xff] %v5700_v0  ;;  %v4031_v3 = vpop.eup %4030  ;;  %v2799_v16 = vadd.f32 %v2783_v36, %v6451_v29  ;;  %v6456_v36 = vld [vmem:[#allocation98_spill] sm:$0xff] }
 0x44b   : > { %2727 = vrot.lane.b32.xlu0 %v2707_v20, %s4144_s23  ;;  %1177 = vrot.lane.b32.xlu1 %v4029_v9, %s4149_s28  ;;  %v3809_v20 = vadd.f32 -0.9, %v2479_v19  ;;  %v3431_v9 = vadd.f32 %v3414_v5, %v5714_v10  ;;  %v2798_v19 = vadd.f32 %v2781_v14, %v6382_v38  ;;  %v6447_v5 = vld [vmem:[#allocation54_spill] sm:$0xff]  ;;  %v2467_v38 = vadd.f32 %v2449_v58, %v2366_v30  ;;  %v6450_v14 = vld [vmem:[#allocation96_spill] sm:$0xff] }
 0x44d   : > { %v3091_v8 = vpop.permute.xlu1 %3090  ;;  %v5710_v7 = vpop.permute.xlu0 %2450  ;;  %4032 = vtanh.f32 %v3809_v20  ;;  %v2475_v30 = vadd.f32 %v2467_v38, %v6417_v44 }
 0x44f   : > { %3157 = vrot.lane.b32.xlu0 %v3121_v56, %s4144_s23  ;;  %2729 = vrot.lane.b32.xlu1 %v2708_v47, %s4144_s23  ;;  %v2465_v56 = vadd.f32 %v5634_v49, %v2364_v34  ;;  %v3432_v47 = vadd.f32 %v3416_v63, %v6447_v5  ;;  %v6449_v49 = vld [vmem:[#allocation53_spill] sm:$0xff]  ;;  %v2363_v63 = vadd.f32 %v6450_v14, %v6363_v35  ;;  %v2814_v34 = vrot.slane %v2798_v19, 7  ;;  %v6457_v14 = vld [vmem:[#allocation51_spill] sm:$0xff] }
 0x450   : > { %v2019_v20 = vadd.f32 %v6449_v49, %v6448_v28  ;;  %v5757_v19 = vadd.f32 %v6456_v36, %v5675_v25  ;;  %v2709_v28 = vadd.f32 %v5683_v60, %v6441_v42  ;;  %v2815_v49 = vrot.slane %v2799_v16, 7  ;;  %v6461_v36 = vld [vmem:[#allocation63_spill] sm:$0xff]  ;;  %v6463_v16 = vld [vmem:[#allocation5_spill] sm:$0xff] }
 0x451   : > { %v2695_v53 = vpop.permute.xlu1 %2694  ;;  %v5719_v2 = vpop.permute.xlu0 %2784  ;;  %v2464_v58 = vadd.f32 %v5582_v18, %v2363_v63  ;;  %v3107_v29 = vadd.f32 %v3091_v8, %v6457_v14  ;;  %v6458_v63 = vld [vmem:[#allocation65_spill] sm:$0xff]  ;;  %v6464_v8 = vld [vmem:[#allocation62_spill] sm:$0xff] }
 0x452   : > { %v1265_v25 = vadd.f32 %v6464_v8, %v6463_v16 }
 0x453   : > { %3452 = vrot.lane.b32.xlu0 %v3431_v9, %s4144_s23  ;;  %3159 = vrot.lane.b32.xlu1 %v3122_v26, %s4144_s23  ;;  %v3173_v9 = vadd.f32 %v5219_v48, %v3050_v45  ;;  %v2473_v26 = vadd.f32 %v2465_v56, %v6417_v44  ;;  %v6453_v48 = vld [vmem:[#allocation29_spill] sm:$0xff]  ;;  %v2035_v56 = vrot.slane %v2019_v20, 1  ;;  %v2472_v14 = vadd.f32 %v2464_v58, %v6417_v44 }
 0x455   : > { %v5730_v32 = vpop.permute.xlu1 %3417  ;;  %v3093_v0 = vpop.permute.xlu0 %3092  ;;  %v3181_v45 = vadd.f32 %v3173_v9, %v6453_v48  ;;  %v2481_v9 = vmax.f32 %v2473_v26, 0.0  ;;  %v6462_v26 = vld [vmem:[#allocation57_spill] sm:$0xff] }
 0x456   : > { %v5773_v60 = vadd.f32 %v6462_v26, %v6447_v5  ;;  %v3108_v26 = vadd.f32 %v3093_v0, %v4374_v41 }
 0x457   : > { %1179 = vrot.lane.b32.xlu0 %v4031_v3, %s4149_s28  ;;  %3454 = vrot.lane.b32.xlu1 %v3432_v47, %s4144_s23  ;;  %v6454_v3 = vld [vmem:[#allocation32_spill] sm:$0xff] }
 0x458   : > { %v6455_v47 = vld [vmem:[#allocation60_spill] sm:$0xff] }
 0x459   : > { %v5743_v51 = vpop.permute.xlu1 %3041  ;;  %v1897_v11 = vpop.permute.xlu0 %1896  ;;  %v5750_v52 = vadd.f32 %v6455_v47, %v6454_v3  ;;  %v3189_v47 = vmax.f32 %v3181_v45, 0.0  ;;  %v6465_v45 = vld [vmem:[#allocation64_spill] sm:$0xff] }
 0x45a   : > { %6452 = vst [vmem:[#allocation35_spill] sm:$0xff] %v5743_v51  ;;  %3784 = vst.msk [vmem:[%s5176_s21 + $0x80] sm:$0xff] %vm1189_vm15, %v1897_v11  ;;  %v4033_v5 = vpop.eup %4032 }
 0x45b   : > { %2851 = vrot.lane.b32.xlu0 %v2814_v34, %s4150_s6  ;;  %2733 = vrot.lane.b32.xlu1 %v2695_v53, %s4144_s23  ;;  %v6459_v34 = vld [vmem:[#allocation61_spill] sm:$0xff]  ;;  %v2036_v38 = vrot.slane %v5750_v52, 1 }
 0x45c   : > { %v5765_v3 = vadd.f32 %v6459_v34, %v6458_v63  ;;  %v6460_v53 = vld [vmem:[#allocation101_spill] sm:$0xff]  ;;  %v3529_v63 = vrot.slane %v5757_v19, 7  ;;  %v2483_v34 = vmax.f32 %v2475_v30, 0.0  ;;  %v6467_v19 = vld [vmem:[#allocation83_spill] sm:$0xff]  ;;  %v1281_v30 = vrot.slane %v1265_v25, 1 }
 0x45d   : > { %v2453_v11 = vpop.permute.xlu1 %2452  ;;  %v1384_v18 = vpop.permute.xlu0 %1383  ;;  %v2365_v20 = vadd.f32 %v6460_v53, %v6374_v40  ;;  %v3811_v53 = vadd.f32 -0.9, %v2481_v9  ;;  %v1266_v62 = vadd.f32 %v6467_v19, %v6396_v23  ;;  %v2480_v9 = vmax.f32 %v2472_v14, 0.0  ;;  %v6470_v40 = vld [vmem:[#allocation18_spill] sm:$0xff] }
 0x45e   : > { %v2469_v51 = vadd.f32 %v2453_v11, %v6461_v36  ;;  %v2367_v11 = vadd.f32 %v6465_v45, %v6441_v42  ;;  %v3123_v36 = vrot.slane %v3107_v29, 7  ;;  %v3840_v45 = vadd.f32 -0.9, %v3189_v47  ;;  %v6469_v29 = vld [vmem:[#allocation86_spill] sm:$0xff] }
 0x45f   : > { %2731 = vrot.lane.b32.xlu0 %v2709_v28, %s4144_s23  ;;  %2853 = vrot.lane.b32.xlu1 %v2815_v49, %s4150_s6  ;;  %v2466_v52 = vadd.f32 %v5653_v6, %v2365_v20  ;;  %v6466_v28 = vld [vmem:[#allocation73_spill] sm:$0xff]  ;;  %v3531_v6 = vrot.slane %v5773_v60, 7  ;;  %4034 = vtanh.f32 %v3811_v53  ;;  %v3124_v47 = vrot.slane %v3108_v26, 7 }
 0x460   : > { %v2477_v16 = vadd.f32 %v2469_v51, %v6417_v44  ;;  %v5788_v49 = vadd.f32 %v6466_v28, %v5714_v10  ;;  %v2468_v0 = vadd.f32 %v5710_v7, %v2367_v11  ;;  %v6468_v51 = vld [vmem:[#allocation24_spill] sm:$0xff]  ;;  %v3813_v10 = vadd.f32 -0.9, %v2483_v34 }
 0x461   : > { %v1509_v8 = vpop.permute.xlu1 %1508  ;;  %v2123_v58 = vpop.permute.xlu0 %2122  ;;  %v1720_v20 = vadd.f32 %v6469_v29, %v6468_v51  ;;  %v2474_v28 = vadd.f32 %v2466_v52, %v6417_v44  ;;  %v1282_v11 = vrot.slane %v1266_v62, 1  ;;  %4036 = vtanh.f32 %v3840_v45  ;;  %v6473_v29 = vld [vmem:[#allocation4_spill] sm:$0xff] }
 0x462   : > { %v2145_v42 = vadd.f32 %v2123_v58, %v2035_v56  ;;  %v2816_v56 = vrot.slane %v5719_v2, 7  ;;  %v2485_v25 = vmax.f32 %v2477_v16, 0.0  ;;  %v3530_v7 = vrot.slane %v5788_v49, 7 }
 0x463   : > { %3161 = vrot.lane.b32.xlu0 %v3123_v36, %s4144_s23  ;;  %2512 = vrot.lane.b32.xlu1 %v4033_v5, %s4149_s28  ;;  %v6471_v5 = vld [vmem:[#allocation37_spill] sm:$0xff]  ;;  %v3810_v19 = vadd.f32 -0.9, %v2480_v9  ;;  %v2476_v51 = vadd.f32 %v2468_v0, %v6417_v44  ;;  %v1406_v52 = vadd.f32 %v1384_v18, %v1281_v30  ;;  %4038 = vtanh.f32 %v3813_v10  ;;  %v6472_v44 = vld [vmem:[#allocation74_spill] sm:$0xff] }
 0x464   : > { %v2263_v23 = vadd.f32 %v6470_v40, %v2145_v42  ;;  %v2482_v40 = vmax.f32 %v2474_v28, 0.0  ;;  %v3433_v53 = vadd.f32 %v5730_v32, %v4374_v41  ;;  %v3815_v62 = vadd.f32 -0.9, %v2485_v25 }
 0x465   : > { %v1386_v14 = vpop.permute.xlu1 %1385  ;;  %v1824_v58 = vpop.permute.xlu0 %1823  ;;  %v1531_v26 = vadd.f32 %v1509_v8, %v1406_v52  ;;  %v1267_v18 = vadd.f32 %v6472_v44, %v6401_v24  ;;  %4040 = vtanh.f32 %v3810_v19  ;;  %v2484_v28 = vmax.f32 %v2476_v51, 0.0  ;;  %v6475_v8 = vld [vmem:[#allocation42_spill] sm:$0xff]  ;;  %v6477_v24 = vld [vmem:[#allocation79_spill] sm:$0xff] }
 0x466   : > { %v2271_v36 = vadd.f32 %v6471_v5, %v2263_v23  ;;  %v1846_v34 = vadd.f32 %v1824_v58, %v1720_v20  ;;  %v1407_v2 = vadd.f32 %v1386_v14, %v1282_v11  ;;  %v6474_v20 = vld [vmem:[#allocation87_spill] sm:$0xff]  ;;  %v3812_v32 = vadd.f32 -0.9, %v2482_v40 }
 0x467   : > { %2855 = vrot.lane.b32.xlu0 %v2816_v56, %s4150_s6  ;;  %3163 = vrot.lane.b32.xlu1 %v3124_v47, %s4144_s23  ;;  %v1721_v10 = vadd.f32 %v6474_v20, %v6473_v29  ;;  %v6476_v47 = vld [vmem:[#allocation30_spill] sm:$0xff]  ;;  %v3814_v40 = vadd.f32 -0.9, %v2484_v28  ;;  %v6481_v20 = vld [vmem:[#allocation19_spill] sm:$0xff] }
 0x468   : > { %v2279_v42 = vmax.f32 %v2271_v36, 0.0  ;;  %v1857_v16 = vadd.f32 %v6453_v48, %v1846_v34  ;;  %v1542_v14 = vadd.f32 %v6476_v47, %v1531_v26  ;;  %v1283_v36 = vrot.slane %v1267_v18, 1  ;;  %v6480_v29 = vld [vmem:[#allocation26_spill] sm:$0xff] }
 0x469   : > { %v2125_v49 = vpop.permute.xlu1 %2124  ;;  %v1511_v45 = vpop.permute.xlu0 %1510  ;;  %v2037_v34 = vrot.slane %v5765_v3, 1  ;;  %v6478_v3 = vld [vmem:[#allocation38_spill] sm:$0xff] }
 0x46a   : > { %v3793_v30 = vadd.f32 -0.9, %v2279_v42  ;;  %v2146_v9 = vadd.f32 %v2125_v49, %v2036_v38  ;;  %v1532_v0 = vadd.f32 %v1511_v45, %v1407_v2  ;;  %v1865_v23 = vmax.f32 %v1857_v16, 0.0 }
 0x46b   : > { %3456 = vrot.lane.b32.xlu0 %v3433_v53, %s4144_s23  ;;  %3565 = vrot.lane.b32.xlu1 %v3529_v63, %s4150_s6  ;;  %v3516_v38 = vadd.f32 %v6477_v24, %v4374_v41  ;;  %v5823_v63 = vld [vmem:[%s6108_s4] ss:$0 sm:$0xff]  ;;  %v1550_v26 = vmax.f32 %v1542_v14, 0.0  ;;  %v1268_v18 = vadd.f32 %v6478_v3, %v6407_v15 }
 0x46c   : > { %4042 = vtanh.f32 %v3793_v30  ;;  %v2264_v56 = vadd.f32 %v6475_v8, %v2146_v9  ;;  %v1543_v25 = vadd.f32 %v6476_v47, %v1532_v0  ;;  %v3777_v58 = vadd.f32 -0.9, %v1865_v23  ;;  %v4035_v44 = vpop.eup %4034  ;;  %v6482_v8 = vld [vmem:[#allocation92_spill] sm:$0xff] }
 0x46d   : > { %4044 = vtanh.f32 %v3815_v62  ;;  %v1826_v11 = vpop.permute.xlu1 %1825  ;;  %v1388_v5 = vpop.permute.xlu0 %1387  ;;  %v3532_v62 = vrot.slane %v3516_v38, 7  ;;  %v1284_v38 = vrot.slane %v1268_v18, 1  ;;  %v6485_v18 = vld [vmem:[#allocation46_spill] sm:$0xff] }
 0x46e   : > { %v2272_v19 = vadd.f32 %v5823_v63, %v2264_v56  ;;  %v1551_v51 = vmax.f32 %v1543_v25, 0.0  ;;  %v1847_v52 = vadd.f32 %v1826_v11, %v1721_v10  ;;  %4046 = vtanh.f32 %v3812_v32  ;;  %v4037_v9 = vpop.eup %4036 }
 0x46f   : > { %3567 = vrot.lane.b32.xlu0 %v3530_v7, %s4150_s6  ;;  %3569 = vrot.lane.b32.xlu1 %v3531_v6, %s4150_s6  ;;  %v1408_v53 = vadd.f32 %v1388_v5, %v1283_v36  ;;  %4048 = vtanh.f32 %v3777_v58  ;;  %v6479_v6 = vld [vmem:[#allocation75_spill] sm:$0xff]  ;;  %v1722_v10 = vadd.f32 %v6481_v20, %v6480_v29  ;;  %v3761_v32 = vadd.f32 -0.9, %v1550_v26 }
 0x470   : > { %v2280_v42 = vmax.f32 %v2272_v19, 0.0  ;;  %v1858_v2 = vadd.f32 %v6453_v48, %v1847_v52  ;;  %v3762_v16 = vadd.f32 -0.9, %v1551_v51  ;;  %4050 = vtanh.f32 %v3814_v40  ;;  %v4039_v23 = vpop.eup %4038  ;;  %v6483_v52 = vld [vmem:[#allocation70_spill] sm:$0xff] }
 0x471   : > { %v1513_v49 = vpop.permute.xlu1 %1512  ;;  %v2127_v45 = vpop.permute.xlu0 %2126  ;;  %v2022_v0 = vadd.f32 %v6479_v6, %v6418_v12 }
 0x472   : > { %v3794_v7 = vadd.f32 -0.9, %v2280_v42  ;;  %v1533_v30 = vadd.f32 %v1513_v49, %v1408_v53  ;;  %v2147_v60 = vadd.f32 %v2127_v45, %v2037_v34  ;;  %v1866_v28 = vmax.f32 %v1858_v2, 0.0  ;;  %v4041_v12 = vpop.eup %4040  ;;  %v6484_v45 = vld [vmem:[#allocation20_spill] sm:$0xff] }
 0x473   : > { %3571 = vrot.lane.b32.xlu0 %v3532_v62, %s4150_s6  ;;  %2516 = vrot.lane.b32.xlu1 %v4035_v44, %s4149_s28  ;;  %v2038_v11 = vrot.slane %v2022_v0, 1  ;;  %v1269_v34 = vadd.f32 %v6483_v52, %v6414_v31  ;;  %v1723_v44 = vadd.f32 %v6484_v45, %v5511_v17  ;;  %v6490_v45 = vld [vmem:[#allocation85_spill] sm:$0xff] }
 0x474   : > { %4052 = vtanh.f32 %v3794_v7  ;;  %v1544_v15 = vadd.f32 %v6476_v47, %v1533_v30  ;;  %v2265_v56 = vadd.f32 %v6482_v8, %v2147_v60  ;;  %v3778_v5 = vadd.f32 -0.9, %v1866_v28  ;;  %v6486_v60 = vld [vmem:[#allocation76_spill] sm:$0xff] }
 0x475   : > { %4054 = vtanh.f32 %v3762_v16  ;;  %v1390_v25 = vpop.permute.xlu1 %1389  ;;  %v1828_v24 = vpop.permute.xlu0 %1827  ;;  %v2023_v6 = vadd.f32 %v6486_v60, %v6422_v37  ;;  %v1285_v0 = vrot.slane %v1269_v34, 1  ;;  %v6488_v34 = vld [vmem:[#allocation21_spill] sm:$0xff] }
 0x476   : > { %v1848_v14 = vadd.f32 %v1828_v24, %v1722_v10  ;;  %v2273_v58 = vadd.f32 %v5823_v63, %v2265_v56  ;;  %v1409_v36 = vadd.f32 %v1390_v25, %v1284_v38  ;;  %4056 = vtanh.f32 %v3761_v32 }
 0x477   : > { %3221 = vrot.lane.b32.xlu0 %v4037_v9, %s4146_s25  ;;  %2520 = vrot.lane.b32.xlu1 %v4039_v23, %s4149_s28  ;;  %v1552_v40 = vmax.f32 %v1544_v15, 0.0  ;;  %4058 = vtanh.f32 %v3778_v5  ;;  %v2039_v38 = vrot.slane %v2023_v6, 1 }
 0x478   : > { %v1859_v19 = vadd.f32 %v6453_v48, %v1848_v14  ;;  %v2281_v42 = vmax.f32 %v2273_v58, 0.0 }
 0x479   : > { %v4043_v51 = vpop.eup %4042  ;;  %v2129_v2 = vpop.permute.xlu1 %2128  ;;  %v3763_v29 = vadd.f32 -0.9, %v1552_v40  ;;  %v1724_v40 = vadd.f32 %v6488_v34, %v5540_v39 }
 0x47a   : > { %v1515_v53 = vpop.permute.xlu0 %1514  ;;  %v4045_v62 = vpop.eup %4044  ;;  %3801 = vst.msk [vmem:[%s5176_s21 + $0xc8] sm:$0xff] %vm1189_vm15, %v4043_v51  ;;  %v1867_v26 = vmax.f32 %v1859_v19, 0.0  ;;  %v2148_v16 = vadd.f32 %v2129_v2, %v2038_v11  ;;  %v3795_v3 = vadd.f32 -0.9, %v2281_v42  ;;  %v6487_v19 = vld [vmem:[#allocation90_spill] sm:$0xff] }
 0x47b   : > { %v1534_v49 = vadd.f32 %v1515_v53, %v1409_v36  ;;  %2514 = vrot.lane.b32.xlu0 %v4041_v12, %s4149_s28  ;;  %2524 = vrot.lane.b32.xlu1 %v4045_v62, %s4149_s28  ;;  %v4047_v9 = vpop.eup %4046  ;;  %v2024_v51 = vadd.f32 %v6487_v19, %v6353_v27  ;;  %v6489_v53 = vld [vmem:[#allocation45_spill] sm:$0xff]  ;;  %v1270_v27 = vadd.f32 %v6490_v45, %v6334_v4 }
 0x47c   : > { %v3779_v31 = vadd.f32 -0.9, %v1867_v26  ;;  %v2266_v7 = vadd.f32 %v6485_v18, %v2148_v16  ;;  %4060 = vtanh.f32 %v3795_v3  ;;  %v4049_v10 = vpop.eup %4048 }
 0x47d   : > { %v1545_v30 = vadd.f32 %v6476_v47, %v1534_v49  ;;  %v1830_v20 = vpop.permute.xlu1 %1829  ;;  %v4051_v15 = vpop.eup %4050  ;;  %v2040_v39 = vrot.slane %v2024_v51, 1 }
 0x47e   : > { %v1392_v17 = vpop.permute.xlu0 %1391  ;;  %4062 = vtanh.f32 %v3779_v31  ;;  %v2274_v28 = vadd.f32 %v5823_v63, %v2266_v7  ;;  %v1849_v32 = vadd.f32 %v1830_v20, %v1723_v44 }
 0x47f   : > { %v1553_v23 = vmax.f32 %v1545_v30, 0.0  ;;  %2518 = vrot.lane.b32.xlu0 %v4047_v9, %s4149_s28  ;;  %1898 = vrot.lane.b32.xlu1 %v4049_v10, %s4146_s25  ;;  %v1410_v25 = vadd.f32 %v1392_v17, %v1285_v0  ;;  %4064 = vtanh.f32 %v3763_v29  ;;  %v1286_v29 = vrot.slane %v1270_v27, 1 }
 0x480   : > { %v2282_v8 = vmax.f32 %v2274_v28, 0.0  ;;  %v1860_v37 = vadd.f32 %v6453_v48, %v1849_v32  ;;  %v6491_v28 = vld [vmem:[#allocation22_spill] sm:$0xff] }
 0x481   : > { %v3764_v56 = vadd.f32 -0.9, %v1553_v23  ;;  %v4053_v24 = vpop.eup %4052  ;;  %v1517_v14 = vpop.permute.xlu1 %1516  ;;  %v1725_v23 = vadd.f32 %v6491_v28, %v6425_v43  ;;  %v6494_v43 = vld [vmem:[#allocation91_spill] sm:$0xff] }
 0x482   : > { %v2131_v58 = vpop.permute.xlu0 %2130  ;;  %v4055_v12 = vpop.eup %4054  ;;  %3802 = vst.msk [vmem:[%s5176_s21 + $0xd0] sm:$0xff] %vm1189_vm15, %v4053_v24  ;;  %v3796_v11 = vadd.f32 -0.9, %v2282_v8  ;;  %v1868_v5 = vmax.f32 %v1860_v37, 0.0  ;;  %v1535_v36 = vadd.f32 %v1517_v14, %v1410_v25  ;;  %v6492_v8 = vld [vmem:[#allocation34_spill] sm:$0xff]  ;;  %v6493_v37 = vld [vmem:[#allocation15_spill] sm:$0xff] }
 0x483   : > { %4066 = vtanh.f32 %v3764_v56  ;;  %v2149_v52 = vadd.f32 %v2131_v58, %v2039_v38  ;;  %2522 = vrot.lane.b32.xlu0 %v4051_v15, %s4149_s28  ;;  %1585 = vrot.lane.b32.xlu1 %v4055_v12, %s4148_s27  ;;  %v4057_v49 = vpop.eup %4056  ;;  %v1287_v25 = vrot.slane %v6493_v37, 1 }
 0x484   : > { %4068 = vtanh.f32 %v3796_v11  ;;  %v3780_v42 = vadd.f32 -0.9, %v1868_v5  ;;  %v1546_v2 = vadd.f32 %v6476_v47, %v1535_v36  ;;  %v4059_v30 = vpop.eup %4058  ;;  %v2025_v36 = vadd.f32 %v6494_v43, %v4374_v41 }
 0x485   : > { %v2267_v62 = vadd.f32 %v6489_v53, %v2149_v52  ;;  %v1394_v26 = vpop.permute.xlu1 %1393 }
 0x486   : > { %v1832_v16 = vpop.permute.xlu0 %1831  ;;  %4070 = vtanh.f32 %v3780_v42  ;;  %v1554_v44 = vmax.f32 %v1546_v2, 0.0  ;;  %v1411_v32 = vadd.f32 %v1394_v26, %v1286_v29  ;;  %v2041_v45 = vrot.slane %v2025_v36, 1 }
 0x487   : > { %v1850_v3 = vadd.f32 %v1832_v16, %v1724_v40  ;;  %v2275_v31 = vadd.f32 %v5823_v63, %v2267_v62  ;;  %1583 = vrot.lane.b32.xlu0 %v4057_v49, %s4148_s27 }
 0x488   : > { %v3765_v18 = vadd.f32 -0.9, %v1554_v44 }
 0x489   : > { %v1861_v7 = vadd.f32 %v6453_v48, %v1850_v3  ;;  %v2283_v9 = vmax.f32 %v2275_v31, 0.0  ;;  %v2133_v60 = vpop.permute.xlu1 %2132  ;;  %v4061_v0 = vpop.eup %4060 }
 0x48a   : > { %v1396_v6 = vpop.permute.xlu0 %1395  ;;  %4072 = vtanh.f32 %v3765_v18  ;;  %v2150_v20 = vadd.f32 %v2133_v60, %v2040_v39  ;;  %3803 = vst.msk [vmem:[%s5176_s21 + $0xd8] sm:$0xff] %vm1189_vm15, %v4061_v0 }
 0x48b   : > { %v1869_v4 = vmax.f32 %v1861_v7, 0.0  ;;  %v4063_v17 = vpop.eup %4062  ;;  %v3797_v10 = vadd.f32 -0.9, %v2283_v9  ;;  %1900 = vrot.lane.b32.xlu0 %v4059_v30, %s4146_s25  ;;  %v1412_v51 = vadd.f32 %v1396_v6, %v1287_v25  ;;  %v6495_v9 = vld [vmem:[#allocation95_spill] sm:$0xff]  ;;  %v6496_v6 = vld [vmem:[#allocation88_spill] sm:$0xff] }
 0x48c   : > { %v2268_v56 = vadd.f32 %v6492_v8, %v2150_v20  ;;  %1902 = vrot.lane.b32.xlu1 %v4063_v17, %s4146_s25  ;;  %v4065_v14 = vpop.eup %4064  ;;  %v3344_v60 = vadd.f32 %v6495_v9, %v5247_v1  ;;  %v1726_v0 = vadd.f32 %v6496_v6, %v4374_v41  ;;  %v6498_v8 = vld [vmem:[#allocation94_spill] sm:$0xff]  ;;  %v6499_v1 = vld [vmem:[#allocation80_spill] sm:$0xff] }
 0x48d   : > { %v3781_v15 = vadd.f32 -0.9, %v1869_v4  ;;  %4074 = vtanh.f32 %v3797_v10  ;;  %v1834_v24 = vpop.permute.xlu1 %1833  ;;  %v6497_v4 = vld [vmem:[#allocation69_spill] sm:$0xff]  ;;  %v2607_v37 = vadd.f32 %v6499_v1, %v6429_v22 }
 0x48e   : > { %v1519_v38 = vpop.permute.xlu0 %1518  ;;  %v2276_v58 = vadd.f32 %v5823_v63, %v2268_v56  ;;  %v1851_v12 = vadd.f32 %v1834_v24, %v1725_v23  ;;  %v3345_v56 = vadd.f32 %v6498_v8, %v5294_v46  ;;  %v3360_v25 = vrot.slane %v3344_v60, 1 }
 0x48f   : > { %4076 = vtanh.f32 %v3781_v15  ;;  %v1536_v11 = vadd.f32 %v1519_v38, %v1411_v32  ;;  %1587 = vrot.lane.b32.xlu0 %v4065_v14, %s4148_s27  ;;  %v3051_v24 = vadd.f32 %v5548_v21, %v5602_v55  ;;  %v2623_v22 = vrot.slane %v2607_v37, 1 }
 0x490   : > { %v4067_v5 = vpop.eup %4066  ;;  %v2284_v19 = vmax.f32 %v2276_v58, 0.0  ;;  %v1862_v52 = vadd.f32 %v6453_v48, %v1851_v12  ;;  %v3361_v36 = vrot.slane %v3345_v56, 1 }
 0x491   : > { %v1547_v34 = vadd.f32 %v6476_v47, %v1536_v11  ;;  %1589 = vrot.lane.b32.xlu1 %v4067_v5, %s4148_s27  ;;  %v4069_v40 = vpop.eup %4068  ;;  %v1521_v42 = vpop.permute.xlu1 %1520 }
 0x492   : > { %v1168_v2 = vpop.permute.xlu0 %1167  ;;  %3804 = vst.msk [vmem:[%s5176_s21 + $0xe0] sm:$0xff] %vm1189_vm15, %v4069_v40  ;;  %v3798_v53 = vadd.f32 -0.9, %v2284_v19  ;;  %v1870_v62 = vmax.f32 %v1862_v52, 0.0  ;;  %v1537_v16 = vadd.f32 %v1521_v42, %v1412_v51  ;;  %v6500_v52 = vld [vmem:[#allocation6_spill] sm:$0xff] }
 0x493   : > { %v1555_v26 = vmax.f32 %v1547_v34, 0.0  ;;  %1191 = vst.msk [vmem:[%s5176_s21 + $0x8] sm:$0xff] %vm1189_vm15, %v1168_v2  ;;  %v4071_v49 = vpop.eup %4070 }
 0x494   : > { %4078 = vtanh.f32 %v3798_v53  ;;  %v3782_v27 = vadd.f32 -0.9, %v1870_v62  ;;  %v1548_v3 = vadd.f32 %v6476_v47, %v1537_v16  ;;  %1904 = vrot.lane.b32.xlu0 %v4071_v49, %s4146_s25 }
 0x495   : > { %v3766_v44 = vadd.f32 -0.9, %v1555_v26  ;;  %v1170_v31 = vpop.permute.xlu1 %1169 }
 0x496   : > { %v2135_v39 = vpop.permute.xlu0 %2134  ;;  %4080 = vtanh.f32 %v3782_v27  ;;  %v1556_v18 = vmax.f32 %v1548_v3, 0.0  ;;  %1192 = vst.msk [vmem:[%s5176_s21 + $0x10] sm:$0xff] %vm1189_vm15, %v1170_v31 }
 0x497   : > { %v2151_v7 = vadd.f32 %v2135_v39, %v2041_v45  ;;  %v4073_v30 = vpop.eup %4072  ;;  %4082 = vtanh.f32 %v3766_v44  ;;  %v6501_v45 = vld [vmem:[#allocation16_spill] sm:$0xff] }
 0x498   : > { %v3767_v29 = vadd.f32 -0.9, %v1556_v18  ;;  %1591 = vrot.lane.b32.xlu0 %v4073_v30, %s4148_s27  ;;  %v2608_v27 = vadd.f32 %v6501_v45, %v6363_v35 }
 0x499   : > { %v2269_v20 = vadd.f32 %v6497_v4, %v2151_v7  ;;  %v2722_v17 = vpop.permute.xlu1 %2721 }
 0x49a   : > { %v1836_v10 = vpop.permute.xlu0 %1835  ;;  %v4075_v28 = vpop.eup %4074  ;;  %4084 = vtanh.f32 %v3767_v29  ;;  %v2744_v34 = vadd.f32 %v2722_v17, %v2623_v22  ;;  %v2624_v6 = vrot.slane %v2608_v27, 1 }
 0x49b   : > { %v2277_v23 = vadd.f32 %v5823_v63, %v2269_v20  ;;  %v1852_v32 = vadd.f32 %v1836_v10, %v1726_v0  ;;  %3805 = vst.msk [vmem:[%s5176_s21 + $0xe8] sm:$0xff] %vm1189_vm15, %v4075_v28  ;;  %v6502_v10 = vld [vmem:[#allocation100_spill] sm:$0xff] }
 0x49c   : > { %v4077_v15 = vpop.eup %4076  ;;  %v3346_v28 = vadd.f32 %v6502_v10, %v5318_v50 }
 0x49d   : > { %v2285_v38 = vmax.f32 %v2277_v23, 0.0  ;;  %v1863_v14 = vadd.f32 %v6453_v48, %v1852_v32  ;;  %1906 = vrot.lane.b32.xlu1 %v4077_v15, %s4146_s25  ;;  %v3152_v58 = vpop.permute.xlu1 %3151  ;;  %v6503_v23 = vld [vmem:[#allocation68_spill] sm:$0xff] }
 0x49e   : > { %v3445_v12 = vpop.permute.xlu0 %3444  ;;  %v3174_v46 = vadd.f32 %v3152_v58, %v3051_v24  ;;  %v3052_v32 = vadd.f32 %v6503_v23, %v5645_v57  ;;  %v3362_v58 = vrot.slane %v3346_v28, 1  ;;  %v3053_v57 = vadd.f32 %v5610_v61, %v5657_v59 }
 0x49f   : > { %v3799_v11 = vadd.f32 -0.9, %v2285_v38  ;;  %v1871_v5 = vmax.f32 %v1863_v14, 0.0  ;;  %v3467_v43 = vadd.f32 %v3445_v12, %v3360_v25  ;;  %v6504_v38 = vld [vmem:[#allocation82_spill] sm:$0xff] }
 0x4a0   : > { %v3182_v51 = vadd.f32 %v3174_v46, %v6453_v48  ;;  %v2609_v14 = vadd.f32 %v6504_v38, %v6370_v33  ;;  %v6511_v38 = vld [vmem:[#allocation13_spill] sm:$0xff] }
 0x4a1   : > { %4086 = vtanh.f32 %v3799_v11  ;;  %v3783_v19 = vadd.f32 -0.9, %v1871_v5  ;;  %v3582_v21 = vadd.f32 %v6500_v52, %v3467_v43  ;;  %v4079_v55 = vpop.eup %4078  ;;  %v3447_v40 = vpop.permute.xlu1 %3446 }
 0x4a2   : > { %v2844_v42 = vpop.permute.xlu0 %2843  ;;  %3806 = vst.msk [vmem:[%s5176_s21 + $0xf0] sm:$0xff] %vm1189_vm15, %v4079_v55  ;;  %v3190_v2 = vmax.f32 %v3182_v51, 0.0  ;;  %v3468_v62 = vadd.f32 %v3447_v40, %v3361_v36 }
 0x4a3   : > { %4088 = vtanh.f32 %v3783_v19  ;;  %v3590_v53 = vadd.f32 %v5823_v63, %v3582_v21  ;;  %v4081_v26 = vpop.eup %4080  ;;  %v2866_v16 = vadd.f32 %v2844_v42, %v2744_v34  ;;  %v2625_v19 = vrot.slane %v2609_v14, 1  ;;  %v6512_v14 = vld [vmem:[#allocation9_spill] sm:$0xff] }
 0x4a4   : > { %v4083_v49 = vpop.eup %4082  ;;  %v3841_v44 = vadd.f32 -0.9, %v3190_v2  ;;  %v3583_v31 = vadd.f32 %v5623_v54, %v3468_v62  ;;  %1908 = vrot.lane.b32.xlu0 %v4081_v26, %s4146_s25 }
 0x4a5   : > { %v3598_v3 = vmax.f32 %v3590_v53, 0.0  ;;  %v2874_v39 = vadd.f32 %v2866_v16, %v6476_v47  ;;  %1593 = vrot.lane.b32.xlu1 %v4083_v49, %s4148_s27  ;;  %v2846_v18 = vpop.permute.xlu1 %2845  ;;  %v6505_v53 = vld [vmem:[#allocation23_spill] sm:$0xff] }
 0x4a6   : > { %v1172_v7 = vpop.permute.xlu0 %1171  ;;  %4090 = vtanh.f32 %v3841_v44  ;;  %v3591_v9 = vadd.f32 %v5823_v63, %v3583_v31 }
 0x4a7   : > { %v3857_v30 = vadd.f32 -0.9, %v3598_v3  ;;  %1193 = vst.msk [vmem:[%s5176_s21 + $0x18] sm:$0xff] %vm1189_vm15, %v1172_v7  ;;  %v4085_v35 = vpop.eup %4084  ;;  %v2882_v60 = vmax.f32 %v2874_v39, 0.0 }
 0x4a8   : > { %v3599_v54 = vmax.f32 %v3591_v9, 0.0  ;;  %1595 = vrot.lane.b32.xlu0 %v4085_v35, %s4148_s27 }
 0x4a9   : > { %4092 = vtanh.f32 %v3857_v30  ;;  %v3825_v0 = vadd.f32 -0.9, %v2882_v60  ;;  %v1174_v29 = vpop.permute.xlu1 %1173  ;;  %v6507_v60 = vld [vmem:[#allocation11_spill] sm:$0xff] }
 0x4aa   : > { %v2724_v4 = vpop.permute.xlu0 %2723  ;;  %v3858_v20 = vadd.f32 -0.9, %v3599_v54  ;;  %1194 = vst.msk [vmem:[%s5176_s21 + $0x20] sm:$0xff] %vm1189_vm15, %v1174_v29 }
 0x4ab   : > { %v2745_v17 = vadd.f32 %v2724_v4, %v2624_v6  ;;  %4094 = vtanh.f32 %v3825_v0  ;;  %v6508_v6 = vld [vmem:[#allocation7_spill] sm:$0xff] }
 0x4ac   : > { %4096 = vtanh.f32 %v3858_v20  ;;  %v3054_v54 = vadd.f32 %v6508_v6, %v6507_v60 }
 0x4ad   : > { %v2867_v15 = vadd.f32 %v2846_v18, %v2745_v17  ;;  %v2726_v56 = vpop.permute.xlu1 %2725 }
 0x4ae   : > { %v4087_v8 = vpop.eup %4086  ;;  %v3154_v1 = vpop.permute.xlu0 %3153  ;;  %v2746_v55 = vadd.f32 %v2726_v56, %v2625_v19  ;;  %v6509_v56 = vld [vmem:[#allocation25_spill] sm:$0xff] }
 0x4af   : > { %3807 = vst.msk [vmem:[%s5176_s21 + $0xf8] sm:$0xff] %vm1189_vm15, %v4087_v8  ;;  %v2875_v37 = vadd.f32 %v2867_v15, %v6476_v47  ;;  %v3175_v25 = vadd.f32 %v3154_v1, %v3052_v32  ;;  %v6510_v1 = vld [vmem:[#allocation89_spill] sm:$0xff] }
 0x4b0   : > { %v4089_v24 = vpop.eup %4088 }
 0x4b1   : > { %v2883_v12 = vmax.f32 %v2875_v37, 0.0  ;;  %v3183_v50 = vadd.f32 %v3175_v25, %v6453_v48  ;;  %1910 = vrot.lane.b32.xlu1 %v4089_v24, %s4146_s25  ;;  %v3156_v11 = vpop.permute.xlu1 %3155  ;;  %v2611_v37 = vadd.f32 %v6510_v1, %v6509_v56  ;;  %v6524_v56 = vld [vmem:[#allocation67_spill] sm:$0xff] }
 0x4b2   : > { %v3449_v5 = vpop.permute.xlu0 %3448  ;;  %v3176_v51 = vadd.f32 %v3156_v11, %v3053_v57 }
 0x4b3   : > { %v3826_v46 = vadd.f32 -0.9, %v2883_v12  ;;  %v3191_v43 = vmax.f32 %v3183_v50, 0.0  ;;  %v3469_v36 = vadd.f32 %v3449_v5, %v3362_v58  ;;  %v4091_v22 = vpop.eup %4090  ;;  %v3055_v58 = vadd.f32 %v6512_v14, %v6511_v38 }
 0x4b4   : > { %v3184_v40 = vadd.f32 %v3176_v51, %v6453_v48 }
 0x4b5   : > { %4098 = vtanh.f32 %v3826_v46  ;;  %v3842_v33 = vadd.f32 -0.9, %v3191_v43  ;;  %v3584_v52 = vadd.f32 %v5641_v13, %v3469_v36  ;;  %3223 = vrot.lane.b32.xlu1 %v4091_v22, %s4146_s25  ;;  %v5949_v34 = vpop.permute.xlu1 %3450  ;;  %v6506_v13 = vld [vmem:[#allocation78_spill] sm:$0xff]  ;;  %v2627_v46 = vrot.slane %v2611_v37, 1  ;;  %v6513_v36 = vld [vmem:[#allocation27_spill] sm:$0xff]  ;;  %v6514_v22 = vld [vmem:[#allocation84_spill] sm:$0xff] }
 0x4b6   : > { %v4093_v21 = vpop.eup %4092  ;;  %v2848_v61 = vpop.permute.xlu0 %2847  ;;  %v2610_v62 = vadd.f32 %v6506_v13, %v6505_v53  ;;  %v3192_v3 = vmax.f32 %v3184_v40, 0.0  ;;  %v2612_v19 = vadd.f32 %v6514_v22, %v6513_v36 }
 0x4b7   : > { %3865 = vst.msk [vmem:[%s5176_s21 + $0x1c8] sm:$0xff] %vm1189_vm15, %v4093_v21  ;;  %4100 = vtanh.f32 %v3842_v33  ;;  %v3592_v59 = vadd.f32 %v5823_v63, %v3584_v52  ;;  %v2868_v42 = vadd.f32 %v2848_v61, %v2746_v55 }
 0x4b8   : > { %v4095_v2 = vpop.eup %4094  ;;  %v2626_v39 = vrot.slane %v2610_v62, 1  ;;  %v3843_v35 = vadd.f32 -0.9, %v3192_v3  ;;  %v6517_v3 = vld [vmem:[#allocation31_spill] sm:$0xff] }
 0x4b9   : > { %v3600_v26 = vmax.f32 %v3592_v59, 0.0  ;;  %v4097_v16 = vpop.eup %4096  ;;  %v2876_v49 = vadd.f32 %v2868_v42, %v6476_v47  ;;  %2915 = vrot.lane.b32.xlu0 %v4095_v2, %s4148_s27  ;;  %v2850_v45 = vpop.permute.xlu1 %2849  ;;  %v2628_v59 = vrot.slane %v2612_v19, 1  ;;  %v6525_v19 = vld [vmem:[#allocation81_spill] sm:$0xff] }
 0x4ba   : > { %v1176_v27 = vpop.permute.xlu0 %1175  ;;  %3866 = vst.msk [vmem:[%s5176_s21 + $0x1d0] sm:$0xff] %vm1189_vm15, %v4097_v16  ;;  %v6516_v16 = vld [vmem:[#allocation33_spill] sm:$0xff] }
 0x4bb   : > { %v3859_v44 = vadd.f32 -0.9, %v3600_v26  ;;  %1195 = vst.msk [vmem:[%s5176_s21 + $0x28] sm:$0xff] %vm1189_vm15, %v1176_v27  ;;  %v2884_v31 = vmax.f32 %v2876_v49, 0.0  ;;  %v6515_v26 = vld [vmem:[#allocation51_spill] sm:$0xff] }
 0x4bc   : > { %v3056_v49 = vadd.f32 %v6516_v16, %v6515_v26 }
 0x4bd   : > { %4102 = vtanh.f32 %v3859_v44  ;;  %v3827_v18 = vadd.f32 -0.9, %v2884_v31  ;;  %v1178_v7 = vpop.permute.xlu1 %1177  ;;  %v6518_v31 = vld [vmem:[#allocation97_spill] sm:$0xff] }
 0x4be   : > { %v2728_v30 = vpop.permute.xlu0 %2727  ;;  %1196 = vst.msk [vmem:[%s5176_s21 + $0x30] sm:$0xff] %vm1189_vm15, %v1178_v7 }
 0x4bf   : > { %v2747_v9 = vadd.f32 %v2728_v30, %v2626_v39  ;;  %4104 = vtanh.f32 %v3827_v18  ;;  %v3347_v39 = vadd.f32 %v6518_v31, %v6517_v3 }
 0x4c0   : > { %4106 = vtanh.f32 %v3843_v35 }
 0x4c1   : > { %v2869_v0 = vadd.f32 %v2850_v45, %v2747_v9  ;;  %v2730_v4 = vpop.permute.xlu1 %2729  ;;  %v6519_v9 = vld [vmem:[#allocation41_spill] sm:$0xff] }
 0x4c2   : > { %v4099_v29 = vpop.eup %4098  ;;  %v3158_v20 = vpop.permute.xlu0 %3157  ;;  %v2748_v51 = vadd.f32 %v2730_v4, %v2627_v46  ;;  %v2629_v35 = vrot.slane %v6519_v9, 1 }
 0x4c3   : > { %v2877_v17 = vadd.f32 %v2869_v0, %v6476_v47  ;;  %v3177_v10 = vadd.f32 %v3158_v20, %v3054_v54  ;;  %2917 = vrot.lane.b32.xlu1 %v4099_v29, %s4148_s27  ;;  %v6520_v54 = vld [vmem:[#allocation35_spill] sm:$0xff] }
 0x4c4   : > { %v4101_v28 = vpop.eup %4100  ;;  %v3057_v0 = vadd.f32 %v6520_v54, %v4374_v41 }
 0x4c5   : > { %v2885_v23 = vmax.f32 %v2877_v17, 0.0  ;;  %v3185_v32 = vadd.f32 %v3177_v10, %v6453_v48  ;;  %3225 = vrot.lane.b32.xlu0 %v4101_v28, %s4146_s25  ;;  %v3160_v15 = vpop.permute.xlu1 %3159  ;;  %v3363_v10 = vrot.slane %v3347_v39, 1  ;;  %v6521_v28 = vld [vmem:[#allocation54_spill] sm:$0xff] }
 0x4c6   : > { %v5971_v8 = vpop.permute.xlu0 %3452  ;;  %v3178_v57 = vadd.f32 %v3160_v15, %v3055_v58  ;;  %v6523_v15 = vld [vmem:[#allocation8_spill] sm:$0xff] }
 0x4c7   : > { %v3828_v25 = vadd.f32 -0.9, %v2885_v23  ;;  %v3193_v24 = vmax.f32 %v3185_v32, 0.0  ;;  %v6522_v23 = vld [vmem:[#allocation59_spill] sm:$0xff]  ;;  %v3348_v1 = vadd.f32 %v6524_v56, %v6523_v15 }
 0x4c8   : > { %v3186_v33 = vadd.f32 %v3178_v57, %v6453_v48  ;;  %v3349_v32 = vadd.f32 %v6522_v23, %v6521_v28 }
 0x4c9   : > { %4108 = vtanh.f32 %v3828_v25  ;;  %v3844_v12 = vadd.f32 -0.9, %v3193_v24  ;;  %v5977_v11 = vpop.permute.xlu1 %3454  ;;  %v3364_v46 = vrot.slane %v3348_v1, 1 }
 0x4ca   : > { %v4103_v50 = vpop.eup %4102  ;;  %v1180_v5 = vpop.permute.xlu0 %1179  ;;  %v3194_v42 = vmax.f32 %v3186_v33, 0.0  ;;  %v3365_v22 = vrot.slane %v3349_v32, 1 }
 0x4cb   : > { %3867 = vst.msk [vmem:[%s5176_s21 + $0x1d8] sm:$0xff] %vm1189_vm15, %v4103_v50  ;;  %1197 = vst.msk [vmem:[%s5176_s21 + $0x38] sm:$0xff] %vm1189_vm15, %v1180_v5  ;;  %4110 = vtanh.f32 %v3844_v12  ;;  %v3470_v12 = vadd.f32 %v5949_v34, %v3363_v10 }
 0x4cc   : > { %v4105_v43 = vpop.eup %4104  ;;  %v3845_v18 = vadd.f32 -0.9, %v3194_v42  ;;  %v3472_v34 = vadd.f32 %v5977_v11, %v3365_v22 }
 0x4cd   : > { %2919 = vrot.lane.b32.xlu1 %v4105_v43, %s4148_s27  ;;  %v2734_v52 = vpop.permute.xlu1 %2733  ;;  %v4107_v61 = vpop.eup %4106 }
 0x4ce   : > { %v2852_v21 = vpop.permute.xlu0 %2851  ;;  %v2750_v29 = vadd.f32 %v2734_v52, %v2629_v35 }
 0x4cf   : > { %v2870_v55 = vadd.f32 %v2852_v21, %v2748_v51  ;;  %v3350_v51 = vadd.f32 %v6525_v19, %v4374_v41  ;;  %v3471_v21 = vadd.f32 %v5971_v8, %v3364_v46 }
 0x4d1   : > { %v2878_v40 = vadd.f32 %v2870_v55, %v6476_v47  ;;  %3227 = vrot.lane.b32.xlu1 %v4107_v61, %s4146_s25  ;;  %v2854_v2 = vpop.permute.xlu1 %2853 }
 0x4d2   : > { %v2732_v53 = vpop.permute.xlu0 %2731 }
 0x4d3   : > { %v2886_v13 = vmax.f32 %v2878_v40, 0.0  ;;  %v2749_v62 = vadd.f32 %v2732_v53, %v2628_v59  ;;  %v3366_v40 = vrot.slane %v3350_v51, 1 }
 0x4d5   : > { %v3829_v45 = vadd.f32 -0.9, %v2886_v13  ;;  %v2871_v27 = vadd.f32 %v2854_v2, %v2749_v62  ;;  %v2513_v7 = vpop.permute.xlu1 %2512 }
 0x4d6   : > { %v4109_v44 = vpop.eup %4108  ;;  %v3162_v30 = vpop.permute.xlu0 %3161  ;;  %3817 = vst.msk [vmem:[%s5176_s21 + $0x108] sm:$0xff] %vm1189_vm15, %v2513_v7 }
 0x4d7   : > { %4112 = vtanh.f32 %v3829_v45  ;;  %v2879_v60 = vadd.f32 %v2871_v27, %v6476_v47  ;;  %v3179_v6 = vadd.f32 %v3162_v30, %v3056_v49  ;;  %2921 = vrot.lane.b32.xlu0 %v4109_v44, %s4148_s27 }
 0x4d8   : > { %v4111_v17 = vpop.eup %4110  ;;  %4114 = vtanh.f32 %v3845_v18 }
 0x4d9   : > { %v2887_v4 = vmax.f32 %v2879_v60, 0.0  ;;  %v3187_v20 = vadd.f32 %v3179_v6, %v6453_v48  ;;  %v3164_v37 = vpop.permute.xlu1 %3163 }
 0x4da   : > { %v2856_v25 = vpop.permute.xlu0 %2855  ;;  %v3180_v14 = vadd.f32 %v3164_v37, %v3057_v0 }
 0x4db   : > { %v3830_v24 = vadd.f32 -0.9, %v2887_v4  ;;  %v3195_v38 = vmax.f32 %v3187_v20, 0.0  ;;  %v2872_v58 = vadd.f32 %v2856_v25, %v2750_v29  ;;  %3229 = vrot.lane.b32.xlu0 %v4111_v17, %s4146_s25 }
 0x4dc   : > { %v3188_v57 = vadd.f32 %v3180_v14, %v6453_v48 }
 0x4dd   : > { %4116 = vtanh.f32 %v3830_v24  ;;  %v3846_v50 = vadd.f32 -0.9, %v3195_v38  ;;  %v2880_v5 = vadd.f32 %v2872_v58, %v6476_v47  ;;  %v3566_v43 = vpop.permute.xlu1 %3565 }
 0x4de   : > { %v3457_v36 = vpop.permute.xlu0 %3456  ;;  %v3585_v52 = vadd.f32 %v3566_v43, %v3470_v12  ;;  %v3196_v55 = vmax.f32 %v3188_v57, 0.0 }
 0x4df   : > { %v2888_v33 = vmax.f32 %v2880_v5, 0.0  ;;  %4118 = vtanh.f32 %v3846_v50  ;;  %v3473_v26 = vadd.f32 %v3457_v36, %v3366_v40 }
 0x4e0   : > { %v3593_v48 = vadd.f32 %v5823_v63, %v3585_v52  ;;  %v3847_v41 = vadd.f32 -0.9, %v3196_v55 }
 0x4e1   : > { %v3831_v61 = vadd.f32 -0.9, %v2888_v33  ;;  %v3570_v59 = vpop.permute.xlu1 %3569 }
 0x4e2   : > { %v3568_v47 = vpop.permute.xlu0 %3567  ;;  %v3601_v42 = vmax.f32 %v3593_v48, 0.0  ;;  %v3587_v2 = vadd.f32 %v3570_v59, %v3472_v34 }
 0x4e3   : > { %v3586_v53 = vadd.f32 %v3568_v47, %v3471_v21  ;;  %4120 = vtanh.f32 %v3831_v61 }
 0x4e4   : > { %v4113_v13 = vpop.eup %4112  ;;  %v3860_v62 = vadd.f32 -0.9, %v3601_v42  ;;  %v3595_v8 = vadd.f32 %v5823_v63, %v3587_v2 }
 0x4e5   : > { %v3594_v11 = vadd.f32 %v5823_v63, %v3586_v53  ;;  %2923 = vrot.lane.b32.xlu1 %v4113_v13, %s4148_s27  ;;  %v2517_v16 = vpop.permute.xlu1 %2516  ;;  %v4115_v45 = vpop.eup %4114 }
 0x4e6   : > { %v3572_v49 = vpop.permute.xlu0 %3571  ;;  %4122 = vtanh.f32 %v3860_v62  ;;  %v3603_v27 = vmax.f32 %v3595_v8, 0.0  ;;  %3819 = vst.msk [vmem:[%s5176_s21 + $0x118] sm:$0xff] %vm1189_vm15, %v2517_v16 }
 0x4e7   : > { %v3602_v44 = vmax.f32 %v3594_v11, 0.0  ;;  %v3588_v3 = vadd.f32 %v3572_v49, %v3473_v26  ;;  %4124 = vtanh.f32 %v3847_v41 }
 0x4e8   : > { %v3862_v31 = vadd.f32 -0.9, %v3603_v27 }
 0x4e9   : > { %v3861_v39 = vadd.f32 -0.9, %v3602_v44  ;;  %v3596_v18 = vadd.f32 %v5823_v63, %v3588_v3  ;;  %3231 = vrot.lane.b32.xlu1 %v4115_v45, %s4146_s25  ;;  %v2521_v30 = vpop.permute.xlu1 %2520 }
 0x4ea   : > { %v4117_v7 = vpop.eup %4116  ;;  %v3222_v9 = vpop.permute.xlu0 %3221  ;;  %4126 = vtanh.f32 %v3862_v31  ;;  %3821 = vst.msk [vmem:[%s5176_s21 + $0x128] sm:$0xff] %vm1189_vm15, %v2521_v30 }
 0x4eb   : > { %v3604_v35 = vmax.f32 %v3596_v18, 0.0  ;;  %3848 = vst.msk [vmem:[%s5176_s21 + $0x180] sm:$0xff] %vm1189_vm15, %v3222_v9  ;;  %2925 = vrot.lane.b32.xlu0 %v4117_v7, %s4148_s27  ;;  %4128 = vtanh.f32 %v3861_v39 }
 0x4ec   : > { %v4119_v63 = vpop.eup %4118 }
 0x4ed   : > { %v3863_v60 = vadd.f32 -0.9, %v3604_v35  ;;  %v2525_v6 = vpop.permute.xlu1 %2524 }
 0x4ee   : > { %v2515_v54 = vpop.permute.xlu0 %2514  ;;  %3823 = vst.msk [vmem:[%s5176_s21 + $0x138] sm:$0xff] %vm1189_vm15, %v2525_v6 }
 0x4ef   : > { %4130 = vtanh.f32 %v3863_v60  ;;  %3818 = vst.msk [vmem:[%s5176_s21 + $0x110] sm:$0xff] %vm1189_vm15, %v2515_v54  ;;  %3233 = vrot.lane.b32.xlu0 %v4119_v63, %s4146_s25 }
 0x4f0   : > { %v4121_v0 = vpop.eup %4120 }
 0x4f1   : > { %2927 = vrot.lane.b32.xlu1 %v4121_v0, %s4148_s27  ;;  %v1899_v29 = vpop.permute.xlu1 %1898 }
 0x4f2   : > { %v2519_v4 = vpop.permute.xlu0 %2518  ;;  %3785 = vst.msk [vmem:[%s5176_s21 + $0x88] sm:$0xff] %vm1189_vm15, %v1899_v29 }
 0x4f3   : > { %3820 = vst.msk [vmem:[%s5176_s21 + $0x120] sm:$0xff] %vm1189_vm15, %v2519_v4  ;;  %v4123_v20 = vpop.eup %4122 }
 0x4f4   : > { %v4125_v17 = vpop.eup %4124  ;;  %3868 = vst.msk [vmem:[%s5176_s21 + $0x1e0] sm:$0xff] %vm1189_vm15, %v4123_v20 }
 0x4f5   : > { %3235 = vrot.lane.b32.xlu1 %v4125_v17, %s4146_s25  ;;  %v1586_v10 = vpop.permute.xlu1 %1585 }
 0x4f6   : > { %v2523_v28 = vpop.permute.xlu0 %2522  ;;  %3770 = vst.msk [vmem:[%s5176_s21 + $0x50] sm:$0xff] %vm1189_vm15, %v1586_v10 }
 0x4f7   : > { %3822 = vst.msk [vmem:[%s5176_s21 + $0x130] sm:$0xff] %vm1189_vm15, %v2523_v28  ;;  %v4127_v23 = vpop.eup %4126 }
 0x4f8   : > { %v4129_v32 = vpop.eup %4128  ;;  %3870 = vst.msk [vmem:[%s5176_s21 + $0x1f0] sm:$0xff] %vm1189_vm15, %v4127_v23 }
 0x4f9   : > { %3869 = vst.msk [vmem:[%s5176_s21 + $0x1e8] sm:$0xff] %vm1189_vm15, %v4129_v32 }
 0x4fa   : > { %v1584_v15 = vpop.permute.xlu0 %1583 }
 0x4fb   : > { %3769 = vst.msk [vmem:[%s5176_s21 + $0x48] sm:$0xff] %vm1189_vm15, %v1584_v15 }
 0x4fc   : > { %v4131_v56 = vpop.eup %4130 }
 0x4fd   : > { %3871 = vst.msk [vmem:[%s5176_s21 + $0x1f8] sm:$0xff] %vm1189_vm15, %v4131_v56 }
 0x4fe   : > { %v1901_v1 = vpop.permute.xlu0 %1900  ;;  %v1903_v37 = vpop.permute.xlu1 %1902 }
 0x4ff   : > { %3786 = vst.msk [vmem:[%s5176_s21 + $0x90] sm:$0xff] %vm1189_vm15, %v1901_v1  ;;  %3787 = vst.msk [vmem:[%s5176_s21 + $0x98] sm:$0xff] %vm1189_vm15, %v1903_v37 }
 0x502   : > { %v1588_v25 = vpop.permute.xlu0 %1587 }
 0x503   : > { %3771 = vst.msk [vmem:[%s5176_s21 + $0x58] sm:$0xff] %vm1189_vm15, %v1588_v25  ;;  %v1590_v24 = vpop.permute.xlu1 %1589 }
 0x504   : > { %3772 = vst.msk [vmem:[%s5176_s21 + $0x60] sm:$0xff] %vm1189_vm15, %v1590_v24 }
 0x506   : > { %v1905_v38 = vpop.permute.xlu0 %1904 }
 0x507   : > { %3788 = vst.msk [vmem:[%s5176_s21 + $0xa0] sm:$0xff] %vm1189_vm15, %v1905_v38 }
 0x50a   : > { %v1592_v14 = vpop.permute.xlu0 %1591 }
 0x50b   : > { %3773 = vst.msk [vmem:[%s5176_s21 + $0x68] sm:$0xff] %vm1189_vm15, %v1592_v14 }
 0x50f   : > { %v1907_v58 = vpop.permute.xlu1 %1906 }
 0x510   : > { %3789 = vst.msk [vmem:[%s5176_s21 + $0xa8] sm:$0xff] %vm1189_vm15, %v1907_v58 }
 0x516   : > { %v1909_v12 = vpop.permute.xlu0 %1908 }
 0x517   : > { %v1594_v50 = vpop.permute.xlu1 %1593  ;;  %3790 = vst.msk [vmem:[%s5176_s21 + $0xb0] sm:$0xff] %vm1189_vm15, %v1909_v12 }
 0x518   : > { %3774 = vst.msk [vmem:[%s5176_s21 + $0x70] sm:$0xff] %vm1189_vm15, %v1594_v50 }
 0x51a   : > { %v1596_v57 = vpop.permute.xlu0 %1595 }
 0x51b   : > { %3775 = vst.msk [vmem:[%s5176_s21 + $0x78] sm:$0xff] %vm1189_vm15, %v1596_v57 }
 0x523   : > { %v1911_v5 = vpop.permute.xlu1 %1910 }
 0x524   : > { %3791 = vst.msk [vmem:[%s5176_s21 + $0xb8] sm:$0xff] %vm1189_vm15, %v1911_v5 }
 0x527   : > { %v3224_v46 = vpop.permute.xlu1 %3223 }
 0x528   : > { %3849 = vst.msk [vmem:[%s5176_s21 + $0x188] sm:$0xff] %vm1189_vm15, %v3224_v46 }
 0x52b   : > { %v2916_v43 = vpop.permute.xlu0 %2915 }
 0x52c   : > { %3833 = vst.msk [vmem:[%s5176_s21 + $0x148] sm:$0xff] %vm1189_vm15, %v2916_v43 }
 0x535   : > { %v2918_v36 = vpop.permute.xlu1 %2917 }
 0x536   : > { %3834 = vst.msk [vmem:[%s5176_s21 + $0x150] sm:$0xff] %vm1189_vm15, %v2918_v36 }
 0x537   : > { %v3226_v22 = vpop.permute.xlu0 %3225 }
 0x538   : > { %3850 = vst.msk [vmem:[%s5176_s21 + $0x190] sm:$0xff] %vm1189_vm15, %v3226_v22 }
 0x53f   : > { %v2920_v19 = vpop.permute.xlu1 %2919 }
 0x540   : > { %3835 = vst.msk [vmem:[%s5176_s21 + $0x158] sm:$0xff] %vm1189_vm15, %v2920_v19 }
 0x543   : > { %v3228_v51 = vpop.permute.xlu1 %3227 }
 0x544   : > { %3851 = vst.msk [vmem:[%s5176_s21 + $0x198] sm:$0xff] %vm1189_vm15, %v3228_v51 }
 0x549   : > { %v2922_v33 = vpop.permute.xlu0 %2921 }
 0x54a   : > { %3836 = vst.msk [vmem:[%s5176_s21 + $0x160] sm:$0xff] %vm1189_vm15, %v2922_v33 }
 0x54d   : > { %v3230_v52 = vpop.permute.xlu0 %3229 }
 0x54e   : > { %3852 = vst.msk [vmem:[%s5176_s21 + $0x1a0] sm:$0xff] %vm1189_vm15, %v3230_v52 }
 0x557   : > { %v2924_v21 = vpop.permute.xlu1 %2923 }
 0x558   : > { %3837 = vst.msk [vmem:[%s5176_s21 + $0x168] sm:$0xff] %vm1189_vm15, %v2924_v21 }
 0x55b   : > { %v3232_v55 = vpop.permute.xlu1 %3231 }
 0x55c   : > { %3853 = vst.msk [vmem:[%s5176_s21 + $0x1a8] sm:$0xff] %vm1189_vm15, %v3232_v55 }
 0x55d   : > { %v2926_v34 = vpop.permute.xlu0 %2925 }
 0x55e   : > { %3838 = vst.msk [vmem:[%s5176_s21 + $0x170] sm:$0xff] %vm1189_vm15, %v2926_v34 }
 0x561   : > { %v3234_v61 = vpop.permute.xlu0 %3233 }
 0x562   : > { %3854 = vst.msk [vmem:[%s5176_s21 + $0x1b0] sm:$0xff] %vm1189_vm15, %v3234_v61 }
 0x563   : > { %v2928_v48 = vpop.permute.xlu1 %2927 }
 0x564   : > { %3839 = vst.msk [vmem:[%s5176_s21 + $0x178] sm:$0xff] %vm1189_vm15, %v2928_v48 }
 0x567   : > { %v3236_v59 = vpop.permute.xlu1 %3235 }
 0x568   : > { %3855 = vst.msk [vmem:[%s5176_s21 + $0x1b8] sm:$0xff] %vm1189_vm15, %v3236_v59 }
 0x569 PF: > { %s15_s18 = sadd.s32 1, %s4140_s18  }
 0x56a   : > { %p12_p5 = scmp.ge.s32.totalorder %s15_s18, 4  }
 0x56c   :  { %14 = sbr.rel (!%p12_p5) target bundleno = 1 (0x1), region = 80 }

</bundles_post_ra>
